<compile_context>
chip_gen: v7x
topology: tpu7x:2x2x1
jax: 0.10.0
libtpu: 0.0.40
codegen_flags: <defaults>
</compile_context>

<pallas_src>
import numpy as np

import jax
import jax.numpy as jnp
from jax.experimental import pallas as pl
from jax.experimental.pallas import tpu as pltpu


# ----------------------------------------------------------------------------
# Host-side constant folding (numpy, runs once at parameter construction)
# ----------------------------------------------------------------------------
def _dense_down(w_pt, bias, scale, shift, H, W):
    """Conv2d(k=4,s=2,p=1)+BN -> dense [H*W*Cin, Ho*Wo*Cout] on flattened HWC."""
    cout, cin = w_pt.shape[0], w_pt.shape[1]
    Ho, Wo = H // 2, W // 2
    wf = (w_pt * scale[:, None, None, None]).astype(np.float32)   # fold BN scale
    D = np.zeros((H * W * cin, Ho * Wo * cout), np.float32)
    for kh in range(4):
        for kw in range(4):
            blk = wf[:, :, kh, kw].T                               # [cin, cout]
            for oh in range(Ho):
                hh = 2 * oh - 1 + kh                               # stride 2, pad 1
                if not (0 <= hh < H):
                    continue
                for ow in range(Wo):
                    ww = 2 * ow - 1 + kw
                    if not (0 <= ww < W):
                        continue
                    r = (hh * W + ww) * cin
                    c = (oh * Wo + ow) * cout
                    D[r:r + cin, c:c + cout] += blk
    b = np.tile(bias * scale + shift, Ho * Wo).astype(np.float32)
    return D, b


def _dense_up(w_pt, bias, scale, shift, H, W):
    """ConvTranspose2d(k=4,s=2,p=1)+BN -> dense [H*W*Cin, 2H*2W*Cout]."""
    cin, cout = w_pt.shape[0], w_pt.shape[1]
    Ho, Wo = 2 * H, 2 * W
    wf = (w_pt * scale[None, :, None, None]).astype(np.float32)   # fold BN scale
    D = np.zeros((H * W * cin, Ho * Wo * cout), np.float32)
    for kh in range(4):
        for kw in range(4):
            blk = wf[:, :, kh, kw]                                 # [cin, cout]
            for hh in range(H):
                oh = 2 * hh + kh - 1                               # stride 2, pad 1
                if not (0 <= oh < Ho):
                    continue
                for ww in range(W):
                    ow = 2 * ww + kw - 1
                    if not (0 <= ow < Wo):
                        continue
                    r = (hh * W + ww) * cin
                    c = (oh * Wo + ow) * cout
                    D[r:r + cin, c:c + cout] += blk
    b = np.tile(bias * scale + shift, Ho * Wo).astype(np.float32)
    return D, b


def _bn_affine(key, c, eps=1e-5):
    # eval-mode BatchNorm with freshly-initialized running stats (mean=0, var=1).
    # TODO(synk): a real checkpoint would fold its actual running statistics here.
    k1, k2 = jax.random.split(key)
    gamma = 1.0 + 0.02 * np.asarray(jax.random.normal(k1, (c,), jnp.float32))
    beta = 0.02 * np.asarray(jax.random.normal(k2, (c,), jnp.float32))
    scale = (gamma / np.sqrt(1.0 + eps)).astype(np.float32)
    shift = beta.astype(np.float32)
    return scale, shift


def build_generator_consts(key, *, batch=2, hw=16, in_ch=3, out_ch=3, ngf=8):
    """pix2pix N(0,0.02) init, every layer folded into one dense [K,N] + bias."""
    h = w = hw
    keys = jax.random.split(key, 16)
    ki = iter(keys)

    def conv_w(cout, cin):       # Conv2d weight [Cout, Cin, 4, 4]
        return 0.02 * np.asarray(jax.random.normal(next(ki), (cout, cin, 4, 4),
                                                   jnp.float32))

    def convt_w(cin, cout):      # ConvTranspose2d weight [Cin, Cout, 4, 4]
        return 0.02 * np.asarray(jax.random.normal(next(ki), (cin, cout, 4, 4),
                                                   jnp.float32))

    zeros = lambda c: np.zeros((c,), np.float32)
    ones = lambda c: np.ones((c,), np.float32)

    layers = []                                                    # (D[K,N], b[N])

    # ---------------- encoder ----------------
    d1_w = conv_w(ngf, in_ch)                                                 # 16 -> 8
    layers.append(_dense_down(d1_w, zeros(ngf), ones(ngf), zeros(ngf), h, w))

    d2_w = conv_w(2 * ngf, ngf); s, t = _bn_affine(next(ki), 2 * ngf)         # 8 -> 4
    layers.append(_dense_down(d2_w, zeros(2 * ngf), s, t, h // 2, w // 2))

    d3_w = conv_w(4 * ngf, 2 * ngf); s, t = _bn_affine(next(ki), 4 * ngf)     # 4 -> 2
    layers.append(_dense_down(d3_w, zeros(4 * ngf), s, t, h // 4, w // 4))

    d4_w = conv_w(8 * ngf, 4 * ngf)                                           # 2 -> 1
    layers.append(_dense_down(d4_w, zeros(8 * ngf), ones(8 * ngf),
                              zeros(8 * ngf), h // 8, w // 8))

    # ---------------- decoder ----------------
    u4_w = convt_w(8 * ngf, 4 * ngf); s, t = _bn_affine(next(ki), 4 * ngf)    # 1 -> 2
    layers.append(_dense_up(u4_w, zeros(4 * ngf), s, t, h // 16, w // 16))

    # u3 consumes concat([d3, u4]); weight rows [:4ngf] -> skip(d3), [4ngf:] -> prev(u4)
    u3_w = convt_w(8 * ngf, 2 * ngf); s, t = _bn_affine(next(ki), 2 * ngf)    # 2 -> 4
    Ds, b = _dense_up(u3_w[:4 * ngf], zeros(2 * ngf), s, t, h // 8, w // 8)
    Dp, _ = _dense_up(u3_w[4 * ngf:], zeros(2 * ngf), s, zeros(2 * ngf), h // 8, w // 8)
    layers.append((np.concatenate([Ds, Dp], 0), b))

    u2_w = convt_w(4 * ngf, ngf); s, t = _bn_affine(next(ki), ngf)            # 4 -> 8
    Ds, b = _dense_up(u2_w[:2 * ngf], zeros(ngf), s, t, h // 4, w // 4)
    Dp, _ = _dense_up(u2_w[2 * ngf:], zeros(ngf), s, zeros(ngf), h // 4, w // 4)
    layers.append((np.concatenate([Ds, Dp], 0), b))

    u1_w = convt_w(2 * ngf, out_ch)                                           # 8 -> 16
    Ds, b = _dense_up(u1_w[:ngf], zeros(out_ch), ones(out_ch), zeros(out_ch),
                      h // 2, w // 2)
    Dp, _ = _dense_up(u1_w[ngf:], zeros(out_ch), ones(out_ch), zeros(out_ch),
                      h // 2, w // 2)
    layers.append((np.concatenate([Ds, Dp], 0), b))

    # ---- pack all 8 weight matrices into one lane-padded bf16 slab ----
    slab_w = max(d.shape[1] for d, _ in layers)
    slab_w = ((slab_w + 127) // 128) * 128                         # lane-align (=768)
    layout, off = [], 0
    for d, _ in layers:
        layout.append((off, d.shape[0], d.shape[1]))
        off += d.shape[0]
    total_rows = ((off + 15) // 16) * 16                           # bf16 sublane align
    w_slab = np.zeros((total_rows, slab_w), np.float32)
    b_slab = np.zeros((len(layers), slab_w), np.float32)
    flops = 0
    for i, (d, b) in enumerate(layers):
        o, k, n = layout[i]
        w_slab[o:o + k, :n] = d
        b_slab[i, :n] = b
        flops += 2 * batch * k * n

    w_slab = jnp.asarray(w_slab, jnp.bfloat16)
    b_slab = jnp.asarray(b_slab, jnp.float32)
    bytes_accessed = (batch * h * w * (in_ch + out_ch) * 4
                      + int(w_slab.size) * 2 + int(b_slab.size) * 4)
    return dict(w_slab=w_slab, b_slab=b_slab, layout=tuple(layout),
                B=batch, H=h, W=w, in_ch=in_ch, out_ch=out_ch,
                flops=int(flops), transcendentals=int(batch * h * w * out_ch),
                bytes_accessed=int(bytes_accessed))


# ----------------------------------------------------------------------------
# Single fused Pallas kernel: whole U-Net forward for the whole batch, grid=(1,)
# ----------------------------------------------------------------------------
def unet_forward(consts, x_nchw):
    b, h, w = consts["B"], consts["H"], consts["W"]
    ci, co = consts["in_ch"], consts["out_ch"]
    layout = consts["layout"]
    w_slab, b_slab = consts["w_slab"], consts["b_slab"]
    bf16, f32 = jnp.bfloat16, jnp.float32

    # NCHW -> lane-dense flattened NHWC slab [B, H*W*C]
    x_flat = jnp.transpose(x_nchw, (0, 2, 3, 1)).astype(f32).reshape(b, h * w * ci)

    def kernel(x_ref, w_ref, bias_ref, o_ref):
        lrelu = lambda v: jnp.maximum(v, 0.2 * v)     # LeakyReLU(0.2) as a single max
        relu = lambda v: jnp.maximum(v, 0.0)

        def layer(xa_f32, i):
            off, k, n = layout[i]                     # static slice into weight slab
            y = jnp.dot(xa_f32.astype(bf16), w_ref[off:off + k, :n],
                        preferred_element_type=f32)
            return y + bias_ref[i:i + 1, :n]

        x = x_ref[...]                                             # [B, 768] f32
        d1 = layer(x, 0)                                           # [B, 512]
        d2 = layer(lrelu(d1), 1)                                   # [B, 256]
        d3 = layer(lrelu(d2), 2)                                   # [B, 128]
        d4 = layer(lrelu(d3), 3)                                   # [B,  64]
        u4 = layer(relu(d4), 4)                                    # [B, 128]
        # skip concats: lane concat [skip, prev] matches host-side K stacking
        u3 = layer(jnp.concatenate([relu(d3), relu(u4)], axis=-1), 5)   # [B, 256]
        u2 = layer(jnp.concatenate([relu(d2), relu(u3)], axis=-1), 6)   # [B, 512]
        u1 = layer(jnp.concatenate([relu(d1), relu(u2)], axis=-1), 7)   # [B, 768]
        o_ref[...] = jnp.tanh(u1)

    out_n = h * w * co
    y = pl.pallas_call(
        kernel,
        out_shape=jax.ShapeDtypeStruct((b, out_n), jnp.float32),
        grid_spec=pltpu.PrefetchScalarGridSpec(
            num_scalar_prefetch=0,
            grid=(1,),
            in_specs=[pl.BlockSpec((b, h * w * ci), lambda i: (0, 0)),
                      pl.BlockSpec(tuple(w_slab.shape), lambda i: (0, 0)),
                      pl.BlockSpec(tuple(b_slab.shape), lambda i: (0, 0))],
            out_specs=pl.BlockSpec((b, out_n), lambda i: (0, 0)),
        ),
        compiler_params=pltpu.CompilerParams(
            dimension_semantics=("arbitrary",),
            vmem_limit_bytes=32 * 1024 * 1024),
        cost_estimate=pl.CostEstimate(
            flops=consts["flops"],
            transcendentals=consts["transcendentals"],
            bytes_accessed=consts["bytes_accessed"]),
    )(x_flat, w_slab, b_slab)

    return jnp.transpose(y.reshape(b, h, w, co), (0, 3, 1, 2))     # -> NCHW


# ----------------------------------------------------------------------------
# Minimal Pix2PixModel mirror (inference path only)
# ----------------------------------------------------------------------------
class Pix2PixModelJAX:
    # TODO(synk): training path (netD, GAN/L1 losses, Adam, LR schedulers,
    # backward_D/backward_G, save_images) is optimizer/IO machinery, not
    # forward compute; only the inference forward (netG.generate) is implemented.
    def __init__(self, key, *, batch=2, hw=16, in_ch=3, out_ch=3, ngf=8):
        self.consts = build_generator_consts(key, batch=batch, hw=hw,
                                             in_ch=in_ch, out_ch=out_ch, ngf=ngf)
        self._generate = jax.jit(lambda x: unet_forward(self.consts, x))
        self.real_night = None
        self.real_day = None
        self.fake_day = None

    def set_input(self, batch_night, batch_day=None):
        self.real_night = batch_night
        self.real_day = batch_day

    def forward(self):
        self.fake_day = self._generate(self.real_night)
        return self.fake_day

    def night2day(self, batch_night):
        return self._generate(batch_night)


if __name__ == "__main__":
    key = jax.random.PRNGKey(0)
    k_params, k_data = jax.random.split(key)

    model = Pix2PixModelJAX(k_params)
    # synthetic "night" batch in PyTorch NCHW layout, values in [-1, 1]-ish
    real_night = jnp.tanh(jax.random.normal(k_data, (2, 3, 16, 16), jnp.float32))

    model.set_input(real_night)
    fake_day = model.forward()
    fake_day = jax.block_until_ready(fake_day)

    assert fake_day.shape == (2, 3, 16, 16), fake_day.shape
    assert bool(jnp.all(jnp.isfinite(fake_day)))
    assert bool(jnp.all(jnp.abs(fake_day) <= 1.0))   # tanh output range
    print("KERNEL_OK")
</pallas_src>

<mosaic_0001>
module attributes {stable_mosaic.version = 11 : i64} {
  func.func @kernel(%arg0: i32, %arg1: memref<2x768xf32, #tpu.memory_space<vmem>>, %arg2: memref<3520x768xbf16, #tpu.memory_space<vmem>>, %arg3: memref<8x768xf32, #tpu.memory_space<vmem>>, %arg4: memref<2x768xf32, #tpu.memory_space<vmem>>) attributes {dimension_semantics = [#tpu.dimension_semantics<arbitrary>], iteration_bounds = array<i64: 1>, scalar_prefetch = 0 : i64, scratch_operands = 0 : i64, tpu.core_type = #tpu.core_type<tc>, window_params = [{pipeline_mode = #tpu.pipeline_mode<synchronous>, transform_indices = @transform_0, window_bounds = array<i64: 2, 768>}, {pipeline_mode = #tpu.pipeline_mode<synchronous>, transform_indices = @transform_1, window_bounds = array<i64: 3520, 768>}, {pipeline_mode = #tpu.pipeline_mode<synchronous>, transform_indices = @transform_2, window_bounds = array<i64: 8, 768>}, {pipeline_mode = #tpu.pipeline_mode<synchronous>, transform_indices = @transform_3, window_bounds = array<i64: 2, 768>}]} {
    %c0 = arith.constant 0 : index
    %c0_0 = arith.constant 0 : index
    %0 = vector.load %arg1[%c0, %c0_0] : memref<2x768xf32, #tpu.memory_space<vmem>>, vector<2x768xf32>
    %1 = arith.truncf %0 : vector<2x768xf32> to vector<2x768xbf16>
    %c0_1 = arith.constant 0 : index
    %c0_2 = arith.constant 0 : index
    %2 = vector.load %arg2[%c0_1, %c0_2] : memref<3520x768xbf16, #tpu.memory_space<vmem>>, vector<768x512xbf16>
    %cst = arith.constant dense<0.000000e+00> : vector<2x512xf32>
    %3 = tpu.matmul %1, %2, %cst {dimension_numbers = #tpu.dot_dimension_numbers<[1], [0], [0], [1], [0, 0, 1, 1], [], []>} : vector<2x768xbf16>, vector<768x512xbf16>, vector<2x512xf32> -> vector<2x512xf32>
    %c0_3 = arith.constant 0 : index
    %c0_4 = arith.constant 0 : index
    %4 = vector.load %arg3[%c0_3, %c0_4] : memref<8x768xf32, #tpu.memory_space<vmem>>, vector<1x512xf32>
    %5 = vector.broadcast %4 : vector<1x512xf32> to vector<2x512xf32>
    %6 = arith.addf %3, %5 : vector<2x512xf32>
    %cst_5 = arith.constant 2.000000e-01 : f32
    %7 = vector.broadcast %cst_5 : f32 to vector<2x512xf32>
    %8 = arith.mulf %7, %6 : vector<2x512xf32>
    %9 = arith.maximumf %6, %8 : vector<2x512xf32>
    %10 = arith.truncf %9 : vector<2x512xf32> to vector<2x512xbf16>
    %c768 = arith.constant 768 : index
    %c0_6 = arith.constant 0 : index
    %11 = vector.load %arg2[%c768, %c0_6] : memref<3520x768xbf16, #tpu.memory_space<vmem>>, vector<512x256xbf16>
    %cst_7 = arith.constant dense<0.000000e+00> : vector<2x256xf32>
    %12 = tpu.matmul %10, %11, %cst_7 {dimension_numbers = #tpu.dot_dimension_numbers<[1], [0], [0], [1], [0, 0, 1, 1], [], []>} : vector<2x512xbf16>, vector<512x256xbf16>, vector<2x256xf32> -> vector<2x256xf32>
    %c1 = arith.constant 1 : index
    %c0_8 = arith.constant 0 : index
    %13 = vector.load %arg3[%c1, %c0_8] : memref<8x768xf32, #tpu.memory_space<vmem>>, vector<1x256xf32>
    %14 = vector.broadcast %13 : vector<1x256xf32> to vector<2x256xf32>
    %15 = arith.addf %12, %14 : vector<2x256xf32>
    %cst_9 = arith.constant 2.000000e-01 : f32
    %16 = vector.broadcast %cst_9 : f32 to vector<2x256xf32>
    %17 = arith.mulf %16, %15 : vector<2x256xf32>
    %18 = arith.maximumf %15, %17 : vector<2x256xf32>
    %19 = arith.truncf %18 : vector<2x256xf32> to vector<2x256xbf16>
    %c1280 = arith.constant 1280 : index
    %c0_10 = arith.constant 0 : index
    %20 = vector.load %arg2[%c1280, %c0_10] : memref<3520x768xbf16, #tpu.memory_space<vmem>>, vector<256x128xbf16>
    %cst_11 = arith.constant dense<0.000000e+00> : vector<2x128xf32>
    %21 = tpu.matmul %19, %20, %cst_11 {dimension_numbers = #tpu.dot_dimension_numbers<[1], [0], [0], [1], [0, 0, 1, 1], [], []>} : vector<2x256xbf16>, vector<256x128xbf16>, vector<2x128xf32> -> vector<2x128xf32>
    %c2 = arith.constant 2 : index
    %c0_12 = arith.constant 0 : index
    %22 = vector.load %arg3[%c2, %c0_12] : memref<8x768xf32, #tpu.memory_space<vmem>>, vector<1x128xf32>
    %23 = vector.broadcast %22 : vector<1x128xf32> to vector<2x128xf32>
    %24 = arith.addf %21, %23 : vector<2x128xf32>
    %cst_13 = arith.constant 2.000000e-01 : f32
    %25 = vector.broadcast %cst_13 : f32 to vector<2x128xf32>
    %26 = arith.mulf %25, %24 : vector<2x128xf32>
    %27 = arith.maximumf %24, %26 : vector<2x128xf32>
    %28 = arith.truncf %27 : vector<2x128xf32> to vector<2x128xbf16>
    %c1536 = arith.constant 1536 : index
    %c0_14 = arith.constant 0 : index
    %29 = vector.load %arg2[%c1536, %c0_14] : memref<3520x768xbf16, #tpu.memory_space<vmem>>, vector<128x64xbf16>
    %cst_15 = arith.constant dense<0.000000e+00> : vector<2x64xf32>
    %30 = tpu.matmul %28, %29, %cst_15 {dimension_numbers = #tpu.dot_dimension_numbers<[1], [0], [0], [1], [0, 0, 1, 1], [], []>} : vector<2x128xbf16>, vector<128x64xbf16>, vector<2x64xf32> -> vector<2x64xf32>
    %c3 = arith.constant 3 : index
    %c0_16 = arith.constant 0 : index
    %31 = vector.load %arg3[%c3, %c0_16] : memref<8x768xf32, #tpu.memory_space<vmem>>, vector<1x64xf32>
    %32 = vector.broadcast %31 : vector<1x64xf32> to vector<2x64xf32>
    %33 = arith.addf %30, %32 : vector<2x64xf32>
    %cst_17 = arith.constant 0.000000e+00 : f32
    %34 = vector.broadcast %cst_17 : f32 to vector<2x64xf32>
    %35 = arith.maximumf %33, %34 : vector<2x64xf32>
    %36 = arith.truncf %35 : vector<2x64xf32> to vector<2x64xbf16>
    %c1664 = arith.constant 1664 : index
    %c0_18 = arith.constant 0 : index
    %37 = vector.load %arg2[%c1664, %c0_18] : memref<3520x768xbf16, #tpu.memory_space<vmem>>, vector<64x128xbf16>
    %cst_19 = arith.constant dense<0.000000e+00> : vector<2x128xf32>
    %38 = tpu.matmul %36, %37, %cst_19 {dimension_numbers = #tpu.dot_dimension_numbers<[1], [0], [0], [1], [0, 0, 1, 1], [], []>} : vector<2x64xbf16>, vector<64x128xbf16>, vector<2x128xf32> -> vector<2x128xf32>
    %c4 = arith.constant 4 : index
    %c0_20 = arith.constant 0 : index
    %39 = vector.load %arg3[%c4, %c0_20] : memref<8x768xf32, #tpu.memory_space<vmem>>, vector<1x128xf32>
    %40 = vector.broadcast %39 : vector<1x128xf32> to vector<2x128xf32>
    %41 = arith.addf %38, %40 : vector<2x128xf32>
    %cst_21 = arith.constant 0.000000e+00 : f32
    %42 = vector.broadcast %cst_21 : f32 to vector<2x128xf32>
    %43 = arith.maximumf %24, %42 : vector<2x128xf32>
    %cst_22 = arith.constant 0.000000e+00 : f32
    %44 = vector.broadcast %cst_22 : f32 to vector<2x128xf32>
    %45 = arith.maximumf %41, %44 : vector<2x128xf32>
    %46 = tpu.concatenate %43, %45 in 1 : vector<2x128xf32>, vector<2x128xf32> -> vector<2x256xf32>
    %47 = arith.truncf %46 : vector<2x256xf32> to vector<2x256xbf16>
    %c1728 = arith.constant 1728 : index
    %c0_23 = arith.constant 0 : index
    %48 = vector.load %arg2[%c1728, %c0_23] : memref<3520x768xbf16, #tpu.memory_space<vmem>>, vector<256x256xbf16>
    %cst_24 = arith.constant dense<0.000000e+00> : vector<2x256xf32>
    %49 = tpu.matmul %47, %48, %cst_24 {dimension_numbers = #tpu.dot_dimension_numbers<[1], [0], [0], [1], [0, 0, 1, 1], [], []>} : vector<2x256xbf16>, vector<256x256xbf16>, vector<2x256xf32> -> vector<2x256xf32>
    %c5 = arith.constant 5 : index
    %c0_25 = arith.constant 0 : index
    %50 = vector.load %arg3[%c5, %c0_25] : memref<8x768xf32, #tpu.memory_space<vmem>>, vector<1x256xf32>
    %51 = vector.broadcast %50 : vector<1x256xf32> to vector<2x256xf32>
    %52 = arith.addf %49, %51 : vector<2x256xf32>
    %cst_26 = arith.constant 0.000000e+00 : f32
    %53 = vector.broadcast %cst_26 : f32 to vector<2x256xf32>
    %54 = arith.maximumf %15, %53 : vector<2x256xf32>
    %cst_27 = arith.constant 0.000000e+00 : f32
    %55 = vector.broadcast %cst_27 : f32 to vector<2x256xf32>
    %56 = arith.maximumf %52, %55 : vector<2x256xf32>
    %57 = tpu.concatenate %54, %56 in 1 : vector<2x256xf32>, vector<2x256xf32> -> vector<2x512xf32>
    %58 = arith.truncf %57 : vector<2x512xf32> to vector<2x512xbf16>
    %c1984 = arith.constant 1984 : index
    %c0_28 = arith.constant 0 : index
    %59 = vector.load %arg2[%c1984, %c0_28] : memref<3520x768xbf16, #tpu.memory_space<vmem>>, vector<512x512xbf16>
    %cst_29 = arith.constant dense<0.000000e+00> : vector<2x512xf32>
    %60 = tpu.matmul %58, %59, %cst_29 {dimension_numbers = #tpu.dot_dimension_numbers<[1], [0], [0], [1], [0, 0, 1, 1], [], []>} : vector<2x512xbf16>, vector<512x512xbf16>, vector<2x512xf32> -> vector<2x512xf32>
    %c6 = arith.constant 6 : index
    %c0_30 = arith.constant 0 : index
    %61 = vector.load %arg3[%c6, %c0_30] : memref<8x768xf32, #tpu.memory_space<vmem>>, vector<1x512xf32>
    %62 = vector.broadcast %61 : vector<1x512xf32> to vector<2x512xf32>
    %63 = arith.addf %60, %62 : vector<2x512xf32>
    %cst_31 = arith.constant 0.000000e+00 : f32
    %64 = vector.broadcast %cst_31 : f32 to vector<2x512xf32>
    %65 = arith.maximumf %6, %64 : vector<2x512xf32>
    %cst_32 = arith.constant 0.000000e+00 : f32
    %66 = vector.broadcast %cst_32 : f32 to vector<2x512xf32>
    %67 = arith.maximumf %63, %66 : vector<2x512xf32>
    %68 = tpu.concatenate %65, %67 in 1 : vector<2x512xf32>, vector<2x512xf32> -> vector<2x1024xf32>
    %69 = arith.truncf %68 : vector<2x1024xf32> to vector<2x1024xbf16>
    %c2496 = arith.constant 2496 : index
    %c0_33 = arith.constant 0 : index
    %70 = vector.load %arg2[%c2496, %c0_33] : memref<3520x768xbf16, #tpu.memory_space<vmem>>, vector<1024x768xbf16>
    %cst_34 = arith.constant dense<0.000000e+00> : vector<2x768xf32>
    %71 = tpu.matmul %69, %70, %cst_34 {dimension_numbers = #tpu.dot_dimension_numbers<[1], [0], [0], [1], [0, 0, 1, 1], [], []>} : vector<2x1024xbf16>, vector<1024x768xbf16>, vector<2x768xf32> -> vector<2x768xf32>
    %c7 = arith.constant 7 : index
    %c0_35 = arith.constant 0 : index
    %72 = vector.load %arg3[%c7, %c0_35] : memref<8x768xf32, #tpu.memory_space<vmem>>, vector<1x768xf32>
    %73 = vector.broadcast %72 : vector<1x768xf32> to vector<2x768xf32>
    %74 = arith.addf %71, %73 : vector<2x768xf32>
    %75 = math.tanh %74 : vector<2x768xf32>
    %c0_36 = arith.constant 0 : index
    %c0_37 = arith.constant 0 : index
    %76 = vector.load %arg4[%c0_36, %c0_37] : memref<2x768xf32, #tpu.memory_space<vmem>>, vector<2x768xf32>
    tpu.vector_store %arg4[%c0_36, %c0_37], %75 {strides = array<i32>} : memref<2x768xf32, #tpu.memory_space<vmem>>, vector<2x768xf32>,
    return
  }
  func.func @transform_0(%arg0: i32) -> (i32, i32) {
    %c0_i32 = arith.constant 0 : i32
    %c0_i32_0 = arith.constant 0 : i32
    %c0_i32_1 = arith.constant 0 : i32
    return %c0_i32, %c0_i32_0 : i32, i32
  }
  func.func @transform_1(%arg0: i32) -> (i32, i32) {
    %c0_i32 = arith.constant 0 : i32
    %c0_i32_0 = arith.constant 0 : i32
    %c0_i32_1 = arith.constant 0 : i32
    return %c0_i32, %c0_i32_0 : i32, i32
  }
  func.func @transform_2(%arg0: i32) -> (i32, i32) {
    %c0_i32 = arith.constant 0 : i32
    %c0_i32_0 = arith.constant 0 : i32
    %c0_i32_1 = arith.constant 0 : i32
    return %c0_i32, %c0_i32_0 : i32, i32
  }
  func.func @transform_3(%arg0: i32) -> (i32, i32) {
    %c0_i32 = arith.constant 0 : i32
    %c0_i32_0 = arith.constant 0 : i32
    %c0_i32_1 = arith.constant 0 : i32
    return %c0_i32, %c0_i32_0 : i32, i32
  }
}

</mosaic_0001>

<bundles_post_ra>
// kernel: _lambda_.1
= control target key start
LH: loop header
LB: loop body
LE: loop exit
PB: predicated region body
PF: predicated region fallthrough
CT: control target
= control target key end

     0   :  { %v8660_v7 = vmov 1983009808   ;;  %v23_v9 = vlaneseq  ;;  %vm8662_vm0 = vmmov 0   ;;  %vm2285_vm1 = vcmask 523264   ;;  %s11392_s1 = inlined_call_operand.vmem [shape: bf16[3520,768], index: 1, kind: input, shape index: {}]   ;;  %s11393_s0 = inlined_call_operand.vmem [shape: f32[2,768], index: 0, kind: input, shape index: {}]   ;;  %s11394_s2 = inlined_call_operand.vmem [shape: f32[8,768], index: 2, kind: input, shape index: {}]   ;;  %s11395_s3 = inlined_call_operand.vmem [shape: f32[2,768], index: 3, kind: output, shape index: {}]  }
   0x1   :  { %v7419_v0 = vld [vmem:[%s11392_s1 + $0x4] ss:$24 sps:$4 sm:$0xff]   ;;  %v7421_v1 = vld [vmem:[%s11392_s1] ss:$24 sps:$4 sm:$0xff]   ;;  %v7422_v2 = vld [vmem:[%s11392_s1 + $0x34] ss:$24 sps:$4 sm:$0xff]   ;;  %v21_v8 = vunpack.c.l.s4 %v8660_v7 }
   0x2   :  { %1230 = vmatprep.subr.bf16.mxu1 %v7419_v0  ;;  %v7424_v3 = vld [vmem:[%s11392_s1 + $0x30] ss:$24 sps:$4 sm:$0xff]   ;;  %v7425_v4 = vld [vmem:[%s11392_s1 + $0x64] ss:$24 sps:$4 sm:$0xff]   ;;  %v7427_v5 = vld [vmem:[%s11392_s1 + $0x60] ss:$24 sps:$4 sm:$0xff]  }
   0x3   :  { %1231 = vmatpush1.bf16.msra.mxu1 %v7421_v1  ;;  %v7428_v6 = vld [vmem:[%s11392_s1 + $0x94] ss:$24 sps:$4 sm:$0xff]   ;;  %v7430_v10 = vld [vmem:[%s11392_s1 + $0x90] ss:$24 sps:$4 sm:$0xff]   ;;  %v7431_v11 = vld [vmem:[%s11392_s1 + $0xc4] ss:$24 sps:$4 sm:$0xff]   ;;  %v22_v12 = vunpack.c.0.s8 %v21_v8 }
   0x4   :  { %1232 = vmatprep.subr.bf16.mxu1 %v7422_v2  ;;  %v8710_v13 = vshrl.u32 %v23_v9, 7  ;;  %v7433_v14 = vld [vmem:[%s11392_s1 + $0xc0] ss:$24 sps:$4 sm:$0xff]   ;;  %v7434_v15 = vld [vmem:[%s11392_s1 + $0xf4] ss:$24 sps:$4 sm:$0xff]  }
   0x5   :  { %v7436_v17 = vld [vmem:[%s11392_s1 + $0xf0] ss:$24 sps:$4 sm:$0xff]   ;;  %v7437_v18 = vld [vmem:[%s11392_s1 + $0x124] ss:$24 sps:$4 sm:$0xff]   ;;  %v7439_v20 = vld [vmem:[%s11392_s1 + $0x120] ss:$24 sps:$4 sm:$0xff]  }
   0x6   :  { %v8719_v16 = vsub.s32 %v22_v12, %v8710_v13  ;;  %v8730_v19 = vld [vmem:[%s11393_s0] sm:$0xff]  ;;  %v7440_v21 = vld [vmem:[%s11392_s1 + $0x154] ss:$24 sps:$4 sm:$0xff]   ;;  %v7479_v28 = vld [vmem:[%s11392_s1 + $0x630] ss:$24 sps:$4 sm:$0xff]  }
   0x7   :  { %1233 = vmatpush1.bf16.msra.mxu1 %v7424_v3  ;;  %v7471_v23 = vld [vmem:[%s11392_s1 + $0x604] ss:$24 sps:$4 sm:$0xff]   ;;  %v7473_v25 = vld [vmem:[%s11392_s1 + $0x600] ss:$24 sps:$4 sm:$0xff]   ;;  %v7477_v27 = vld [vmem:[%s11392_s1 + $0x634] ss:$24 sps:$4 sm:$0xff]   ;;  %v19_v56 = vcombine.high %v8730_v19, %v8730_v19 }
   0x8   :  { %1234 = vmatprep.subr.bf16.mxu1 %v7425_v4  ;;  %v8740_v22 = vrot.slane %v8730_v19, %v8719_v16  ;;  %1312 = vmatprep.subr.bf16.mxu0 %v7471_v23  ;;  %v7442_v29 = vld [vmem:[%s11392_s1 + $0x150] ss:$24 sps:$4 sm:$0xff]   ;;  %v7443_v30 = vld [vmem:[%s11392_s1 + $0x184] ss:$24 sps:$4 sm:$0xff]   ;;  %v7445_v32 = vld [vmem:[%s11392_s1 + $0x180] ss:$24 sps:$4 sm:$0xff]  }
   0x9   :  { %1313 = vmatpush1.bf16.msra.mxu0 %v7473_v25  ;;  %v7483_v31 = vld [vmem:[%s11392_s1 + $0x664] ss:$24 sps:$4 sm:$0xff]   ;;  %v7485_v33 = vld [vmem:[%s11392_s1 + $0x660] ss:$24 sps:$4 sm:$0xff]   ;;  %v7489_v34 = vld [vmem:[%s11392_s1 + $0x694] ss:$24 sps:$4 sm:$0xff]   ;;  %v8855_v61 = vrot.slane %v19_v56, %v8719_v16 }
   0xa   :  { %v34_v24 = vcombine.high %v8740_v22, %v8740_v22  ;;  %1314 = vmatprep.subr.bf16.mxu0 %v7477_v27  ;;  %v7446_v35 = vld [vmem:[%s11392_s1 + $0x1b4] ss:$24 sps:$4 sm:$0xff]   ;;  %v7448_v36 = vld [vmem:[%s11392_s1 + $0x1b0] ss:$24 sps:$4 sm:$0xff]   ;;  %v7495_v38 = vld [vmem:[%s11392_s1 + $0x6c4] ss:$24 sps:$4 sm:$0xff]   ;;  %v8876_v4 = vpack.c.bf16 %v8740_v22, %v8740_v22 }
   0xb   :  { %1235 = vmatpush1.bf16.msra.mxu1 %v7427_v5  ;;  %v7491_v37 = vld [vmem:[%s11392_s1 + $0x690] ss:$24 sps:$4 sm:$0xff]   ;;  %v7449_v39 = vld [vmem:[%s11392_s1 + $0x1e4] ss:$24 sps:$4 sm:$0xff]   ;;  %v7451_v40 = vld [vmem:[%s11392_s1 + $0x1e0] ss:$24 sps:$4 sm:$0xff]   ;;  %v35_v2 = vcombine.high %v8855_v61, %v8855_v61 }
   0xc   :  { %1236 = vmatprep.subr.bf16.mxu1 %v7428_v6  ;;  %v8750_v26 = vpack.c.bf16 %v34_v24, %v34_v24  ;;  %v7497_v41 = vld [vmem:[%s11392_s1 + $0x6c0] ss:$24 sps:$4 sm:$0xff]   ;;  %v7501_v42 = vld [vmem:[%s11392_s1 + $0x6f4] ss:$24 sps:$4 sm:$0xff]   ;;  %v7454_v44 = vld [vmem:[%s11392_s1 + $0x210] ss:$24 sps:$4 sm:$0xff]  }
   0xd   :  { %1315 = vmatpush1.bf16.msra.mxu0 %v7479_v28  ;;  %v7452_v43 = vld [vmem:[%s11392_s1 + $0x214] ss:$24 sps:$4 sm:$0xff]   ;;  %v7503_v45 = vld [vmem:[%s11392_s1 + $0x6f0] ss:$24 sps:$4 sm:$0xff]   ;;  %v7507_v46 = vld [vmem:[%s11392_s1 + $0x724] ss:$24 sps:$4 sm:$0xff]   ;;  %v8887_v8 = vpack.c.bf16 %v35_v2, %v35_v2 }
   0xe   :  { %1262 = vmatprep.mubr.bf16.mxu1 %v8750_v26  ;;  %1316 = vmatprep.subr.bf16.mxu0 %v7483_v31  ;;  %v7455_v47 = vld [vmem:[%s11392_s1 + $0x244] ss:$24 sps:$4 sm:$0xff]   ;;  %v7457_v48 = vld [vmem:[%s11392_s1 + $0x240] ss:$24 sps:$4 sm:$0xff]   ;;  %v7513_v50 = vld [vmem:[%s11392_s1 + $0x754] ss:$24 sps:$4 sm:$0xff]  }
   0xf   :  { %1237 = vmatpush1.bf16.msra.mxu1 %v7430_v10  ;;  %v7509_v49 = vld [vmem:[%s11392_s1 + $0x720] ss:$24 sps:$4 sm:$0xff]   ;;  %v7458_v51 = vld [vmem:[%s11392_s1 + $0x274] ss:$24 sps:$4 sm:$0xff]   ;;  %v7460_v52 = vld [vmem:[%s11392_s1 + $0x270] ss:$24 sps:$4 sm:$0xff]  }
  0x10   :  { %1238 = vmatprep.subr.bf16.mxu1 %v7431_v11  ;;  %v7515_v53 = vld [vmem:[%s11392_s1 + $0x750] ss:$24 sps:$4 sm:$0xff]   ;;  %v7519_v54 = vld [vmem:[%s11392_s1 + $0x784] ss:$24 sps:$4 sm:$0xff]   ;;  %v7463_v57 = vld [vmem:[%s11392_s1 + $0x2a0] ss:$24 sps:$4 sm:$0xff]  }
  0x11   :  { %1317 = vmatpush1.bf16.msra.mxu0 %v7485_v33  ;;  %v7461_v55 = vld [vmem:[%s11392_s1 + $0x2a4] ss:$24 sps:$4 sm:$0xff]   ;;  %v7521_v58 = vld [vmem:[%s11392_s1 + $0x780] ss:$24 sps:$4 sm:$0xff]   ;;  %v7525_v59 = vld [vmem:[%s11392_s1 + $0x7b4] ss:$24 sps:$4 sm:$0xff]  }
  0x12   :  { %1318 = vmatprep.subr.bf16.mxu0 %v7489_v34  ;;  %v7464_v60 = vld [vmem:[%s11392_s1 + $0x2d4] ss:$24 sps:$4 sm:$0xff]   ;;  %v7466_v62 = vld [vmem:[%s11392_s1 + $0x2d0] ss:$24 sps:$4 sm:$0xff]   ;;  %v7531_v0 = vld [vmem:[%s11392_s1 + $0x7e4] ss:$24 sps:$4 sm:$0xff]  }
  0x13   :  { %1239 = vmatpush1.bf16.msra.mxu1 %v7433_v14  ;;  %v7527_v63 = vld [vmem:[%s11392_s1 + $0x7b0] ss:$24 sps:$4 sm:$0xff]   ;;  %v7470_v1 = vld [vmem:[%s11392_s1 + $0x304] ss:$24 sps:$4 sm:$0xff]   ;;  %v7468_v3 = vld [vmem:[%s11392_s1 + $0x300] ss:$24 sps:$4 sm:$0xff]  }
  0x14   :  { %1240 = vmatprep.subr.bf16.mxu1 %v7434_v15  ;;  %v7533_v5 = vld [vmem:[%s11392_s1 + $0x7e0] ss:$24 sps:$4 sm:$0xff]   ;;  %v7537_v6 = vld [vmem:[%s11392_s1 + $0x814] ss:$24 sps:$4 sm:$0xff]   ;;  %v7539_v9 = vld [vmem:[%s11392_s1 + $0x810] ss:$24 sps:$4 sm:$0xff]  }
  0x15   :  { %1319 = vmatpush1.bf16.msra.mxu0 %v7491_v37  ;;  %v7476_v7 = vld [vmem:[%s11392_s1 + $0x334] ss:$24 sps:$4 sm:$0xff]   ;;  %v6434_v10 = vld.sshfl [vmem:[%s11393_s0 + $0x8] sm:$0x33 pattern:$0x76325410] }
  0x16   :  { %1320 = vmatprep.subr.bf16.mxu0 %v7495_v38  ;;  %v7474_v11 = vld [vmem:[%s11392_s1 + $0x330] ss:$24 sps:$4 sm:$0xff]   ;;  %v7543_v12 = vld [vmem:[%s11392_s1 + $0x844] ss:$24 sps:$4 sm:$0xff]   ;;  %v43_v14 = vcombine.high %v6434_v10, %v6434_v10  ;;  %v7545_v19 = vld [vmem:[%s11392_s1 + $0x840] ss:$24 sps:$4 sm:$0xff]   ;;  %v8954_v34 = vpack.c.bf16 %v6434_v10, %v6434_v10 }
  0x17   :  { %1241 = vmatpush1.bf16.msra.mxu1 %v7436_v17  ;;  %v7482_v15 = vld [vmem:[%s11392_s1 + $0x364] ss:$24 sps:$4 sm:$0xff]   ;;  %v7480_v17 = vld [vmem:[%s11392_s1 + $0x360] ss:$24 sps:$4 sm:$0xff]   ;;  %v7486_v22 = vld [vmem:[%s11392_s1 + $0x390] ss:$24 sps:$4 sm:$0xff]  }
  0x18   :  { %1242 = vmatprep.subr.bf16.mxu1 %v7437_v18  ;;  %v8909_v18 = vpack.c.bf16 %v43_v14, %v43_v14  ;;  %v7551_v23 = vld [vmem:[%s11392_s1 + $0x870] ss:$24 sps:$4 sm:$0xff]   ;;  %v7555_v24 = vld [vmem:[%s11392_s1 + $0x8a4] ss:$24 sps:$4 sm:$0xff]   ;;  %v7492_v27 = vld [vmem:[%s11392_s1 + $0x3c0] ss:$24 sps:$4 sm:$0xff]  }
  0x19   :  { %1321 = vmatpush1.bf16.msra.mxu0 %v7497_v41  ;;  %v7494_v25 = vld [vmem:[%s11392_s1 + $0x3c4] ss:$24 sps:$4 sm:$0xff]   ;;  %v7557_v28 = vld [vmem:[%s11392_s1 + $0x8a0] ss:$24 sps:$4 sm:$0xff]   ;;  %v7563_v31 = vld [vmem:[%s11392_s1 + $0x8d0] ss:$24 sps:$4 sm:$0xff]  }
  0x1a   :  { %1322 = vmatprep.subr.bf16.mxu0 %v7501_v42  ;;  %1344 = vmatprep.mubr.bf16.mxu0 %v8909_v18  ;;  %v7506_v33 = vld [vmem:[%s11392_s1 + $0x424] ss:$24 sps:$4 sm:$0xff]   ;;  %v7510_v37 = vld [vmem:[%s11392_s1 + $0x450] ss:$24 sps:$4 sm:$0xff]  }
  0x1b   :  { %1243 = vmatpush1.bf16.msra.mxu1 %v7439_v20  ;;  %v7549_v20 = vld [vmem:[%s11392_s1 + $0x874] ss:$24 sps:$4 sm:$0xff]   ;;  %v7518_v38 = vld [vmem:[%s11392_s1 + $0x484] ss:$24 sps:$4 sm:$0xff]   ;;  %v7522_v41 = vld [vmem:[%s11392_s1 + $0x4b0] ss:$24 sps:$4 sm:$0xff]  }
  0x1c   :  { %1244 = vmatprep.subr.bf16.mxu1 %v7440_v21  ;;  %v7488_v21 = vld [vmem:[%s11392_s1 + $0x394] ss:$24 sps:$4 sm:$0xff]   ;;  %v7530_v42 = vld [vmem:[%s11392_s1 + $0x4e4] ss:$24 sps:$4 sm:$0xff]   ;;  %v7564_v56 = vld [vmem:[%s11392_s1 + $0x8] ss:$24 sps:$4 sm:$0xff]  }
  0x1d   :  { %1323 = vmatpush1.bf16.msra.mxu0 %v7503_v45  ;;  %v7534_v45 = vld [vmem:[%s11392_s1 + $0x510] ss:$24 sps:$4 sm:$0xff]   ;;  %v7584_v2 = vld [vmem:[%s11392_s1 + $0x12c] ss:$24 sps:$4 sm:$0xff]   ;;  %v7593_v10 = vld [vmem:[%s11392_s1 + $0x1bc] ss:$24 sps:$4 sm:$0xff]  }
  0x1e   :  { %1324 = vmatprep.subr.bf16.mxu0 %v7507_v46  ;;  %v7542_v46 = vld [vmem:[%s11392_s1 + $0x544] ss:$24 sps:$4 sm:$0xff]   ;;  %v7591_v14 = vld [vmem:[%s11392_s1 + $0x1b8] ss:$24 sps:$4 sm:$0xff]  }
  0x1f   :  { %1245 = vmatpush1.bf16.msra.mxu1 %v7442_v29  ;;  %v7561_v29 = vld [vmem:[%s11392_s1 + $0x8d4] ss:$24 sps:$4 sm:$0xff]  }
  0x20   :  { %1246 = vmatprep.subr.bf16.mxu1 %v7443_v30  ;;  %v7500_v30 = vld [vmem:[%s11392_s1 + $0x3f4] ss:$24 sps:$4 sm:$0xff]  }
  0x21   :  { %1325 = vmatpush1.bf16.msra.mxu0 %v7509_v49  ;;  %v7546_v49 = vld [vmem:[%s11392_s1 + $0x570] ss:$24 sps:$4 sm:$0xff]  }
  0x22   :  { %1326 = vmatprep.subr.bf16.mxu0 %v7513_v50  ;;  %v7554_v50 = vld [vmem:[%s11392_s1 + $0x5a4] ss:$24 sps:$4 sm:$0xff]  }
  0x23   :  { %1247 = vmatpush1.bf16.msra.mxu1 %v7445_v32  ;;  %v7498_v32 = vld [vmem:[%s11392_s1 + $0x3f0] ss:$24 sps:$4 sm:$0xff]  }
  0x24   :  { %1248 = vmatprep.subr.bf16.mxu1 %v7446_v35  ;;  %v7504_v35 = vld [vmem:[%s11392_s1 + $0x420] ss:$24 sps:$4 sm:$0xff]  }
  0x25   :  { %1327 = vmatpush1.bf16.msra.mxu0 %v7515_v53  ;;  %v7558_v53 = vld [vmem:[%s11392_s1 + $0x5d0] ss:$24 sps:$4 sm:$0xff]  }
  0x26   :  { %1328 = vmatprep.subr.bf16.mxu0 %v7519_v54  ;;  %v7566_v54 = vld [vmem:[%s11392_s1 + $0xc] ss:$24 sps:$4 sm:$0xff]  }
  0x27   :  { %1249 = vmatpush1.bf16.msra.mxu1 %v7448_v36  ;;  %v7512_v36 = vld [vmem:[%s11392_s1 + $0x454] ss:$24 sps:$4 sm:$0xff]  }
  0x28   :  { %1250 = vmatprep.subr.bf16.mxu1 %v7449_v39  ;;  %v7516_v39 = vld [vmem:[%s11392_s1 + $0x480] ss:$24 sps:$4 sm:$0xff]  }
  0x29   :  { %1329 = vmatpush1.bf16.msra.mxu0 %v7521_v58  ;;  %v7567_v58 = vld [vmem:[%s11392_s1 + $0x38] ss:$24 sps:$4 sm:$0xff]  }
  0x2a   :  { %1330 = vmatprep.subr.bf16.mxu0 %v7525_v59  ;;  %v7572_v59 = vld [vmem:[%s11392_s1 + $0x6c] ss:$24 sps:$4 sm:$0xff]  }
  0x2b   :  { %1251 = vmatpush1.bf16.msra.mxu1 %v7451_v40  ;;  %v7524_v40 = vld [vmem:[%s11392_s1 + $0x4b4] ss:$24 sps:$4 sm:$0xff]  }
  0x2c   :  { %1252 = vmatprep.subr.bf16.mxu1 %v7452_v43  ;;  %v7528_v43 = vld [vmem:[%s11392_s1 + $0x4e0] ss:$24 sps:$4 sm:$0xff]  }
  0x2d   :  { %1331 = vmatpush1.bf16.msra.mxu0 %v7527_v63  ;;  %v7576_v63 = vld [vmem:[%s11392_s1 + $0xc8] ss:$24 sps:$4 sm:$0xff]  }
  0x2e   :  { %1332 = vmatprep.subr.bf16.mxu0 %v7531_v0  ;;  %v7581_v0 = vld [vmem:[%s11392_s1 + $0xfc] ss:$24 sps:$4 sm:$0xff]  }
  0x2f   :  { %1253 = vmatpush1.bf16.msra.mxu1 %v7454_v44  ;;  %v7536_v44 = vld [vmem:[%s11392_s1 + $0x514] ss:$24 sps:$4 sm:$0xff]  }
  0x30   :  { %1254 = vmatprep.subr.bf16.mxu1 %v7455_v47  ;;  %v7540_v47 = vld [vmem:[%s11392_s1 + $0x540] ss:$24 sps:$4 sm:$0xff]  }
  0x31   :  { %1333 = vmatpush1.bf16.msra.mxu0 %v7533_v5  ;;  %v7587_v5 = vld [vmem:[%s11392_s1 + $0x15c] ss:$24 sps:$4 sm:$0xff]  }
  0x32   :  { %1334 = vmatprep.subr.bf16.mxu0 %v7537_v6  ;;  %v7585_v6 = vld [vmem:[%s11392_s1 + $0x158] ss:$24 sps:$4 sm:$0xff]  }
  0x33   :  { %1255 = vmatpush1.bf16.msra.mxu1 %v7457_v48  ;;  %v7548_v48 = vld [vmem:[%s11392_s1 + $0x574] ss:$24 sps:$4 sm:$0xff]  }
  0x34   :  { %1256 = vmatprep.subr.bf16.mxu1 %v7458_v51  ;;  %v7552_v51 = vld [vmem:[%s11392_s1 + $0x5a0] ss:$24 sps:$4 sm:$0xff]  }
  0x35   :  { %1335 = vmatpush1.bf16.msra.mxu0 %v7539_v9  ;;  %v7588_v9 = vld [vmem:[%s11392_s1 + $0x188] ss:$24 sps:$4 sm:$0xff]  }
  0x36   :  { %1336 = vmatprep.subr.bf16.mxu0 %v7543_v12  ;;  %v7689_v12 = vld [vmem:[%s11392_s1 + $0x904] ss:$24 sps:$4 sm:$0xff]  }
  0x37   :  { %1257 = vmatpush1.bf16.msra.mxu1 %v7460_v52  ;;  %v7560_v52 = vld [vmem:[%s11392_s1 + $0x5d4] ss:$24 sps:$4 sm:$0xff]  }
  0x38   :  { %1258 = vmatprep.subr.bf16.mxu1 %v7461_v55  ;;  %v9019_v55 = vpack.c.bf16 %v8855_v61, %v8855_v61  ;;  %v7575_v61 = vld [vmem:[%s11392_s1 + $0x9c] ss:$24 sps:$4 sm:$0xff]  }
  0x39   :  { %1337 = vmatpush1.bf16.msra.mxu0 %v7545_v19  ;;  %v7695_v19 = vld [vmem:[%s11392_s1 + $0x934] ss:$24 sps:$4 sm:$0xff]  }
  0x3a   :  { %1338 = vmatprep.subr.bf16.mxu0 %v7549_v20  ;;  %v7594_v20 = vld [vmem:[%s11392_s1 + $0x1e8] ss:$24 sps:$4 sm:$0xff]  }
  0x3b   :  { %1259 = vmatpush1.bf16.msra.mxu1 %v7463_v57  ;;  %v7569_v57 = vld [vmem:[%s11392_s1 + $0x3c] ss:$24 sps:$4 sm:$0xff]  }
  0x3c   :  { %1260 = vmatprep.subr.bf16.mxu1 %v7464_v60  ;;  %v7570_v60 = vld [vmem:[%s11392_s1 + $0x68] ss:$24 sps:$4 sm:$0xff]  }
  0x3d   :  { %1339 = vmatpush1.bf16.msra.mxu0 %v7551_v23  ;;  %v7701_v23 = vld [vmem:[%s11392_s1 + $0x964] ss:$24 sps:$4 sm:$0xff]  }
  0x3e   :  { %1340 = vmatprep.subr.bf16.mxu0 %v7555_v24  ;;  %v7597_v24 = vld [vmem:[%s11392_s1 + $0x218] ss:$24 sps:$4 sm:$0xff]  }
  0x3f   :  { %1261 = vmatpush1.bf16.msra.mxu1 %v7466_v62  ;;  %v7573_v62 = vld [vmem:[%s11392_s1 + $0x98] ss:$24 sps:$4 sm:$0xff]  }
  0x40   :  { %1271 = vmatprep.subr.bf16.mxu1 %v7470_v1  ;;  %v7579_v1 = vld [vmem:[%s11392_s1 + $0xf8] ss:$24 sps:$4 sm:$0xff]  }
  0x41   :  { %1341 = vmatpush1.bf16.msra.mxu0 %v7557_v28  ;;  %v7707_v28 = vld [vmem:[%s11392_s1 + $0x994] ss:$24 sps:$4 sm:$0xff]  }
  0x42   :  { %1263 = vmatmul.mubr.bf16.vlgmr.msra.gmra.mrb[0].mxu1 %v8876_v4  ;;  %1342 = vmatprep.subr.bf16.mxu0 %v7561_v29  ;;  %v7600_v29 = vld [vmem:[%s11392_s1 + $0x248] ss:$24 sps:$4 sm:$0xff]  }
  0x43   :  { %1272 = vmatpush1.bf16.msra.mxu1 %v7468_v3  ;;  %1303 = vmatprep.mubr.bf16.mxu1 %v8887_v8  ;;  %v7582_v3 = vld [vmem:[%s11392_s1 + $0x128] ss:$24 sps:$4 sm:$0xff]  }
  0x44   :  { %1273 = vmatprep.subr.bf16.mxu1 %v7476_v7  ;;  %v7590_v7 = vld [vmem:[%s11392_s1 + $0x18c] ss:$24 sps:$4 sm:$0xff]  }
  0x45   :  { %1343 = vmatpush1.bf16.msra.mxu0 %v7563_v31  ;;  %v7711_v31 = vld [vmem:[%s11392_s1 + $0x9c0] ss:$24 sps:$4 sm:$0xff]  }
  0x46   :  { %1885 = vmatprep.subr.bf16.mxu0 %v7689_v12  ;;  %v7755_v12 = vld [vmem:[%s11392_s1 + $0xbd4] ss:$24 sps:$4 sm:$0xff]  }
  0x47   :  { %1274 = vmatpush1.bf16.msra.mxu1 %v7474_v11  ;;  %v7687_v11 = vld [vmem:[%s11392_s1 + $0x900] ss:$24 sps:$4 sm:$0xff]  }
  0x48   :  { %1275 = vmatprep.subr.bf16.mxu1 %v7482_v15  ;;  %1345 = vmatmul.mubr.bf16.vlgmr.msra.gmra.mrb[0].mxu0 %v8954_v34  ;;  %v7596_v15 = vld [vmem:[%s11392_s1 + $0x1ec] ss:$24 sps:$4 sm:$0xff]  }
  0x49   :  { %1886 = vmatpush1.bf16.msra.mxu0 %v7687_v11  ;;  %v7638_v11 = vld [vmem:[%s11392_s1 + $0x48c] ss:$24 sps:$4 sm:$0xff]  }
  0x4a   :  { %1887 = vmatprep.subr.bf16.mxu0 %v7695_v19  ;;  %v7758_v19 = vld [vmem:[%s11392_s1 + $0xc04] ss:$24 sps:$4 sm:$0xff]  }
  0x4b   :  { %1276 = vmatpush1.bf16.msra.mxu1 %v7480_v17  ;;  %v7693_v17 = vld [vmem:[%s11392_s1 + $0x930] ss:$24 sps:$4 sm:$0xff]  }
  0x4c   :  { %1277 = vmatprep.subr.bf16.mxu1 %v7488_v21  ;;  %v7599_v21 = vld [vmem:[%s11392_s1 + $0x21c] ss:$24 sps:$4 sm:$0xff]  }
  0x4d   :  { %1888 = vmatpush1.bf16.msra.mxu0 %v7693_v17  ;;  %v7641_v17 = vld [vmem:[%s11392_s1 + $0x4bc] ss:$24 sps:$4 sm:$0xff]  }
  0x4e   :  { %1889 = vmatprep.subr.bf16.mxu0 %v7701_v23  ;;  %v7647_v23 = vld [vmem:[%s11392_s1 + $0x51c] ss:$24 sps:$4 sm:$0xff]  }
  0x4f   :  { %1278 = vmatpush1.bf16.msra.mxu1 %v7486_v22  ;;  %v7699_v22 = vld [vmem:[%s11392_s1 + $0x960] ss:$24 sps:$4 sm:$0xff]  }
  0x50   :  { %1279 = vmatprep.subr.bf16.mxu1 %v7494_v25  ;;  %v7602_v25 = vld [vmem:[%s11392_s1 + $0x24c] ss:$24 sps:$4 sm:$0xff]  }
  0x51   :  { %1890 = vmatpush1.bf16.msra.mxu0 %v7699_v22  ;;  %v7642_v22 = vld [vmem:[%s11392_s1 + $0x4e8] ss:$24 sps:$4 sm:$0xff]  }
  0x52   :  { %1891 = vmatprep.subr.bf16.mxu0 %v7707_v28  ;;  %v7653_v28 = vld [vmem:[%s11392_s1 + $0x57c] ss:$24 sps:$4 sm:$0xff]  }
  0x53   :  { %1280 = vmatpush1.bf16.msra.mxu1 %v7492_v27  ;;  %v7705_v27 = vld [vmem:[%s11392_s1 + $0x990] ss:$24 sps:$4 sm:$0xff]  }
  0x54   :  { %1281 = vmatprep.subr.bf16.mxu1 %v7500_v30  ;;  %v7605_v30 = vld [vmem:[%s11392_s1 + $0x27c] ss:$24 sps:$4 sm:$0xff]  }
  0x55   :  { %1892 = vmatpush1.bf16.msra.mxu0 %v7705_v27  ;;  %v7648_v27 = vld [vmem:[%s11392_s1 + $0x548] ss:$24 sps:$4 sm:$0xff]  }
  0x57   :  { %1282 = vmatpush1.bf16.msra.mxu1 %v7498_v32  ;;  %v7713_v32 = vld [vmem:[%s11392_s1 + $0x9c4] ss:$24 sps:$4 sm:$0xff]  }
  0x58   :  { %1283 = vmatprep.subr.bf16.mxu1 %v7506_v33  ;;  %1893 = vmatprep.subr.bf16.mxu0 %v7713_v32  ;;  %v7603_v33 = vld [vmem:[%s11392_s1 + $0x278] ss:$24 sps:$4 sm:$0xff]   ;;  %v7659_v32 = vld [vmem:[%s11392_s1 + $0x5dc] ss:$24 sps:$4 sm:$0xff]  }
  0x59   :  { %1894 = vmatpush1.bf16.msra.mxu0 %v7711_v31  ;;  %v7654_v31 = vld [vmem:[%s11392_s1 + $0x5a8] ss:$24 sps:$4 sm:$0xff]  }
  0x5b   :  { %1284 = vmatpush1.bf16.msra.mxu1 %v7504_v35  ;;  %v7608_v35 = vld [vmem:[%s11392_s1 + $0x2ac] ss:$24 sps:$4 sm:$0xff]  }
  0x5c   :  { %1285 = vmatprep.subr.bf16.mxu1 %v7512_v36  ;;  %v7717_v36 = vld [vmem:[%s11392_s1 + $0x9f0] ss:$24 sps:$4 sm:$0xff]  }
  0x5f   :  { %1286 = vmatpush1.bf16.msra.mxu1 %v7510_v37  ;;  %v7719_v37 = vld [vmem:[%s11392_s1 + $0x9f4] ss:$24 sps:$4 sm:$0xff]  }
  0x60   :  { %1287 = vmatprep.subr.bf16.mxu1 %v7518_v38  ;;  %1895 = vmatprep.subr.bf16.mxu0 %v7719_v37  ;;  %v7606_v38 = vld [vmem:[%s11392_s1 + $0x2a8] ss:$24 sps:$4 sm:$0xff]   ;;  %v7665_v37 = vld [vmem:[%s11392_s1 + $0x63c] ss:$24 sps:$4 sm:$0xff]  }
  0x61   :  { %1896 = vmatpush1.bf16.msra.mxu0 %v7717_v36  ;;  %v7660_v36 = vld [vmem:[%s11392_s1 + $0x608] ss:$24 sps:$4 sm:$0xff]  }
  0x63   :  { %1288 = vmatpush1.bf16.msra.mxu1 %v7516_v39  ;;  %v7611_v39 = vld [vmem:[%s11392_s1 + $0x2dc] ss:$24 sps:$4 sm:$0xff]  }
  0x64   :  { %1289 = vmatprep.subr.bf16.mxu1 %v7524_v40  ;;  %v7723_v40 = vld [vmem:[%s11392_s1 + $0xa20] ss:$24 sps:$4 sm:$0xff]  }
  0x67   :  { %1290 = vmatpush1.bf16.msra.mxu1 %v7522_v41  ;;  %v7725_v41 = vld [vmem:[%s11392_s1 + $0xa24] ss:$24 sps:$4 sm:$0xff]  }
  0x68   :  { %1291 = vmatprep.subr.bf16.mxu1 %v7530_v42  ;;  %1897 = vmatprep.subr.bf16.mxu0 %v7725_v41  ;;  %v7609_v42 = vld [vmem:[%s11392_s1 + $0x2d8] ss:$24 sps:$4 sm:$0xff]  }
  0x69   :  { %1898 = vmatpush1.bf16.msra.mxu0 %v7723_v40  ;;  %v7666_v40 = vld [vmem:[%s11392_s1 + $0x668] ss:$24 sps:$4 sm:$0xff]   ;;  %v7669_v41 = vld [vmem:[%s11392_s1 + $0x698] ss:$24 sps:$4 sm:$0xff]  }
  0x6b   :  { %1292 = vmatpush1.bf16.msra.mxu1 %v7528_v43  ;;  %v7614_v43 = vld [vmem:[%s11392_s1 + $0x30c] ss:$24 sps:$4 sm:$0xff]  }
  0x6c   :  { %1293 = vmatprep.subr.bf16.mxu1 %v7536_v44  ;;  %v7729_v44 = vld [vmem:[%s11392_s1 + $0xa50] ss:$24 sps:$4 sm:$0xff]  }
  0x6f   :  { %1294 = vmatpush1.bf16.msra.mxu1 %v7534_v45  ;;  %v7731_v45 = vld [vmem:[%s11392_s1 + $0xa54] ss:$24 sps:$4 sm:$0xff]  }
  0x70   :  { %1295 = vmatprep.subr.bf16.mxu1 %v7542_v46  ;;  %v7612_v46 = vld [vmem:[%s11392_s1 + $0x308] ss:$24 sps:$4 sm:$0xff]   ;;  %1899 = vmatprep.subr.bf16.mxu0 %v7731_v45  ;;  %v7680_v45 = vld [vmem:[%s11392_s1 + $0x72c] ss:$24 sps:$4 sm:$0xff]  }
  0x71   :  { %1900 = vmatpush1.bf16.msra.mxu0 %v7729_v44  ;;  %v7675_v44 = vld [vmem:[%s11392_s1 + $0x6f8] ss:$24 sps:$4 sm:$0xff]  }
  0x73   :  { %1296 = vmatpush1.bf16.msra.mxu1 %v7540_v47  ;;  %v7617_v47 = vld [vmem:[%s11392_s1 + $0x33c] ss:$24 sps:$4 sm:$0xff]  }
  0x74   :  { %1297 = vmatprep.subr.bf16.mxu1 %v7548_v48  ;;  %v7734_v48 = vld [vmem:[%s11392_s1 + $0xa84] ss:$24 sps:$4 sm:$0xff]  }
  0x75   :  { %1901 = vmatprep.subr.bf16.mxu0 %v7734_v48  ;;  %v7681_v48 = vld [vmem:[%s11392_s1 + $0x758] ss:$24 sps:$4 sm:$0xff]  }
  0x77   :  { %1298 = vmatpush1.bf16.msra.mxu1 %v7546_v49  ;;  %v7732_v49 = vld [vmem:[%s11392_s1 + $0xa80] ss:$24 sps:$4 sm:$0xff]  }
  0x78   :  { %1299 = vmatprep.subr.bf16.mxu1 %v7554_v50  ;;  %v7737_v50 = vld [vmem:[%s11392_s1 + $0xab4] ss:$24 sps:$4 sm:$0xff]   ;;  %1902 = vmatpush1.bf16.msra.mxu0 %v7732_v49 }
  0x79   :  { %1903 = vmatprep.subr.bf16.mxu0 %v7737_v50  ;;  %v7686_v49 = vld [vmem:[%s11392_s1 + $0x78c] ss:$24 sps:$4 sm:$0xff]   ;;  %v7684_v50 = vld [vmem:[%s11392_s1 + $0x788] ss:$24 sps:$4 sm:$0xff]  }
  0x7b   :  { %1300 = vmatpush1.bf16.msra.mxu1 %v7552_v51  ;;  %v7615_v51 = vld [vmem:[%s11392_s1 + $0x338] ss:$24 sps:$4 sm:$0xff]  }
  0x7c   :  { %1301 = vmatprep.subr.bf16.mxu1 %v7560_v52  ;;  %v7620_v52 = vld [vmem:[%s11392_s1 + $0x36c] ss:$24 sps:$4 sm:$0xff]  }
  0x7f   :  { %1302 = vmatpush1.bf16.msra.mxu1 %v7558_v53  ;;  %v7618_v53 = vld [vmem:[%s11392_s1 + $0x368] ss:$24 sps:$4 sm:$0xff]  }
  0x80   :  { %1353 = vmatprep.subr.bf16.mxu1 %v7566_v54  ;;  %v7740_v54 = vld [vmem:[%s11392_s1 + $0xae4] ss:$24 sps:$4 sm:$0xff]  }
  0x82   :  { %1304 = vmatmul.mubr.bf16.vlgmr.msra.gmra.mrb[0].mxu1 %v9019_v55 }
  0x83   :  { %1354 = vmatpush1.bf16.msra.mxu1 %v7564_v56  ;;  %1385 = vmatprep.mubr.bf16.mxu1 %v8750_v26  ;;  %v7578_v26 = vld [vmem:[%s11392_s1 + $0xcc] ss:$24 sps:$4 sm:$0xff]   ;;  %v7738_v56 = vld [vmem:[%s11392_s1 + $0xae0] ss:$24 sps:$4 sm:$0xff]  }
  0x84   :  { %1355 = vmatprep.subr.bf16.mxu1 %v7569_v57  ;;  %v7743_v57 = vld [vmem:[%s11392_s1 + $0xb14] ss:$24 sps:$4 sm:$0xff]  }
  0x87   :  { %1356 = vmatpush1.bf16.msra.mxu1 %v7567_v58  ;;  %v7621_v58 = vld [vmem:[%s11392_s1 + $0x398] ss:$24 sps:$4 sm:$0xff]  }
  0x88   :  { %1357 = vmatprep.subr.bf16.mxu1 %v7572_v59  ;;  %v7626_v59 = vld [vmem:[%s11392_s1 + $0x3cc] ss:$24 sps:$4 sm:$0xff]  }
  0x8b   :  { %1358 = vmatpush1.bf16.msra.mxu1 %v7570_v60  ;;  %v7741_v60 = vld [vmem:[%s11392_s1 + $0xb10] ss:$24 sps:$4 sm:$0xff]  }
  0x8c   :  { %1359 = vmatprep.subr.bf16.mxu1 %v7575_v61  ;;  %v7746_v61 = vld [vmem:[%s11392_s1 + $0xb44] ss:$24 sps:$4 sm:$0xff]  }
  0x8f   :  { %1360 = vmatpush1.bf16.msra.mxu1 %v7573_v62  ;;  %v7624_v62 = vld [vmem:[%s11392_s1 + $0x3c8] ss:$24 sps:$4 sm:$0xff]  }
  0x90   :  { %1361 = vmatprep.subr.bf16.mxu1 %v7578_v26  ;;  %v7629_v26 = vld [vmem:[%s11392_s1 + $0x3fc] ss:$24 sps:$4 sm:$0xff]  }
  0x93   :  { %1362 = vmatpush1.bf16.msra.mxu1 %v7576_v63  ;;  %v7744_v63 = vld [vmem:[%s11392_s1 + $0xb40] ss:$24 sps:$4 sm:$0xff]  }
  0x94   :  { %1363 = vmatprep.subr.bf16.mxu1 %v7581_v0  ;;  %v7627_v0 = vld [vmem:[%s11392_s1 + $0x3f8] ss:$24 sps:$4 sm:$0xff]  }
  0x97   :  { %1364 = vmatpush1.bf16.msra.mxu1 %v7579_v1  ;;  %v7632_v1 = vld [vmem:[%s11392_s1 + $0x42c] ss:$24 sps:$4 sm:$0xff]  }
  0x98   :  { %1365 = vmatprep.subr.bf16.mxu1 %v7584_v2  ;;  %v7749_v2 = vld [vmem:[%s11392_s1 + $0xb74] ss:$24 sps:$4 sm:$0xff]  }
  0x9b   :  { %1366 = vmatpush1.bf16.msra.mxu1 %v7582_v3  ;;  %v7630_v3 = vld [vmem:[%s11392_s1 + $0x428] ss:$24 sps:$4 sm:$0xff]  }
  0x9c   :  { %1367 = vmatprep.subr.bf16.mxu1 %v7587_v5  ;;  %v7747_v5 = vld [vmem:[%s11392_s1 + $0xb70] ss:$24 sps:$4 sm:$0xff]  }
  0x9f   :  { %1368 = vmatpush1.bf16.msra.mxu1 %v7585_v6  ;;  %v7635_v6 = vld [vmem:[%s11392_s1 + $0x45c] ss:$24 sps:$4 sm:$0xff]  }
  0xa0   :  { %1369 = vmatprep.subr.bf16.mxu1 %v7590_v7  ;;  %v7752_v7 = vld [vmem:[%s11392_s1 + $0xba4] ss:$24 sps:$4 sm:$0xff]  }
  0xa3   :  { %1370 = vmatpush1.bf16.msra.mxu1 %v7588_v9  ;;  %v7633_v9 = vld [vmem:[%s11392_s1 + $0x458] ss:$24 sps:$4 sm:$0xff]  }
  0xa4   :  { %1371 = vmatprep.subr.bf16.mxu1 %v7593_v10  ;;  %v7750_v10 = vld [vmem:[%s11392_s1 + $0xba0] ss:$24 sps:$4 sm:$0xff]  }
  0xa7   :  { %1372 = vmatpush1.bf16.msra.mxu1 %v7591_v14  ;;  %v7636_v14 = vld [vmem:[%s11392_s1 + $0x488] ss:$24 sps:$4 sm:$0xff]  }
  0xa8   :  { %1373 = vmatprep.subr.bf16.mxu1 %v7596_v15  ;;  %v7753_v15 = vld [vmem:[%s11392_s1 + $0xbd0] ss:$24 sps:$4 sm:$0xff]  }
  0xab   :  { %1374 = vmatpush1.bf16.msra.mxu1 %v7594_v20  ;;  %v7639_v20 = vld [vmem:[%s11392_s1 + $0x4b8] ss:$24 sps:$4 sm:$0xff]  }
  0xac   :  { %1375 = vmatprep.subr.bf16.mxu1 %v7599_v21  ;;  %v7644_v21 = vld [vmem:[%s11392_s1 + $0x4ec] ss:$24 sps:$4 sm:$0xff]  }
  0xaf   :  { %1376 = vmatpush1.bf16.msra.mxu1 %v7597_v24  ;;  %v7645_v24 = vld [vmem:[%s11392_s1 + $0x518] ss:$24 sps:$4 sm:$0xff]  }
  0xb0   :  { %1377 = vmatprep.subr.bf16.mxu1 %v7602_v25  ;;  %v7650_v25 = vld [vmem:[%s11392_s1 + $0x54c] ss:$24 sps:$4 sm:$0xff]  }
  0xb3   :  { %1378 = vmatpush1.bf16.msra.mxu1 %v7600_v29  ;;  %v7651_v29 = vld [vmem:[%s11392_s1 + $0x578] ss:$24 sps:$4 sm:$0xff]  }
  0xb4   :  { %1379 = vmatprep.subr.bf16.mxu1 %v7605_v30  ;;  %v7656_v30 = vld [vmem:[%s11392_s1 + $0x5ac] ss:$24 sps:$4 sm:$0xff]  }
  0xb7   :  { %1380 = vmatpush1.bf16.msra.mxu1 %v7603_v33  ;;  %v7657_v33 = vld [vmem:[%s11392_s1 + $0x5d8] ss:$24 sps:$4 sm:$0xff]  }
  0xb8   :  { %1381 = vmatprep.subr.bf16.mxu1 %v7608_v35  ;;  %v7662_v35 = vld [vmem:[%s11392_s1 + $0x60c] ss:$24 sps:$4 sm:$0xff]  }
  0xbb   :  { %1382 = vmatpush1.bf16.msra.mxu1 %v7606_v38  ;;  %v7663_v38 = vld [vmem:[%s11392_s1 + $0x638] ss:$24 sps:$4 sm:$0xff]  }
  0xbc   :  { %1383 = vmatprep.subr.bf16.mxu1 %v7611_v39  ;;  %v7668_v39 = vld [vmem:[%s11392_s1 + $0x66c] ss:$24 sps:$4 sm:$0xff]  }
  0xbf   :  { %1384 = vmatpush1.bf16.msra.mxu1 %v7609_v42  ;;  %v7672_v42 = vld [vmem:[%s11392_s1 + $0x6c8] ss:$24 sps:$4 sm:$0xff]  }
  0xc0   :  { %1394 = vmatprep.subr.bf16.mxu1 %v7614_v43  ;;  %v7677_v43 = vld [vmem:[%s11392_s1 + $0x6fc] ss:$24 sps:$4 sm:$0xff]  }
  0xc2   :  { %1386 = vmatmul.mubr.bf16.vlgmr.msra.gmra.mrb[4].mxu1 %v8876_v4  ;;  %v7735_v4 = vld [vmem:[%s11392_s1 + $0xab0] ss:$24 sps:$4 sm:$0xff]  }
  0xc3   :  { %1395 = vmatpush1.bf16.msra.mxu1 %v7612_v46  ;;  %1426 = vmatprep.mubr.bf16.mxu1 %v8887_v8  ;;  %v7623_v8 = vld [vmem:[%s11392_s1 + $0x39c] ss:$24 sps:$4 sm:$0xff]   ;;  %v7678_v46 = vld [vmem:[%s11392_s1 + $0x728] ss:$24 sps:$4 sm:$0xff]  }
  0xc4   :  { %1396 = vmatprep.subr.bf16.mxu1 %v7617_v47  ;;  %1904 = vmatpush1.bf16.msra.mxu0 %v7735_v4  ;;  %v7683_v47 = vld [vmem:[%s11392_s1 + $0x75c] ss:$24 sps:$4 sm:$0xff]   ;;  %v7698_v4 = vld [vmem:[%s11392_s1 + $0x7ec] ss:$24 sps:$4 sm:$0xff]  }
  0xc5   :  { %1905 = vmatprep.subr.bf16.mxu0 %v7740_v54  ;;  %v7704_v54 = vld [vmem:[%s11392_s1 + $0x81c] ss:$24 sps:$4 sm:$0xff]  }
  0xc7   :  { %1397 = vmatpush1.bf16.msra.mxu1 %v7615_v51  ;;  %v7692_v51 = vld [vmem:[%s11392_s1 + $0x7bc] ss:$24 sps:$4 sm:$0xff]  }
  0xc8   :  { %1398 = vmatprep.subr.bf16.mxu1 %v7620_v52  ;;  %1906 = vmatpush1.bf16.msra.mxu0 %v7738_v56  ;;  %v7690_v52 = vld [vmem:[%s11392_s1 + $0x7b8] ss:$24 sps:$4 sm:$0xff]   ;;  %v7710_v56 = vld [vmem:[%s11392_s1 + $0x84c] ss:$24 sps:$4 sm:$0xff]  }
  0xc9   :  { %1907 = vmatprep.subr.bf16.mxu0 %v7743_v57 }
  0xcb   :  { %1399 = vmatpush1.bf16.msra.mxu1 %v7618_v53  ;;  %v7696_v53 = vld [vmem:[%s11392_s1 + $0x7e8] ss:$24 sps:$4 sm:$0xff]  }
  0xcc   :  { %1400 = vmatprep.subr.bf16.mxu1 %v7623_v8  ;;  %1908 = vmatpush1.bf16.msra.mxu0 %v7741_v60  ;;  %v7702_v8 = vld [vmem:[%s11392_s1 + $0x818] ss:$24 sps:$4 sm:$0xff]   ;;  %v7716_v60 = vld [vmem:[%s11392_s1 + $0x87c] ss:$24 sps:$4 sm:$0xff]  }
  0xcd   :  { %1909 = vmatprep.subr.bf16.mxu0 %v7746_v61 }
  0xcf   :  { %1401 = vmatpush1.bf16.msra.mxu1 %v7621_v58  ;;  %v7708_v58 = vld [vmem:[%s11392_s1 + $0x848] ss:$24 sps:$4 sm:$0xff]  }
  0xd0   :  { %1402 = vmatprep.subr.bf16.mxu1 %v7626_v59  ;;  %1910 = vmatpush1.bf16.msra.mxu0 %v7744_v63  ;;  %v7722_v63 = vld [vmem:[%s11392_s1 + $0x8ac] ss:$24 sps:$4 sm:$0xff]  }
  0xd1   :  { %1911 = vmatprep.subr.bf16.mxu0 %v7749_v2  ;;  %v7726_v2 = vld [vmem:[%s11392_s1 + $0x8d8] ss:$24 sps:$4 sm:$0xff]  }
  0xd3   :  { %1403 = vmatpush1.bf16.msra.mxu1 %v7624_v62 }
  0xd4   :  { %1404 = vmatprep.subr.bf16.mxu1 %v7629_v26  ;;  %1912 = vmatpush1.bf16.msra.mxu0 %v7747_v5  ;;  %v7714_v26 = vld [vmem:[%s11392_s1 + $0x878] ss:$24 sps:$4 sm:$0xff]   ;;  %v9418_v5 = vsub.s32 0, %v8710_v13 }
  0xd5   :  { %1913 = vmatprep.subr.bf16.mxu0 %v7752_v7 }
  0xd7   :  { %1405 = vmatpush1.bf16.msra.mxu1 %v7627_v0  ;;  %v7720_v0 = vld [vmem:[%s11392_s1 + $0x8a8] ss:$24 sps:$4 sm:$0xff]  }
  0xd8   :  { %1406 = vmatprep.subr.bf16.mxu1 %v7632_v1  ;;  %1914 = vmatpush1.bf16.msra.mxu0 %v7750_v10  ;;  %v7728_v1 = vld [vmem:[%s11392_s1 + $0x8dc] ss:$24 sps:$4 sm:$0xff]  }
  0xd9   :  { %1915 = vmatprep.subr.bf16.mxu0 %v7755_v12 }
  0xdb   :  { %1407 = vmatpush1.bf16.msra.mxu1 %v7630_v3  ;;  %v9415_v3 = vld [vmem:[%s11394_s2] ss:$8 sm:$0xf] }
  0xdc   :  { %1408 = vmatprep.subr.bf16.mxu1 %v7635_v6  ;;  %1916 = vmatpush1.bf16.msra.mxu0 %v7753_v15  ;;  %v9421_v6 = vsub.s32 1, %v8710_v13  ;;  %v253_v7 = vrot.slane %v9415_v3, %v9418_v5 }
  0xdd   :  { %1926 = vmatprep.subr.bf16.mxu0 %v7758_v19 }
  0xdf   :  { %1409 = vmatpush1.bf16.msra.mxu1 %v7633_v9  ;;  %v257_v9 = vrot.slane %v9415_v3, %v9421_v6 }
  0xe0   :  { %1410 = vmatprep.subr.bf16.mxu1 %v7638_v11 }
  0xe3   :  { %1411 = vmatpush1.bf16.msra.mxu1 %v7636_v14 }
  0xe4   :  { %1412 = vmatprep.subr.bf16.mxu1 %v7641_v17 }
  0xe7   :  { %1413 = vmatpush1.bf16.msra.mxu1 %v7639_v20 }
  0xe8   :  { %1414 = vmatprep.subr.bf16.mxu1 %v7644_v21 }
  0xeb   :  { %1415 = vmatpush1.bf16.msra.mxu1 %v7642_v22 }
  0xec   :  { %1416 = vmatprep.subr.bf16.mxu1 %v7647_v23 }
  0xef   :  { %1417 = vmatpush1.bf16.msra.mxu1 %v7645_v24  ;;  %v7756_v24 = vld [vmem:[%s11392_s1 + $0xc00] ss:$24 sps:$4 sm:$0xff]  }
  0xf0   :  { %1418 = vmatprep.subr.bf16.mxu1 %v7650_v25  ;;  %v7761_v25 = vld [vmem:[%s11392_s1 + $0xc34] ss:$24 sps:$4 sm:$0xff]  }
  0xf3   :  { %1419 = vmatpush1.bf16.msra.mxu1 %v7648_v27 }
  0xf4   :  { %1420 = vmatprep.subr.bf16.mxu1 %v7653_v28 }
  0xf7   :  { %1421 = vmatpush1.bf16.msra.mxu1 %v7651_v29  ;;  %v7759_v29 = vld [vmem:[%s11392_s1 + $0xc30] ss:$24 sps:$4 sm:$0xff]  }
  0xf8   :  { %1422 = vmatprep.subr.bf16.mxu1 %v7656_v30  ;;  %v7764_v30 = vld [vmem:[%s11392_s1 + $0xc64] ss:$24 sps:$4 sm:$0xff]  }
  0xfb   :  { %1423 = vmatpush1.bf16.msra.mxu1 %v7654_v31  ;;  %v7762_v31 = vld [vmem:[%s11392_s1 + $0xc60] ss:$24 sps:$4 sm:$0xff]  }
  0xfc   :  { %1424 = vmatprep.subr.bf16.mxu1 %v7659_v32  ;;  %v7767_v32 = vld [vmem:[%s11392_s1 + $0xc94] ss:$24 sps:$4 sm:$0xff]  }
  0xff   :  { %1425 = vmatpush1.bf16.msra.mxu1 %v7657_v33  ;;  %v7765_v33 = vld [vmem:[%s11392_s1 + $0xc90] ss:$24 sps:$4 sm:$0xff]  }
 0x100   :  { %1435 = vmatprep.subr.bf16.mxu1 %v7662_v35  ;;  %v7770_v35 = vld [vmem:[%s11392_s1 + $0xcc4] ss:$24 sps:$4 sm:$0xff]  }
 0x102   :  { %1427 = vmatmul.mubr.bf16.vlgmr.msra.gmra.mrb[4].mxu1 %v9019_v55  ;;  %v7671_v55 = vld [vmem:[%s11392_s1 + $0x69c] ss:$24 sps:$4 sm:$0xff]  }
 0x103   :  { %1436 = vmatpush1.bf16.msra.mxu1 %v7660_v36  ;;  %1467 = vmatprep.mubr.bf16.mxu1 %v8909_v18  ;;  %v7674_v18 = vld [vmem:[%s11392_s1 + $0x6cc] ss:$24 sps:$4 sm:$0xff]   ;;  %v7768_v36 = vld [vmem:[%s11392_s1 + $0xcc0] ss:$24 sps:$4 sm:$0xff]  }
 0x104   :  { %1437 = vmatprep.subr.bf16.mxu1 %v7665_v37  ;;  %v7773_v37 = vld [vmem:[%s11392_s1 + $0xcf4] ss:$24 sps:$4 sm:$0xff]  }
 0x107   :  { %1438 = vmatpush1.bf16.msra.mxu1 %v7663_v38  ;;  %v7771_v38 = vld [vmem:[%s11392_s1 + $0xcf0] ss:$24 sps:$4 sm:$0xff]  }
 0x108   :  { %1439 = vmatprep.subr.bf16.mxu1 %v7668_v39  ;;  %v7776_v39 = vld [vmem:[%s11392_s1 + $0xd24] ss:$24 sps:$4 sm:$0xff]  }
 0x10b   :  { %1440 = vmatpush1.bf16.msra.mxu1 %v7666_v40  ;;  %v7774_v40 = vld [vmem:[%s11392_s1 + $0xd20] ss:$24 sps:$4 sm:$0xff]  }
 0x10c   :  { %1441 = vmatprep.subr.bf16.mxu1 %v7671_v55  ;;  %v7779_v55 = vld [vmem:[%s11392_s1 + $0xd54] ss:$24 sps:$4 sm:$0xff]  }
 0x10f   :  { %1442 = vmatpush1.bf16.msra.mxu1 %v7669_v41  ;;  %v7777_v41 = vld [vmem:[%s11392_s1 + $0xd50] ss:$24 sps:$4 sm:$0xff]  }
 0x110   :  { %1443 = vmatprep.subr.bf16.mxu1 %v7674_v18  ;;  %v7782_v18 = vld [vmem:[%s11392_s1 + $0xd84] ss:$24 sps:$4 sm:$0xff]  }
 0x113   :  { %1444 = vmatpush1.bf16.msra.mxu1 %v7672_v42  ;;  %v7780_v42 = vld [vmem:[%s11392_s1 + $0xd80] ss:$24 sps:$4 sm:$0xff]  }
 0x114   :  { %1445 = vmatprep.subr.bf16.mxu1 %v7677_v43  ;;  %v7785_v43 = vld [vmem:[%s11392_s1 + $0xdb4] ss:$24 sps:$4 sm:$0xff]  }
 0x117   :  { %1446 = vmatpush1.bf16.msra.mxu1 %v7675_v44  ;;  %v7783_v44 = vld [vmem:[%s11392_s1 + $0xdb0] ss:$24 sps:$4 sm:$0xff]  }
 0x118   :  { %1447 = vmatprep.subr.bf16.mxu1 %v7680_v45  ;;  %v7788_v45 = vld [vmem:[%s11392_s1 + $0xde4] ss:$24 sps:$4 sm:$0xff]  }
 0x11b   :  { %1448 = vmatpush1.bf16.msra.mxu1 %v7678_v46  ;;  %v1346_v57 = vpop.f32.mrb[0].mxu0  ;;  %v7786_v46 = vld [vmem:[%s11392_s1 + $0xde0] ss:$24 sps:$4 sm:$0xff]  }
 0x11c   :  { %1449 = vmatprep.subr.bf16.mxu1 %v7683_v47  ;;  %v1348_v59 = vpop.f32.mrb[1].mxu0  ;;  %v7791_v47 = vld [vmem:[%s11392_s1 + $0xe14] ss:$24 sps:$4 sm:$0xff]  }
 0x11d   :  { %v1350_v61 = vpop.f32.mrb[2].mxu0 }
 0x11e   :  { %v1351_v62 = vpop.f32.mrb[3].mxu0  ;;  %v7841_v61 = vld [vmem:[%s11392_s1 + $0x10e0] ss:$24 sps:$4 sm:$0xff]  }
 0x11f   :  { %1450 = vmatpush1.bf16.msra.mxu1 %v7681_v48  ;;  %v7789_v48 = vld [vmem:[%s11392_s1 + $0xe10] ss:$24 sps:$4 sm:$0xff]   ;;  %v7842_v62 = vld [vmem:[%s11392_s1 + $0xf60] ss:$24 sps:$4 sm:$0xff]  }
 0x120   :  { %1451 = vmatprep.subr.bf16.mxu1 %v7686_v49  ;;  %v7794_v49 = vld [vmem:[%s11392_s1 + $0xe44] ss:$24 sps:$4 sm:$0xff]  }
 0x123   :  { %1452 = vmatpush1.bf16.msra.mxu1 %v7684_v50  ;;  %v7792_v50 = vld [vmem:[%s11392_s1 + $0xe40] ss:$24 sps:$4 sm:$0xff]  }
 0x124   :  { %1453 = vmatprep.subr.bf16.mxu1 %v7692_v51  ;;  %v7797_v51 = vld [vmem:[%s11392_s1 + $0xe74] ss:$24 sps:$4 sm:$0xff]  }
 0x127   :  { %1454 = vmatpush1.bf16.msra.mxu1 %v7690_v52  ;;  %v7795_v52 = vld [vmem:[%s11392_s1 + $0xe70] ss:$24 sps:$4 sm:$0xff]  }
 0x128   :  { %1455 = vmatprep.subr.bf16.mxu1 %v7698_v4  ;;  %v7800_v4 = vld [vmem:[%s11392_s1 + $0xea4] ss:$24 sps:$4 sm:$0xff]  }
 0x12b   :  { %1456 = vmatpush1.bf16.msra.mxu1 %v7696_v53  ;;  %v7798_v53 = vld [vmem:[%s11392_s1 + $0xea0] ss:$24 sps:$4 sm:$0xff]  }
 0x12c   :  { %1457 = vmatprep.subr.bf16.mxu1 %v7704_v54  ;;  %v7803_v54 = vld [vmem:[%s11392_s1 + $0xed4] ss:$24 sps:$4 sm:$0xff]  }
 0x12f   :  { %1458 = vmatpush1.bf16.msra.mxu1 %v7702_v8  ;;  %v7801_v8 = vld [vmem:[%s11392_s1 + $0xed0] ss:$24 sps:$4 sm:$0xff]  }
 0x130   :  { %1459 = vmatprep.subr.bf16.mxu1 %v7710_v56  ;;  %v7806_v56 = vld [vmem:[%s11392_s1 + $0x1744] ss:$24 sps:$4 sm:$0xff]  }
 0x133   :  { %1460 = vmatpush1.bf16.msra.mxu1 %v7708_v58  ;;  %v7832_v58 = vld [vmem:[%s11392_s1 + $0xf00] ss:$24 sps:$4 sm:$0xff]  }
 0x134   :  { %1461 = vmatprep.subr.bf16.mxu1 %v7716_v60  ;;  %v7837_v60 = vld [vmem:[%s11392_s1 + $0xf30] ss:$24 sps:$4 sm:$0xff]  }
 0x137   :  { %1462 = vmatpush1.bf16.msra.mxu1 %v7714_v26  ;;  %v7846_v26 = vld [vmem:[%s11392_s1 + $0x1110] ss:$24 sps:$4 sm:$0xff]  }
 0x138   :  { %1463 = vmatprep.subr.bf16.mxu1 %v7722_v63  ;;  %v7847_v63 = vld [vmem:[%s11392_s1 + $0xf90] ss:$24 sps:$4 sm:$0xff]  }
 0x13b   :  { %1464 = vmatpush1.bf16.msra.mxu1 %v7720_v0  ;;  %v7851_v0 = vld [vmem:[%s11392_s1 + $0x1140] ss:$24 sps:$4 sm:$0xff]  }
 0x13c   :  { %1465 = vmatprep.subr.bf16.mxu1 %v7728_v1  ;;  %v7852_v1 = vld [vmem:[%s11392_s1 + $0xfc0] ss:$24 sps:$4 sm:$0xff]  }
 0x13f   :  { %1466 = vmatpush1.bf16.msra.mxu1 %v7726_v2  ;;  %v7856_v2 = vld [vmem:[%s11392_s1 + $0x1170] ss:$24 sps:$4 sm:$0xff]  }
 0x142   :  { %1468 = vmatmul.mubr.bf16.vlgmr.msra.gmra.mrb[4].mxu1 %v8954_v34 }
 0x155   :  { %v1305_v10 = vpop.f32.mrb[0].mxu1 }
 0x156   :  { %v7338_v11 = vadd.f32 %v1305_v10, %v253_v7  ;;  %v1307_v34 = vpop.f32.mrb[1].mxu1  ;;  %v9565_v7 = vsub.s32 2, %v8710_v13 }
 0x157   :  { %v7340_v12 = vadd.f32 %v1307_v34, %v257_v9  ;;  %v1309_v14 = vpop.f32.mrb[2].mxu1  ;;  %v9568_v9 = vsub.s32 3, %v8710_v13 }
 0x158   :  { %v9427_v15 = vadd.f32 %v7338_v11, %v1346_v57  ;;  %v1310_v17 = vpop.f32.mrb[3].mxu1  ;;  %v7831_v57 = vld [vmem:[%s11392_s1 + $0x1080] ss:$24 sps:$4 sm:$0xff]   ;;  %v261_v10 = vrot.slane %v9415_v3, %v9565_v7 }
 0x159   :  { %v9429_v19 = vadd.f32 %v7340_v12, %v1348_v59  ;;  %7270 = vmatprep.subr.bf16.mxu1 %v7831_v57  ;;  %v7836_v59 = vld [vmem:[%s11392_s1 + $0x10b0] ss:$24 sps:$4 sm:$0xff]   ;;  %v265_v11 = vrot.slane %v9415_v3, %v9568_v9  ;;  %v7804_v3 = vld [vmem:[%s11392_s1 + $0x1740] ss:$24 sps:$4 sm:$0xff]  }
 0x15a   :  { %v1476_v20 = vmul.f32 0.2, %v9427_v15  ;;  %7271 = vmatpush3.bf16.msra.mxu1 %v7832_v58  ;;  %v7862_v57 = vld [vmem:[%s11392_s1 + $0x1020] ss:$24 sps:$4 sm:$0xff]   ;;  %v7865_v58 = vld [vmem:[%s11392_s1 + $0x1a14] ss:$24 sps:$4 sm:$0xff]  }
 0x15b   :  { %v1477_v21 = vmul.f32 0.2, %v9429_v19  ;;  %7272 = vmatprep.subr.bf16.mxu1 %v7836_v59  ;;  %v7863_v59 = vld [vmem:[%s11392_s1 + $0x1a10] ss:$24 sps:$4 sm:$0xff]  }
 0x15c   :  { %v1480_v22 = vmax.f32 %v9427_v15, %v1476_v20 }
 0x15d   :  { %v1481_v23 = vmax.f32 %v9429_v19, %v1477_v21 }
 0x15e   :  { %v1484_v28 = vpack.c.bf16 %v1480_v22, %v1480_v22  ;;  %7273 = vmatpush3.bf16.msra.mxu1 %v7837_v60  ;;  %v7866_v60 = vld [vmem:[%s11392_s1 + $0x11d0] ss:$24 sps:$4 sm:$0xff]  }
 0x15f   :  { %v1485_v27 = vpack.c.bf16 %v1481_v23, %v1481_v23  ;;  %7274 = vmatprep.subr.bf16.mxu1 %v7841_v61  ;;  %v7867_v61 = vld [vmem:[%s11392_s1 + $0x1050] ss:$24 sps:$4 sm:$0xff]  }
 0x161   :  { %1917 = vmatprep.mubr.bf16.mxu0 %v1485_v27 }
 0x162   :  { %1918 = vmatmul.mubr.bf16.vlgmr.msra.gmra.mrb[4].mxu0 %v1484_v28  ;;  %7275 = vmatpush3.bf16.msra.mxu1 %v7842_v62  ;;  %v8661_v62 = vmov 0.0  }
 0x163   :  { %1927 = vmatpush1.bf16.msra.mxu0 %v7756_v24  ;;  %7276 = vmatprep.subr.bf16.mxu1 %v7846_v26  ;;  %v6627_v26 = vld [vmem:[%s11394_s2 + $0x1] ss:$8 sm:$0x3] }
 0x164   :  { %1928 = vmatprep.subr.bf16.mxu0 %v7761_v25 }
 0x166   :  { %7277 = vmatpush3.bf16.msra.mxu1 %v7847_v63  ;;  %v1558_v63 = vrot.slane %v6627_v26, %v9418_v5 }
 0x167   :  { %1929 = vmatpush1.bf16.msra.mxu0 %v7759_v29  ;;  %7278 = vmatprep.subr.bf16.mxu1 %v7851_v0  ;;  %v7809_v29 = vld [vmem:[%s11392_s1 + $0x1774] ss:$24 sps:$4 sm:$0xff]   ;;  %v1562_v0 = vrot.slane %v6627_v26, %v9421_v6  ;;  %v7886_v26 = vld [vmem:[%s11392_s1 + $0x14a0] ss:$24 sps:$4 sm:$0xff]  }
 0x168   :  { %1930 = vmatprep.subr.bf16.mxu0 %v7764_v30  ;;  %v7807_v30 = vld [vmem:[%s11392_s1 + $0x1770] ss:$24 sps:$4 sm:$0xff]  }
 0x16a   :  { %7279 = vmatpush3.bf16.msra.mxu1 %v7852_v1 }
 0x16b   :  { %1931 = vmatpush1.bf16.msra.mxu0 %v7762_v31  ;;  %7280 = vmatprep.subr.bf16.mxu1 %v7856_v2  ;;  %v7812_v31 = vld [vmem:[%s11392_s1 + $0x17a4] ss:$24 sps:$4 sm:$0xff]  }
 0x16c   :  { %1932 = vmatprep.subr.bf16.mxu0 %v7767_v32  ;;  %v7810_v32 = vld [vmem:[%s11392_s1 + $0x17a0] ss:$24 sps:$4 sm:$0xff]  }
 0x16f   :  { %1933 = vmatpush1.bf16.msra.mxu0 %v7765_v33  ;;  %v7815_v33 = vld [vmem:[%s11392_s1 + $0x17d4] ss:$24 sps:$4 sm:$0xff]  }
 0x170   :  { %1934 = vmatprep.subr.bf16.mxu0 %v7770_v35  ;;  %v7813_v35 = vld [vmem:[%s11392_s1 + $0x17d0] ss:$24 sps:$4 sm:$0xff]  }
 0x173   :  { %1935 = vmatpush1.bf16.msra.mxu0 %v7768_v36  ;;  %v7818_v36 = vld [vmem:[%s11392_s1 + $0x1804] ss:$24 sps:$4 sm:$0xff]  }
 0x174   :  { %1936 = vmatprep.subr.bf16.mxu0 %v7773_v37  ;;  %v7816_v37 = vld [vmem:[%s11392_s1 + $0x1800] ss:$24 sps:$4 sm:$0xff]  }
 0x177   :  { %1937 = vmatpush1.bf16.msra.mxu0 %v7771_v38  ;;  %v7821_v38 = vld [vmem:[%s11392_s1 + $0x1834] ss:$24 sps:$4 sm:$0xff]  }
 0x178   :  { %1938 = vmatprep.subr.bf16.mxu0 %v7776_v39  ;;  %v7819_v39 = vld [vmem:[%s11392_s1 + $0x1830] ss:$24 sps:$4 sm:$0xff]  }
 0x17b   :  { %1939 = vmatpush1.bf16.msra.mxu0 %v7774_v40  ;;  %v7824_v40 = vld [vmem:[%s11392_s1 + $0x1864] ss:$24 sps:$4 sm:$0xff]  }
 0x17c   :  { %1940 = vmatprep.subr.bf16.mxu0 %v7779_v55  ;;  %v7822_v55 = vld [vmem:[%s11392_s1 + $0x1860] ss:$24 sps:$4 sm:$0xff]  }
 0x17f   :  { %1941 = vmatpush1.bf16.msra.mxu0 %v7777_v41  ;;  %v7827_v41 = vld [vmem:[%s11392_s1 + $0x1894] ss:$24 sps:$4 sm:$0xff]  }
 0x180   :  { %1942 = vmatprep.subr.bf16.mxu0 %v7782_v18  ;;  %v7825_v18 = vld [vmem:[%s11392_s1 + $0x1890] ss:$24 sps:$4 sm:$0xff]  }
 0x183   :  { %1943 = vmatpush1.bf16.msra.mxu0 %v7780_v42  ;;  %v7830_v42 = vld [vmem:[%s11392_s1 + $0x18c4] ss:$24 sps:$4 sm:$0xff]  }
 0x184   :  { %1944 = vmatprep.subr.bf16.mxu0 %v7785_v43  ;;  %v7828_v43 = vld [vmem:[%s11392_s1 + $0x18c0] ss:$24 sps:$4 sm:$0xff]  }
 0x187   :  { %1945 = vmatpush1.bf16.msra.mxu0 %v7783_v44  ;;  %v7835_v44 = vld [vmem:[%s11392_s1 + $0x18f4] ss:$24 sps:$4 sm:$0xff]  }
 0x188   :  { %1946 = vmatprep.subr.bf16.mxu0 %v7788_v45  ;;  %v7833_v45 = vld [vmem:[%s11392_s1 + $0x18f0] ss:$24 sps:$4 sm:$0xff]  }
 0x18b   :  { %1947 = vmatpush1.bf16.msra.mxu0 %v7786_v46  ;;  %v7840_v46 = vld [vmem:[%s11392_s1 + $0x1924] ss:$24 sps:$4 sm:$0xff]  }
 0x18c   :  { %1948 = vmatprep.subr.bf16.mxu0 %v7791_v47  ;;  %v7838_v47 = vld [vmem:[%s11392_s1 + $0x1920] ss:$24 sps:$4 sm:$0xff]  }
 0x18f   :  { %1949 = vmatpush1.bf16.msra.mxu0 %v7789_v48  ;;  %v7845_v48 = vld [vmem:[%s11392_s1 + $0x1954] ss:$24 sps:$4 sm:$0xff]  }
 0x190   :  { %1950 = vmatprep.subr.bf16.mxu0 %v7794_v49  ;;  %v7843_v49 = vld [vmem:[%s11392_s1 + $0x1950] ss:$24 sps:$4 sm:$0xff]  }
 0x193   :  { %1951 = vmatpush1.bf16.msra.mxu0 %v7792_v50  ;;  %v7850_v50 = vld [vmem:[%s11392_s1 + $0x1984] ss:$24 sps:$4 sm:$0xff]  }
 0x194   :  { %1952 = vmatprep.subr.bf16.mxu0 %v7797_v51  ;;  %v7848_v51 = vld [vmem:[%s11392_s1 + $0x1980] ss:$24 sps:$4 sm:$0xff]  }
 0x197   :  { %1953 = vmatpush1.bf16.msra.mxu0 %v7795_v52  ;;  %v7855_v52 = vld [vmem:[%s11392_s1 + $0x19b4] ss:$24 sps:$4 sm:$0xff]  }
 0x198   :  { %1954 = vmatprep.subr.bf16.mxu0 %v7800_v4  ;;  %v7853_v4 = vld [vmem:[%s11392_s1 + $0x19b0] ss:$24 sps:$4 sm:$0xff]  }
 0x19b   :  { %1955 = vmatpush1.bf16.msra.mxu0 %v7798_v53  ;;  %v7857_v53 = vld [vmem:[%s11392_s1 + $0xff0] ss:$24 sps:$4 sm:$0xff]  }
 0x19c   :  { %1956 = vmatprep.subr.bf16.mxu0 %v7803_v54  ;;  %v7860_v54 = vld [vmem:[%s11392_s1 + $0x19e4] ss:$24 sps:$4 sm:$0xff]   ;;  %7281 = vmatpush3.bf16.msra.mxu1 %v7857_v53 }
 0x19f   :  { %1957 = vmatpush1.bf16.msra.mxu0 %v7801_v8  ;;  %v7858_v8 = vld [vmem:[%s11392_s1 + $0x19e0] ss:$24 sps:$4 sm:$0xff]  }
 0x1a0   :  { %3378 = vmatprep.subr.bf16.mxu0 %v7806_v56  ;;  %v7861_v56 = vld [vmem:[%s11392_s1 + $0x11a0] ss:$24 sps:$4 sm:$0xff]  }
 0x1a1   :  { %7282 = vmatprep.subr.bf16.mxu1 %v7861_v56 }
 0x1a2   :  { %7283 = vmatpush3.bf16.msra.mxu1 %v7862_v57 }
 0x1a3   :  { %7284 = vmatprep.subr.bf16.mxu1 %v7866_v60  ;;  %v7885_v60 = vld [vmem:[%s11392_s1 + $0x1474] ss:$24 sps:$4 sm:$0xff]  }
 0x1a6   :  { %7285 = vmatpush3.bf16.msra.mxu1 %v7867_v61  ;;  %v7883_v61 = vld [vmem:[%s11392_s1 + $0x1470] ss:$24 sps:$4 sm:$0xff]  }
 0x1a7   :  { %7306 = vmatprep.subr.bf16.mxu1 %v8661_v62 }
 0x215   :  { %v1469_v34 = vpop.f32.mrb[4].mxu1 }
 0x216   :  { %v9574_v12 = vadd.f32 %v1469_v34, %v261_v10  ;;  %v1471_v14 = vpop.f32.mrb[5].mxu1 }
 0x217   :  { %v9576_v17 = vadd.f32 %v1471_v14, %v265_v11  ;;  %v1473_v20 = vpop.f32.mrb[6].mxu1 }
 0x218   :  { %v1478_v21 = vmul.f32 0.2, %v9574_v12  ;;  %v1474_v22 = vpop.f32.mrb[7].mxu1 }
 0x219   :  { %v1479_v23 = vmul.f32 0.2, %v9576_v17 }
 0x21a   :  { %v1482_v24 = vmax.f32 %v9574_v12, %v1478_v21 }
 0x21b   :  { %v1483_v25 = vmax.f32 %v9576_v17, %v1479_v23 }
 0x21c   :  { %v1486_v28 = vpack.c.bf16 %v1482_v24, %v1482_v24 }
 0x21d   :  { %v1487_v27 = vpack.c.bf16 %v1483_v25, %v1483_v25 }
 0x21f   :  { %1958 = vmatprep.mubr.bf16.mxu0 %v1487_v27 }
 0x220   :  { %1959 = vmatmul.mubr.bf16.vlgmr.msra.gmra.mrb[4].mxu0 %v1486_v28 }
 0x221   :  { %3379 = vmatpush1.bf16.msra.mxu0 %v7804_v3 }
 0x222   :  { %3380 = vmatprep.subr.bf16.mxu0 %v7809_v29  ;;  %v7868_v29 = vld [vmem:[%s11392_s1 + $0x1200] ss:$24 sps:$4 sm:$0xff]  }
 0x225   :  { %3381 = vmatpush1.bf16.msra.mxu0 %v7807_v30 }
 0x226   :  { %3382 = vmatprep.subr.bf16.mxu0 %v7812_v31  ;;  %v7869_v31 = vld [vmem:[%s11392_s1 + $0x1230] ss:$24 sps:$4 sm:$0xff]  }
 0x229   :  { %3383 = vmatpush1.bf16.msra.mxu0 %v7810_v32  ;;  %v7870_v32 = vld [vmem:[%s11392_s1 + $0x1260] ss:$24 sps:$4 sm:$0xff]  }
 0x22a   :  { %3384 = vmatprep.subr.bf16.mxu0 %v7815_v33  ;;  %v7871_v33 = vld [vmem:[%s11392_s1 + $0x1290] ss:$24 sps:$4 sm:$0xff]  }
 0x22d   :  { %3385 = vmatpush1.bf16.msra.mxu0 %v7813_v35  ;;  %v7872_v35 = vld [vmem:[%s11392_s1 + $0x12c0] ss:$24 sps:$4 sm:$0xff]  }
 0x22e   :  { %3386 = vmatprep.subr.bf16.mxu0 %v7818_v36  ;;  %v7873_v36 = vld [vmem:[%s11392_s1 + $0x12f0] ss:$24 sps:$4 sm:$0xff]  }
 0x231   :  { %3387 = vmatpush1.bf16.msra.mxu0 %v7816_v37  ;;  %v7874_v37 = vld [vmem:[%s11392_s1 + $0x1320] ss:$24 sps:$4 sm:$0xff]  }
 0x232   :  { %3388 = vmatprep.subr.bf16.mxu0 %v7821_v38  ;;  %v7875_v38 = vld [vmem:[%s11392_s1 + $0x1350] ss:$24 sps:$4 sm:$0xff]  }
 0x235   :  { %3389 = vmatpush1.bf16.msra.mxu0 %v7819_v39 }
 0x236   :  { %3390 = vmatprep.subr.bf16.mxu0 %v7824_v40  ;;  %v2005_v40 = vld [vmem:[%s11394_s2 + $0x2] ss:$0 sm:$0xff] }
 0x239   :  { %3391 = vmatpush1.bf16.msra.mxu0 %v7822_v55 }
 0x23a   :  { %3392 = vmatprep.subr.bf16.mxu0 %v7827_v41 }
 0x23d   :  { %3393 = vmatpush1.bf16.msra.mxu0 %v7825_v18 }
 0x23e   :  { %3394 = vmatprep.subr.bf16.mxu0 %v7830_v42 }
 0x241   :  { %3395 = vmatpush1.bf16.msra.mxu0 %v7828_v43 }
 0x242   :  { %3396 = vmatprep.subr.bf16.mxu0 %v7835_v44 }
 0x245   :  { %3397 = vmatpush1.bf16.msra.mxu0 %v7833_v45 }
 0x246   :  { %3398 = vmatprep.subr.bf16.mxu0 %v7840_v46  ;;  %v7876_v46 = vld [vmem:[%s11392_s1 + $0x1380] ss:$24 sps:$4 sm:$0xff]  }
 0x249   :  { %3399 = vmatpush1.bf16.msra.mxu0 %v7838_v47 }
 0x24a   :  { %3400 = vmatprep.subr.bf16.mxu0 %v7845_v48  ;;  %v7877_v48 = vld [vmem:[%s11392_s1 + $0x13b0] ss:$24 sps:$4 sm:$0xff]  }
 0x24d   :  { %3401 = vmatpush1.bf16.msra.mxu0 %v7843_v49  ;;  %v7878_v49 = vld [vmem:[%s11392_s1 + $0x13e0] ss:$24 sps:$4 sm:$0xff]  }
 0x24e   :  { %3402 = vmatprep.subr.bf16.mxu0 %v7850_v50  ;;  %v7879_v50 = vld [vmem:[%s11392_s1 + $0x1410] ss:$24 sps:$4 sm:$0xff]  }
 0x251   :  { %3403 = vmatpush1.bf16.msra.mxu0 %v7848_v51  ;;  %v7882_v51 = vld [vmem:[%s11392_s1 + $0x1444] ss:$24 sps:$4 sm:$0xff]  }
 0x252   :  { %3404 = vmatprep.subr.bf16.mxu0 %v7855_v52  ;;  %v2161_v52 = vld [vmem:[%s11394_s2 + $0x3] ss:$0 sm:$0xff] }
 0x255   :  { %3405 = vmatpush1.bf16.msra.mxu0 %v7853_v4 }
 0x256   :  { %3406 = vmatprep.subr.bf16.mxu0 %v7860_v54 }
 0x259   :  { %3407 = vmatpush1.bf16.msra.mxu0 %v7858_v8 }
 0x25a   :  { %3408 = vmatprep.subr.bf16.mxu0 %v7865_v58  ;;  %v7880_v58 = vld [vmem:[%s11392_s1 + $0x1440] ss:$24 sps:$4 sm:$0xff]  }
 0x25d   :  { %3409 = vmatpush1.bf16.msra.mxu0 %v7863_v59 }
 0x2f3   :  { %v1960_v1 = vpop.f32.mrb[4].mxu0 }
 0x2f4   :  { %v7344_v2 = vadd.f32 %v1960_v1, %v1558_v63  ;;  %v1962_v10 = vpop.f32.mrb[5].mxu0  ;;  %v7891_v63 = vld [vmem:[%s11392_s1 + $0x14d4] ss:$24 sps:$4 sm:$0xff]   ;;  %v7894_v1 = vld [vmem:[%s11392_s1 + $0x1504] ss:$24 sps:$4 sm:$0xff]  }
 0x2f5   :  { %v7345_v11 = vadd.f32 %v1962_v10, %v1562_v0  ;;  %v1964_v34 = vpop.f32.mrb[6].mxu0  ;;  %v7889_v0 = vld [vmem:[%s11392_s1 + $0x14d0] ss:$24 sps:$4 sm:$0xff]   ;;  %v7897_v10 = vld [vmem:[%s11392_s1 + $0x1534] ss:$24 sps:$4 sm:$0xff]  }
 0x2f6   :  { %v1967_v14 = vmul.f32 0.2, %v7344_v2  ;;  %v2579_v20 = vmax.f32 %v7344_v2, 0.0  ;;  %v1965_v21 = vpop.f32.mrb[7].mxu0  ;;  %v7900_v34 = vld [vmem:[%s11392_s1 + $0x1564] ss:$24 sps:$4 sm:$0xff]  }
 0x2f7   :  { %v1968_v22 = vmul.f32 0.2, %v7345_v11  ;;  %v2580_v23 = vmax.f32 %v7345_v11, 0.0  ;;  %v7901_v21 = vld [vmem:[%s11392_s1 + $0x1590] ss:$24 sps:$4 sm:$0xff]  }
 0x2f8   :  { %v1969_v24 = vmax.f32 %v7344_v2, %v1967_v14  ;;  %v9698_v3 = vpack.c.bf16 %v2579_v20, %v2579_v20  ;;  %v7892_v2 = vld [vmem:[%s11392_s1 + $0x1500] ss:$24 sps:$4 sm:$0xff]   ;;  %v7903_v20 = vld [vmem:[%s11392_s1 + $0x1594] ss:$24 sps:$4 sm:$0xff]  }
 0x2f9   :  { %v9696_v25 = vpack.c.bf16 %v2580_v23, %v2580_v23  ;;  %v1970_v27 = vmax.f32 %v7345_v11, %v1968_v22  ;;  %v7895_v11 = vld [vmem:[%s11392_s1 + $0x1530] ss:$24 sps:$4 sm:$0xff]   ;;  %v7898_v14 = vld [vmem:[%s11392_s1 + $0x1560] ss:$24 sps:$4 sm:$0xff]   ;;  %v7906_v22 = vld [vmem:[%s11392_s1 + $0x15c4] ss:$24 sps:$4 sm:$0xff]  }
 0x2fa   :  { %v1971_v30 = vpack.c.bf16 %v1969_v24, %v1969_v24  ;;  %v7904_v23 = vld [vmem:[%s11392_s1 + $0x15c0] ss:$24 sps:$4 sm:$0xff]   ;;  %v7909_v24 = vld [vmem:[%s11392_s1 + $0x15f4] ss:$24 sps:$4 sm:$0xff]  }
 0x2fb   :  { %3410 = vmatprep.mubr.bf16.mxu0 %v9696_v25  ;;  %v1972_v28 = vpack.c.bf16 %v1970_v27, %v1970_v27  ;;  %v7907_v27 = vld [vmem:[%s11392_s1 + $0x15f0] ss:$24 sps:$4 sm:$0xff]  }
 0x2fc   :  { %3411 = vmatmul.mubr.bf16.vlgmr.msra.gmra.mrb[8].mxu0 %v9698_v3 }
 0x2fd   :  { %2134 = vmatprep.mubr.bf16.mxu1 %v1972_v28  ;;  %v7912_v28 = vld [vmem:[%s11392_s1 + $0x1624] ss:$24 sps:$4 sm:$0xff]  }
 0x2fe   :  { %2135 = vmatmul.mubr.bf16.vlgmr.msra.gmra.mrb[8].mxu1 %v1971_v30  ;;  %v7915_v30 = vld [vmem:[%s11392_s1 + $0x1654] ss:$24 sps:$4 sm:$0xff]  }
 0x2ff   :  { %7307 = vmatpush3.bf16.msra.mxu1 %v7868_v29  ;;  %7322 = vmatprep.mubr.msk.bf16.mxu1 %vm8662_vm0, %v8661_v62  ;;  %v7910_v29 = vld [vmem:[%s11392_s1 + $0x1620] ss:$24 sps:$4 sm:$0xff]  }
 0x300   :  { %7308 = vmatprep.subr.bf16.mxu1 %v8661_v62 }
 0x303   :  { %7309 = vmatpush3.bf16.msra.mxu1 %v7869_v31  ;;  %v7913_v31 = vld [vmem:[%s11392_s1 + $0x1650] ss:$24 sps:$4 sm:$0xff]  }
 0x304   :  { %7310 = vmatprep.subr.bf16.mxu1 %v8661_v62 }
 0x307   :  { %7311 = vmatpush3.bf16.msra.mxu1 %v7870_v32  ;;  %v7918_v32 = vld [vmem:[%s11392_s1 + $0x1684] ss:$24 sps:$4 sm:$0xff]  }
 0x308   :  { %7312 = vmatprep.subr.bf16.mxu1 %v8661_v62 }
 0x30b   :  { %7313 = vmatpush3.bf16.msra.mxu1 %v7871_v33  ;;  %v7916_v33 = vld [vmem:[%s11392_s1 + $0x1680] ss:$24 sps:$4 sm:$0xff]  }
 0x30c   :  { %7314 = vmatprep.subr.bf16.mxu1 %v8661_v62 }
 0x30f   :  { %7315 = vmatpush3.bf16.msra.mxu1 %v7872_v35  ;;  %v7921_v35 = vld [vmem:[%s11392_s1 + $0x16b4] ss:$24 sps:$4 sm:$0xff]  }
 0x310   :  { %7316 = vmatprep.subr.bf16.mxu1 %v8661_v62 }
 0x313   :  { %7317 = vmatpush3.bf16.msra.mxu1 %v7873_v36  ;;  %v7919_v36 = vld [vmem:[%s11392_s1 + $0x16b0] ss:$24 sps:$4 sm:$0xff]  }
 0x314   :  { %7318 = vmatprep.subr.bf16.mxu1 %v8661_v62 }
 0x317   :  { %7319 = vmatpush3.bf16.msra.mxu1 %v7874_v37  ;;  %v7924_v37 = vld [vmem:[%s11392_s1 + $0x16e4] ss:$24 sps:$4 sm:$0xff]  }
 0x318   :  { %7320 = vmatprep.subr.bf16.mxu1 %v8661_v62 }
 0x31b   :  { %7321 = vmatpush3.bf16.msra.mxu1 %v7875_v38  ;;  %v7922_v38 = vld [vmem:[%s11392_s1 + $0x16e0] ss:$24 sps:$4 sm:$0xff]  }
 0x31c   :  { %7326 = vmatprep.subr.bf16.mxu1 %v8661_v62 }
 0x3d1   :  { %v7286_v39 = vpop.f32.mrb[8].mxu1 }
 0x3d2   :  { %v7287_v55 = vpop.f32.mrb[9].mxu1 }
 0x3d3   :  { %v7288_v41 = vadd.f32 %v7287_v55, %v7286_v39  ;;  %v7289_v18 = vpop.f32.mrb[10].mxu1  ;;  %v7927_v39 = vld [vmem:[%s11392_s1 + $0x1714] ss:$24 sps:$4 sm:$0xff]  }
 0x3d4   :  { %v7290_v42 = vpop.f32.mrb[11].mxu1  ;;  %v7930_v55 = vld [vmem:[%s11392_s1 + $0x174c] ss:$24 sps:$4 sm:$0xff]  }
 0x3d5   :  { %v9739_v43 = vadd.f32 %v7288_v41, %v2005_v40  ;;  %v7925_v40 = vld [vmem:[%s11392_s1 + $0x1710] ss:$24 sps:$4 sm:$0xff]   ;;  %v7976_v41 = vld [vmem:[%s11392_s1 + $0x1a40] ss:$24 sps:$4 sm:$0xff]   ;;  %v7978_v18 = vld [vmem:[%s11392_s1 + $0x1a44] ss:$24 sps:$4 sm:$0xff]  }
 0x3d6   :  { %v7984_v42 = vld [vmem:[%s11392_s1 + $0x1a74] ss:$24 sps:$4 sm:$0xff]   ;;  %3419 = vmatprep.subr.bf16.mxu0 %v7978_v18  ;;  %v7952_v18 = vld [vmem:[%s11392_s1 + $0x18c8] ss:$24 sps:$4 sm:$0xff]  }
 0x3d7   :  { %v2142_v44 = vmul.f32 0.2, %v9739_v43  ;;  %3420 = vmatpush1.bf16.msra.mxu0 %v7976_v41  ;;  %v7954_v41 = vld [vmem:[%s11392_s1 + $0x18cc] ss:$24 sps:$4 sm:$0xff]  }
 0x3d8   :  { %3421 = vmatprep.subr.bf16.mxu0 %v7984_v42  ;;  %v7957_v42 = vld [vmem:[%s11392_s1 + $0x18fc] ss:$24 sps:$4 sm:$0xff]  }
 0x3d9   :  { %v2143_v45 = vmax.f32 %v9739_v43, %v2142_v44  ;;  %v7982_v44 = vld [vmem:[%s11392_s1 + $0x1a70] ss:$24 sps:$4 sm:$0xff]  }
 0x3db   :  { %v2144_v47 = vpack.c.bf16 %v2143_v45, %v2143_v45  ;;  %v7990_v45 = vld [vmem:[%s11392_s1 + $0x1aa4] ss:$24 sps:$4 sm:$0xff]   ;;  %3422 = vmatpush1.bf16.msra.mxu0 %v7982_v44  ;;  %v7955_v44 = vld [vmem:[%s11392_s1 + $0x18f8] ss:$24 sps:$4 sm:$0xff]  }
 0x3dc   :  { %3423 = vmatprep.subr.bf16.mxu0 %v7990_v45  ;;  %v7960_v45 = vld [vmem:[%s11392_s1 + $0x192c] ss:$24 sps:$4 sm:$0xff]  }
 0x3dd   :  { %7323 = vmatmul.mubr.bf16.vlgmr.msra.gmra.mrb[12].mxu1 %v2144_v47  ;;  %v7996_v47 = vld [vmem:[%s11392_s1 + $0x1ad4] ss:$24 sps:$4 sm:$0xff]  }
 0x3de   :  { %7327 = vmatpush3.bf16.msra.mxu1 %v7876_v46  ;;  %7334 = vmatprep.mubr.msk.bf16.mxu1 %vm8662_vm0, %v8661_v62  ;;  %v7988_v46 = vld [vmem:[%s11392_s1 + $0x1aa0] ss:$24 sps:$4 sm:$0xff]  }
 0x3df   :  { %7328 = vmatprep.subr.bf16.mxu1 %v8661_v62  ;;  %3424 = vmatpush1.bf16.msra.mxu0 %v7988_v46  ;;  %v7958_v46 = vld [vmem:[%s11392_s1 + $0x1928] ss:$24 sps:$4 sm:$0xff]  }
 0x3e0   :  { %3425 = vmatprep.subr.bf16.mxu0 %v7996_v47  ;;  %v7963_v47 = vld [vmem:[%s11392_s1 + $0x195c] ss:$24 sps:$4 sm:$0xff]  }
 0x3e2   :  { %7329 = vmatpush3.bf16.msra.mxu1 %v7877_v48  ;;  %v7994_v48 = vld [vmem:[%s11392_s1 + $0x1ad0] ss:$24 sps:$4 sm:$0xff]  }
 0x3e3   :  { %7330 = vmatprep.subr.bf16.mxu1 %v8661_v62  ;;  %3426 = vmatpush1.bf16.msra.mxu0 %v7994_v48  ;;  %v7961_v48 = vld [vmem:[%s11392_s1 + $0x1958] ss:$24 sps:$4 sm:$0xff]  }
 0x3e6   :  { %7331 = vmatpush3.bf16.msra.mxu1 %v7878_v49  ;;  %v8002_v49 = vld [vmem:[%s11392_s1 + $0x1b04] ss:$24 sps:$4 sm:$0xff]  }
 0x3e7   :  { %7332 = vmatprep.subr.bf16.mxu1 %v8661_v62  ;;  %v7888_v62 = vld [vmem:[%s11392_s1 + $0x14a4] ss:$24 sps:$4 sm:$0xff]   ;;  %3427 = vmatprep.subr.bf16.mxu0 %v8002_v49 }
 0x3e8   :  { %v7966_v49 = vld [vmem:[%s11392_s1 + $0x198c] ss:$24 sps:$4 sm:$0xff]  }
 0x3ea   :  { %7333 = vmatpush3.bf16.msra.mxu1 %v7879_v50  ;;  %v8000_v50 = vld [vmem:[%s11392_s1 + $0x1b00] ss:$24 sps:$4 sm:$0xff]  }
 0x3eb   :  { %2538 = vmatprep.subr.bf16.mxu1 %v7882_v51  ;;  %v8008_v51 = vld [vmem:[%s11392_s1 + $0x1b34] ss:$24 sps:$4 sm:$0xff]   ;;  %3428 = vmatpush1.bf16.msra.mxu0 %v8000_v50  ;;  %v7964_v50 = vld [vmem:[%s11392_s1 + $0x1988] ss:$24 sps:$4 sm:$0xff]  }
 0x3ec   :  { %3429 = vmatprep.subr.bf16.mxu0 %v8008_v51  ;;  %v7969_v51 = vld [vmem:[%s11392_s1 + $0x19bc] ss:$24 sps:$4 sm:$0xff]  }
 0x4b0   :  { %v2244_v4 = vpop.f32.mrb[12].mxu1 }
 0x4b1   :  { %v2245_v53 = vadd.f32 %v2244_v4, %v2161_v52  ;;  %v7324_v54 = vpop.f32.mrb[13].mxu1  ;;  %v8006_v52 = vld [vmem:[%s11392_s1 + $0x1b30] ss:$24 sps:$4 sm:$0xff]   ;;  %v8014_v4 = vld [vmem:[%s11392_s1 + $0x1b64] ss:$24 sps:$4 sm:$0xff]  }
 0x4b2   :  { %v2247_v8 = vpop.f32.mrb[14].mxu1  ;;  %3430 = vmatpush1.bf16.msra.mxu0 %v8006_v52  ;;  %v8020_v54 = vld [vmem:[%s11392_s1 + $0x1b94] ss:$24 sps:$4 sm:$0xff]   ;;  %v7967_v52 = vld [vmem:[%s11392_s1 + $0x19b8] ss:$24 sps:$4 sm:$0xff]  }
 0x4b3   :  { %v2250_v56 = vmax.f32 %v2245_v53, 0.0  ;;  %v7325_v57 = vpop.f32.mrb[15].mxu1  ;;  %v8012_v53 = vld [vmem:[%s11392_s1 + $0x1b60] ss:$24 sps:$4 sm:$0xff]   ;;  %3431 = vmatprep.subr.bf16.mxu0 %v8014_v4  ;;  %v8018_v8 = vld [vmem:[%s11392_s1 + $0x1b90] ss:$24 sps:$4 sm:$0xff]  }
 0x4b4   :  { %v8024_v57 = vld [vmem:[%s11392_s1 + $0x1bc0] ss:$24 sps:$4 sm:$0xff]   ;;  %v7972_v4 = vld [vmem:[%s11392_s1 + $0x19ec] ss:$24 sps:$4 sm:$0xff]  }
 0x4b5   :  { %v2251_v59 = vpack.c.bf16 %v2250_v56, %v2250_v56  ;;  %v8026_v56 = vld [vmem:[%s11392_s1 + $0x1bc4] ss:$24 sps:$4 sm:$0xff]  }
 0x4b6   :  { %3432 = vmatpush1.bf16.msra.mxu0 %v8012_v53  ;;  %v7970_v53 = vld [vmem:[%s11392_s1 + $0x19e8] ss:$24 sps:$4 sm:$0xff]  }
 0x4b7   :  { %7335 = vmatmul.mubr.msk.bf16.vlgmr.msra.gmra.mrb[16].mxu1 %vm2285_vm1, %v2251_v59  ;;  %3433 = vmatprep.subr.bf16.mxu0 %v8020_v54  ;;  %v8030_v59 = vld [vmem:[%s11392_s1 + $0x1bf0] ss:$24 sps:$4 sm:$0xff]   ;;  %v7975_v54 = vld [vmem:[%s11392_s1 + $0x1a1c] ss:$24 sps:$4 sm:$0xff]  }
 0x4b8   :  { %2539 = vmatpush1.bf16.msra.mxu1 %v7880_v58  ;;  %v8032_v58 = vld [vmem:[%s11392_s1 + $0x1bf4] ss:$24 sps:$4 sm:$0xff]  }
 0x4b9   :  { %2540 = vmatprep.subr.bf16.mxu1 %v7885_v60  ;;  %v8038_v60 = vld [vmem:[%s11392_s1 + $0x1c24] ss:$24 sps:$4 sm:$0xff]  }
 0x4ba   :  { %3434 = vmatpush1.bf16.msra.mxu0 %v8018_v8  ;;  %v7973_v8 = vld [vmem:[%s11392_s1 + $0x1a18] ss:$24 sps:$4 sm:$0xff]  }
 0x4bb   :  { %3435 = vmatprep.subr.bf16.mxu0 %v8026_v56  ;;  %v7981_v56 = vld [vmem:[%s11392_s1 + $0x1a4c] ss:$24 sps:$4 sm:$0xff]  }
 0x4bc   :  { %2541 = vmatpush1.bf16.msra.mxu1 %v7883_v61  ;;  %v8036_v61 = vld [vmem:[%s11392_s1 + $0x1c20] ss:$24 sps:$4 sm:$0xff]  }
 0x4bd   :  { %2542 = vmatprep.subr.bf16.mxu1 %v7888_v62  ;;  %v8044_v62 = vld [vmem:[%s11392_s1 + $0x1c54] ss:$24 sps:$4 sm:$0xff]  }
 0x4be   :  { %3436 = vmatpush1.bf16.msra.mxu0 %v8024_v57  ;;  %v7979_v57 = vld [vmem:[%s11392_s1 + $0x1a48] ss:$24 sps:$4 sm:$0xff]  }
 0x4bf   :  { %3437 = vmatprep.subr.bf16.mxu0 %v8032_v58  ;;  %v7987_v58 = vld [vmem:[%s11392_s1 + $0x1a7c] ss:$24 sps:$4 sm:$0xff]  }
 0x4c0   :  { %2543 = vmatpush1.bf16.msra.mxu1 %v7886_v26  ;;  %v8042_v26 = vld [vmem:[%s11392_s1 + $0x1c50] ss:$24 sps:$4 sm:$0xff]  }
 0x4c1   :  { %2544 = vmatprep.subr.bf16.mxu1 %v7891_v63  ;;  %v8050_v63 = vld [vmem:[%s11392_s1 + $0x1c84] ss:$24 sps:$4 sm:$0xff]  }
 0x4c2   :  { %3438 = vmatpush1.bf16.msra.mxu0 %v8030_v59  ;;  %v7985_v59 = vld [vmem:[%s11392_s1 + $0x1a78] ss:$24 sps:$4 sm:$0xff]  }
 0x4c3   :  { %3439 = vmatprep.subr.bf16.mxu0 %v8038_v60  ;;  %v7993_v60 = vld [vmem:[%s11392_s1 + $0x1aac] ss:$24 sps:$4 sm:$0xff]  }
 0x4c4   :  { %2545 = vmatpush1.bf16.msra.mxu1 %v7889_v0  ;;  %v8048_v0 = vld [vmem:[%s11392_s1 + $0x1c80] ss:$24 sps:$4 sm:$0xff]  }
 0x4c5   :  { %2546 = vmatprep.subr.bf16.mxu1 %v7894_v1  ;;  %v8056_v1 = vld [vmem:[%s11392_s1 + $0x1cb4] ss:$24 sps:$4 sm:$0xff]  }
 0x4c6   :  { %3440 = vmatpush1.bf16.msra.mxu0 %v8036_v61  ;;  %v7991_v61 = vld [vmem:[%s11392_s1 + $0x1aa8] ss:$24 sps:$4 sm:$0xff]  }
 0x4c7   :  { %3441 = vmatprep.subr.bf16.mxu0 %v8044_v62  ;;  %v7997_v62 = vld [vmem:[%s11392_s1 + $0x1ad8] ss:$24 sps:$4 sm:$0xff]  }
 0x4c8   :  { %2547 = vmatpush1.bf16.msra.mxu1 %v7892_v2  ;;  %v8054_v2 = vld [vmem:[%s11392_s1 + $0x1cb0] ss:$24 sps:$4 sm:$0xff]  }
 0x4c9   :  { %2548 = vmatprep.subr.bf16.mxu1 %v7897_v10  ;;  %v2260_v10 = vld [vmem:[%s11394_s2 + $0x4] ss:$0 sm:$0xff] }
 0x4ca   :  { %3442 = vmatpush1.bf16.msra.mxu0 %v8042_v26  ;;  %v8005_v26 = vld [vmem:[%s11392_s1 + $0x1b0c] ss:$24 sps:$4 sm:$0xff]  }
 0x4cb   :  { %3443 = vmatprep.subr.bf16.mxu0 %v8050_v63  ;;  %v8003_v63 = vld [vmem:[%s11392_s1 + $0x1b08] ss:$24 sps:$4 sm:$0xff]  }
 0x4cc   :  { %2549 = vmatpush1.bf16.msra.mxu1 %v7895_v11 }
 0x4cd   :  { %2550 = vmatprep.subr.bf16.mxu1 %v7900_v34 }
 0x4ce   :  { %3444 = vmatpush1.bf16.msra.mxu0 %v8048_v0  ;;  %v8011_v0 = vld [vmem:[%s11392_s1 + $0x1b3c] ss:$24 sps:$4 sm:$0xff]  }
 0x4cf   :  { %3445 = vmatprep.subr.bf16.mxu0 %v8056_v1  ;;  %v8009_v1 = vld [vmem:[%s11392_s1 + $0x1b38] ss:$24 sps:$4 sm:$0xff]  }
 0x4d0   :  { %2551 = vmatpush1.bf16.msra.mxu1 %v7898_v14 }
 0x4d1   :  { %2552 = vmatprep.subr.bf16.mxu1 %v7903_v20  ;;  %v2329_v20 = vmax.f32 %v9739_v43, 0.0  ;;  %v7931_v43 = vld [vmem:[%s11392_s1 + $0x1778] ss:$24 sps:$4 sm:$0xff]  }
 0x4d2   :  { %3446 = vmatpush1.bf16.msra.mxu0 %v8054_v2  ;;  %v8017_v2 = vld [vmem:[%s11392_s1 + $0x1b6c] ss:$24 sps:$4 sm:$0xff]  }
 0x4d4   :  { %2553 = vmatpush1.bf16.msra.mxu1 %v7901_v21 }
 0x4d5   :  { %2554 = vmatprep.subr.bf16.mxu1 %v7906_v22 }
 0x4d8   :  { %2555 = vmatpush1.bf16.msra.mxu1 %v7904_v23 }
 0x4d9   :  { %2556 = vmatprep.subr.bf16.mxu1 %v7909_v24 }
 0x4dc   :  { %2557 = vmatpush1.bf16.msra.mxu1 %v7907_v27  ;;  %v7928_v27 = vld [vmem:[%s11392_s1 + $0x1748] ss:$24 sps:$4 sm:$0xff]  }
 0x4dd   :  { %2558 = vmatprep.subr.bf16.mxu1 %v7912_v28  ;;  %v2331_v28 = vpack.c.bf16 %v2329_v20, %v2329_v20  ;;  %v8068_v20 = vld [vmem:[%s11392_s1 + $0x1d14] ss:$24 sps:$4 sm:$0xff]  }
 0x4e0   :  { %2559 = vmatpush1.bf16.msra.mxu1 %v7910_v29  ;;  %v7933_v29 = vld [vmem:[%s11392_s1 + $0x177c] ss:$24 sps:$4 sm:$0xff]  }
 0x4e1   :  { %2560 = vmatprep.subr.bf16.mxu1 %v7915_v30  ;;  %v7936_v30 = vld [vmem:[%s11392_s1 + $0x17ac] ss:$24 sps:$4 sm:$0xff]  }
 0x4e4   :  { %2561 = vmatpush1.bf16.msra.mxu1 %v7913_v31  ;;  %v7934_v31 = vld [vmem:[%s11392_s1 + $0x17a8] ss:$24 sps:$4 sm:$0xff]  }
 0x4e5   :  { %2562 = vmatprep.subr.bf16.mxu1 %v7918_v32  ;;  %v7939_v32 = vld [vmem:[%s11392_s1 + $0x17dc] ss:$24 sps:$4 sm:$0xff]  }
 0x4e8   :  { %2563 = vmatpush1.bf16.msra.mxu1 %v7916_v33  ;;  %v7942_v33 = vld [vmem:[%s11392_s1 + $0x180c] ss:$24 sps:$4 sm:$0xff]  }
 0x4e9   :  { %2564 = vmatprep.subr.bf16.mxu1 %v7921_v35  ;;  %v7940_v35 = vld [vmem:[%s11392_s1 + $0x1808] ss:$24 sps:$4 sm:$0xff]  }
 0x4ec   :  { %2565 = vmatpush1.bf16.msra.mxu1 %v7919_v36  ;;  %v7945_v36 = vld [vmem:[%s11392_s1 + $0x183c] ss:$24 sps:$4 sm:$0xff]  }
 0x4ed   :  { %2566 = vmatprep.subr.bf16.mxu1 %v7924_v37  ;;  %v7943_v37 = vld [vmem:[%s11392_s1 + $0x1838] ss:$24 sps:$4 sm:$0xff]  }
 0x4f0   :  { %2567 = vmatpush1.bf16.msra.mxu1 %v7922_v38  ;;  %v7948_v38 = vld [vmem:[%s11392_s1 + $0x186c] ss:$24 sps:$4 sm:$0xff]  }
 0x4f1   :  { %2568 = vmatprep.subr.bf16.mxu1 %v7927_v39  ;;  %v7946_v39 = vld [vmem:[%s11392_s1 + $0x1868] ss:$24 sps:$4 sm:$0xff]  }
 0x4f4   :  { %2569 = vmatpush1.bf16.msra.mxu1 %v7925_v40  ;;  %v7951_v40 = vld [vmem:[%s11392_s1 + $0x189c] ss:$24 sps:$4 sm:$0xff]  }
 0x4f5   :  { %3460 = vmatprep.subr.bf16.mxu1 %v7930_v55  ;;  %v7949_v55 = vld [vmem:[%s11392_s1 + $0x1898] ss:$24 sps:$4 sm:$0xff]  }
 0x58a   :  { %v2323_v11 = vpop.f32.mrb[16].mxu1 }
 0x58b   :  { %v2324_v34 = vadd.f32 %v2323_v11, %v2260_v10  ;;  %v7336_v14 = vpop.f32.mrb[17].mxu1  ;;  %v8062_v10 = vld [vmem:[%s11392_s1 + $0x1ce4] ss:$24 sps:$4 sm:$0xff]   ;;  %v8060_v11 = vld [vmem:[%s11392_s1 + $0x1ce0] ss:$24 sps:$4 sm:$0xff]  }
 0x58c   :  { %v2326_v21 = vpop.f32.mrb[18].mxu1  ;;  %3447 = vmatprep.subr.bf16.mxu0 %v8062_v10  ;;  %v8023_v14 = vld [vmem:[%s11392_s1 + $0x1b9c] ss:$24 sps:$4 sm:$0xff]   ;;  %v8101_v10 = vld [vmem:[%s11392_s1 + $0x1e0c] ss:$24 sps:$4 sm:$0xff]  }
 0x58d   :  { %v2330_v22 = vmax.f32 %v2324_v34, 0.0  ;;  %v7337_v23 = vpop.f32.mrb[19].mxu1  ;;  %v8015_v34 = vld [vmem:[%s11392_s1 + $0x1b68] ss:$24 sps:$4 sm:$0xff]   ;;  %3448 = vmatpush1.bf16.msra.mxu0 %v8060_v11 }
 0x58e   :  { %v8066_v21 = vld [vmem:[%s11392_s1 + $0x1d10] ss:$24 sps:$4 sm:$0xff]   ;;  %3449 = vmatprep.subr.bf16.mxu0 %v8068_v20  ;;  %v8029_v23 = vld [vmem:[%s11392_s1 + $0x1bcc] ss:$24 sps:$4 sm:$0xff]   ;;  %v8096_v11 = vld [vmem:[%s11392_s1 + $0x1e00] ss:$24 sps:$4 sm:$0xff]  }
 0x58f   :  { %v2332_v24 = vpack.c.bf16 %v2330_v22, %v2330_v22  ;;  %v8021_v22 = vld [vmem:[%s11392_s1 + $0x1b98] ss:$24 sps:$4 sm:$0xff]   ;;  %v8107_v20 = vld [vmem:[%s11392_s1 + $0x1e3c] ss:$24 sps:$4 sm:$0xff]  }
 0x591   :  { %2570 = vmatprep.mubr.bf16.mxu1 %v2332_v24  ;;  %3450 = vmatpush1.bf16.msra.mxu0 %v8066_v21  ;;  %v8074_v24 = vld [vmem:[%s11392_s1 + $0x1d44] ss:$24 sps:$4 sm:$0xff]   ;;  %v8102_v21 = vld [vmem:[%s11392_s1 + $0x1e30] ss:$24 sps:$4 sm:$0xff]  }
 0x592   :  { %2571 = vmatmul.mubr.bf16.vlgmr.msra.gmra.mrb[20].mxu1 %v2331_v28  ;;  %5897 = vmatprep.subr.bf16.mxu0 %v8074_v24  ;;  %v8035_v28 = vld [vmem:[%s11392_s1 + $0x1bfc] ss:$24 sps:$4 sm:$0xff]   ;;  %v8113_v24 = vld [vmem:[%s11392_s1 + $0x1e6c] ss:$24 sps:$4 sm:$0xff]  }
 0x593   :  { %3461 = vmatpush1.bf16.msra.mxu1 %v7928_v27  ;;  %3492 = vmatprep.mubr.bf16.mxu1 %v9696_v25  ;;  %v7937_v25 = vld [vmem:[%s11392_s1 + $0x17d8] ss:$24 sps:$4 sm:$0xff]   ;;  %v8027_v27 = vld [vmem:[%s11392_s1 + $0x1bc8] ss:$24 sps:$4 sm:$0xff]  }
 0x594   :  { %3462 = vmatprep.subr.bf16.mxu1 %v7933_v29  ;;  %v8033_v29 = vld [vmem:[%s11392_s1 + $0x1bf8] ss:$24 sps:$4 sm:$0xff]  }
 0x597   :  { %3463 = vmatpush1.bf16.msra.mxu1 %v7931_v43  ;;  %v8041_v43 = vld [vmem:[%s11392_s1 + $0x1c2c] ss:$24 sps:$4 sm:$0xff]  }
 0x598   :  { %3464 = vmatprep.subr.bf16.mxu1 %v7936_v30  ;;  %v8039_v30 = vld [vmem:[%s11392_s1 + $0x1c28] ss:$24 sps:$4 sm:$0xff]  }
 0x59b   :  { %3465 = vmatpush1.bf16.msra.mxu1 %v7934_v31  ;;  %v8047_v31 = vld [vmem:[%s11392_s1 + $0x1c5c] ss:$24 sps:$4 sm:$0xff]  }
 0x59c   :  { %3466 = vmatprep.subr.bf16.mxu1 %v7939_v32  ;;  %v8045_v32 = vld [vmem:[%s11392_s1 + $0x1c58] ss:$24 sps:$4 sm:$0xff]  }
 0x59f   :  { %3467 = vmatpush1.bf16.msra.mxu1 %v7937_v25  ;;  %v8053_v25 = vld [vmem:[%s11392_s1 + $0x1c8c] ss:$24 sps:$4 sm:$0xff]  }
 0x5a0   :  { %3468 = vmatprep.subr.bf16.mxu1 %v7942_v33  ;;  %v8051_v33 = vld [vmem:[%s11392_s1 + $0x1c88] ss:$24 sps:$4 sm:$0xff]  }
 0x5a3   :  { %3469 = vmatpush1.bf16.msra.mxu1 %v7940_v35  ;;  %v8059_v35 = vld [vmem:[%s11392_s1 + $0x1cbc] ss:$24 sps:$4 sm:$0xff]  }
 0x5a4   :  { %3470 = vmatprep.subr.bf16.mxu1 %v7945_v36  ;;  %v8057_v36 = vld [vmem:[%s11392_s1 + $0x1cb8] ss:$24 sps:$4 sm:$0xff]  }
 0x5a7   :  { %3471 = vmatpush1.bf16.msra.mxu1 %v7943_v37  ;;  %v8065_v37 = vld [vmem:[%s11392_s1 + $0x1cec] ss:$24 sps:$4 sm:$0xff]  }
 0x5a8   :  { %3472 = vmatprep.subr.bf16.mxu1 %v7948_v38  ;;  %v8063_v38 = vld [vmem:[%s11392_s1 + $0x1ce8] ss:$24 sps:$4 sm:$0xff]  }
 0x5ab   :  { %3473 = vmatpush1.bf16.msra.mxu1 %v7946_v39  ;;  %v8071_v39 = vld [vmem:[%s11392_s1 + $0x1d1c] ss:$24 sps:$4 sm:$0xff]  }
 0x5ac   :  { %3474 = vmatprep.subr.bf16.mxu1 %v7951_v40  ;;  %v8069_v40 = vld [vmem:[%s11392_s1 + $0x1d18] ss:$24 sps:$4 sm:$0xff]  }
 0x5af   :  { %3475 = vmatpush1.bf16.msra.mxu1 %v7949_v55  ;;  %v8077_v55 = vld [vmem:[%s11392_s1 + $0x1d4c] ss:$24 sps:$4 sm:$0xff]  }
 0x5b0   :  { %3476 = vmatprep.subr.bf16.mxu1 %v7954_v41  ;;  %v6721_v41 = vld [vmem:[%s11394_s2 + $0x5] ss:$8 sm:$0x3] }
 0x5b3   :  { %3477 = vmatpush1.bf16.msra.mxu1 %v7952_v18  ;;  %v2371_v18 = vrot.slane %v6721_v41, %v9418_v5 }
 0x5b4   :  { %3478 = vmatprep.subr.bf16.mxu1 %v7957_v42  ;;  %v2375_v42 = vrot.slane %v6721_v41, %v9421_v6  ;;  %v8132_v41 = vld [vmem:[%s11392_s1 + $0x1f20] ss:$24 sps:$4 sm:$0xff]  }
 0x5b7   :  { %3479 = vmatpush1.bf16.msra.mxu1 %v7955_v44 }
 0x5b8   :  { %3480 = vmatprep.subr.bf16.mxu1 %v7960_v45 }
 0x5bb   :  { %3481 = vmatpush1.bf16.msra.mxu1 %v7958_v46 }
 0x5bc   :  { %3482 = vmatprep.subr.bf16.mxu1 %v7963_v47 }
 0x5bf   :  { %3483 = vmatpush1.bf16.msra.mxu1 %v7961_v48 }
 0x5c0   :  { %3484 = vmatprep.subr.bf16.mxu1 %v7966_v49 }
 0x5c3   :  { %3485 = vmatpush1.bf16.msra.mxu1 %v7964_v50 }
 0x5c4   :  { %3486 = vmatprep.subr.bf16.mxu1 %v7969_v51 }
 0x5c7   :  { %3487 = vmatpush1.bf16.msra.mxu1 %v7967_v52  ;;  %v3543_v52 = vmax.f32 %v9429_v19, 0.0  ;;  %v8083_v19 = vld [vmem:[%s11392_s1 + $0x1d7c] ss:$24 sps:$4 sm:$0xff]  }
 0x5c8   :  { %3488 = vmatprep.subr.bf16.mxu1 %v7972_v4 }
 0x5cb   :  { %3489 = vmatpush1.bf16.msra.mxu1 %v7970_v53  ;;  %v8072_v53 = vld [vmem:[%s11392_s1 + $0x1d40] ss:$24 sps:$4 sm:$0xff]  }
 0x5cc   :  { %3490 = vmatprep.subr.bf16.mxu1 %v7975_v54  ;;  %v8075_v54 = vld [vmem:[%s11392_s1 + $0x1d48] ss:$24 sps:$4 sm:$0xff]  }
 0x5cf   :  { %3491 = vmatpush1.bf16.msra.mxu1 %v7973_v8 }
 0x5d0   :  { %3501 = vmatprep.subr.bf16.mxu1 %v7981_v56  ;;  %v8080_v56 = vld [vmem:[%s11392_s1 + $0x1d74] ss:$24 sps:$4 sm:$0xff]  }
 0x5d2   :  { %3493 = vmatmul.mubr.bf16.vlgmr.msra.gmra.mrb[24].mxu1 %v9698_v3  ;;  %v7999_v3 = vld [vmem:[%s11392_s1 + $0x1adc] ss:$24 sps:$4 sm:$0xff]  }
 0x5d3   :  { %3502 = vmatpush1.bf16.msra.mxu1 %v7979_v57  ;;  %v10177_v57 = vpack.c.bf16 %v3543_v52, %v3543_v52  ;;  %v8155_v52 = vld [vmem:[%s11392_s1 + $0x1fbc] ss:$24 sps:$4 sm:$0xff]  }
 0x5d4   :  { %3503 = vmatprep.subr.bf16.mxu1 %v7987_v58  ;;  %v8078_v58 = vld [vmem:[%s11392_s1 + $0x1d70] ss:$24 sps:$4 sm:$0xff]  }
 0x5d7   :  { %3504 = vmatpush1.bf16.msra.mxu1 %v7985_v59  ;;  %v8081_v59 = vld [vmem:[%s11392_s1 + $0x1d78] ss:$24 sps:$4 sm:$0xff]  }
 0x5d8   :  { %3505 = vmatprep.subr.bf16.mxu1 %v7993_v60  ;;  %v8086_v60 = vld [vmem:[%s11392_s1 + $0x1da4] ss:$24 sps:$4 sm:$0xff]  }
 0x5db   :  { %3506 = vmatpush1.bf16.msra.mxu1 %v7991_v61  ;;  %v8089_v61 = vld [vmem:[%s11392_s1 + $0x1dac] ss:$24 sps:$4 sm:$0xff]  }
 0x5dc   :  { %3507 = vmatprep.subr.bf16.mxu1 %v7999_v3  ;;  %v8084_v3 = vld [vmem:[%s11392_s1 + $0x1da0] ss:$24 sps:$4 sm:$0xff]  }
 0x5df   :  { %3508 = vmatpush1.bf16.msra.mxu1 %v7997_v62  ;;  %v8087_v62 = vld [vmem:[%s11392_s1 + $0x1da8] ss:$24 sps:$4 sm:$0xff]  }
 0x5e0   :  { %3509 = vmatprep.subr.bf16.mxu1 %v8005_v26  ;;  %v8092_v26 = vld [vmem:[%s11392_s1 + $0x1dd4] ss:$24 sps:$4 sm:$0xff]  }
 0x5e3   :  { %3510 = vmatpush1.bf16.msra.mxu1 %v8003_v63  ;;  %v8095_v63 = vld [vmem:[%s11392_s1 + $0x1ddc] ss:$24 sps:$4 sm:$0xff]  }
 0x5e4   :  { %3511 = vmatprep.subr.bf16.mxu1 %v8011_v0  ;;  %v8090_v0 = vld [vmem:[%s11392_s1 + $0x1dd0] ss:$24 sps:$4 sm:$0xff]  }
 0x5e7   :  { %3512 = vmatpush1.bf16.msra.mxu1 %v8009_v1  ;;  %v8093_v1 = vld [vmem:[%s11392_s1 + $0x1dd8] ss:$24 sps:$4 sm:$0xff]  }
 0x5e8   :  { %3513 = vmatprep.subr.bf16.mxu1 %v8017_v2  ;;  %v8098_v2 = vld [vmem:[%s11392_s1 + $0x1e04] ss:$24 sps:$4 sm:$0xff]  }
 0x5eb   :  { %3514 = vmatpush1.bf16.msra.mxu1 %v8015_v34  ;;  %v8099_v34 = vld [vmem:[%s11392_s1 + $0x1e08] ss:$24 sps:$4 sm:$0xff]  }
 0x5ec   :  { %3515 = vmatprep.subr.bf16.mxu1 %v8023_v14  ;;  %v8104_v14 = vld [vmem:[%s11392_s1 + $0x1e34] ss:$24 sps:$4 sm:$0xff]  }
 0x5ef   :  { %3516 = vmatpush1.bf16.msra.mxu1 %v8021_v22  ;;  %v8105_v22 = vld [vmem:[%s11392_s1 + $0x1e38] ss:$24 sps:$4 sm:$0xff]  }
 0x5f0   :  { %3517 = vmatprep.subr.bf16.mxu1 %v8029_v23  ;;  %v8110_v23 = vld [vmem:[%s11392_s1 + $0x1e64] ss:$24 sps:$4 sm:$0xff]  }
 0x5f3   :  { %3518 = vmatpush1.bf16.msra.mxu1 %v8027_v27  ;;  %v8108_v27 = vld [vmem:[%s11392_s1 + $0x1e60] ss:$24 sps:$4 sm:$0xff]  }
 0x5f4   :  { %3519 = vmatprep.subr.bf16.mxu1 %v8035_v28  ;;  %v8111_v28 = vld [vmem:[%s11392_s1 + $0x1e68] ss:$24 sps:$4 sm:$0xff]  }
 0x5f7   :  { %3520 = vmatpush1.bf16.msra.mxu1 %v8033_v29  ;;  %v8116_v29 = vld [vmem:[%s11392_s1 + $0x1e94] ss:$24 sps:$4 sm:$0xff]  }
 0x5f8   :  { %3521 = vmatprep.subr.bf16.mxu1 %v8041_v43  ;;  %v8119_v43 = vld [vmem:[%s11392_s1 + $0x1e9c] ss:$24 sps:$4 sm:$0xff]  }
 0x5fb   :  { %3522 = vmatpush1.bf16.msra.mxu1 %v8039_v30  ;;  %v8114_v30 = vld [vmem:[%s11392_s1 + $0x1e90] ss:$24 sps:$4 sm:$0xff]  }
 0x5fc   :  { %3523 = vmatprep.subr.bf16.mxu1 %v8047_v31  ;;  %v8117_v31 = vld [vmem:[%s11392_s1 + $0x1e98] ss:$24 sps:$4 sm:$0xff]  }
 0x5ff   :  { %3524 = vmatpush1.bf16.msra.mxu1 %v8045_v32  ;;  %v8122_v32 = vld [vmem:[%s11392_s1 + $0x1ec4] ss:$24 sps:$4 sm:$0xff]  }
 0x600   :  { %3525 = vmatprep.subr.bf16.mxu1 %v8053_v25  ;;  %v8125_v25 = vld [vmem:[%s11392_s1 + $0x1ecc] ss:$24 sps:$4 sm:$0xff]  }
 0x603   :  { %3526 = vmatpush1.bf16.msra.mxu1 %v8051_v33  ;;  %v8120_v33 = vld [vmem:[%s11392_s1 + $0x1ec0] ss:$24 sps:$4 sm:$0xff]  }
 0x604   :  { %3527 = vmatprep.subr.bf16.mxu1 %v8059_v35  ;;  %v8123_v35 = vld [vmem:[%s11392_s1 + $0x1ec8] ss:$24 sps:$4 sm:$0xff]  }
 0x607   :  { %3528 = vmatpush1.bf16.msra.mxu1 %v8057_v36  ;;  %v8128_v36 = vld [vmem:[%s11392_s1 + $0x1ef4] ss:$24 sps:$4 sm:$0xff]  }
 0x608   :  { %3529 = vmatprep.subr.bf16.mxu1 %v8065_v37  ;;  %v8131_v37 = vld [vmem:[%s11392_s1 + $0x1efc] ss:$24 sps:$4 sm:$0xff]  }
 0x60b   :  { %3530 = vmatpush1.bf16.msra.mxu1 %v8063_v38  ;;  %v8126_v38 = vld [vmem:[%s11392_s1 + $0x1ef0] ss:$24 sps:$4 sm:$0xff]  }
 0x60c   :  { %3531 = vmatprep.subr.bf16.mxu1 %v8071_v39  ;;  %v8129_v39 = vld [vmem:[%s11392_s1 + $0x1ef8] ss:$24 sps:$4 sm:$0xff]  }
 0x60f   :  { %3532 = vmatpush1.bf16.msra.mxu1 %v8069_v40  ;;  %v8134_v40 = vld [vmem:[%s11392_s1 + $0x1f24] ss:$24 sps:$4 sm:$0xff]  }
 0x610   :  { %6061 = vmatprep.subr.bf16.mxu1 %v8077_v55  ;;  %v8137_v55 = vld [vmem:[%s11392_s1 + $0x1f2c] ss:$24 sps:$4 sm:$0xff]  }
 0x665   :  { %v2572_v44 = vpop.f32.mrb[20].mxu1 }
 0x666   :  { %v2573_v45 = vadd.f32 %v2572_v44, %v2371_v18  ;;  %v2574_v46 = vpop.f32.mrb[21].mxu1  ;;  %v8135_v18 = vld [vmem:[%s11392_s1 + $0x1f28] ss:$24 sps:$4 sm:$0xff]   ;;  %v8143_v44 = vld [vmem:[%s11392_s1 + $0x1f5c] ss:$24 sps:$4 sm:$0xff]  }
 0x667   :  { %v2575_v47 = vadd.f32 %v2574_v46, %v2375_v42  ;;  %v2576_v48 = vpop.f32.mrb[22].mxu1  ;;  %v8140_v42 = vld [vmem:[%s11392_s1 + $0x1f54] ss:$24 sps:$4 sm:$0xff]   ;;  %v8141_v46 = vld [vmem:[%s11392_s1 + $0x1f58] ss:$24 sps:$4 sm:$0xff]  }
 0x668   :  { %v2581_v49 = vmax.f32 %v2573_v45, 0.0  ;;  %v2577_v50 = vpop.f32.mrb[23].mxu1  ;;  %v8138_v45 = vld [vmem:[%s11392_s1 + $0x1f50] ss:$24 sps:$4 sm:$0xff]   ;;  %v8149_v48 = vld [vmem:[%s11392_s1 + $0x1f8c] ss:$24 sps:$4 sm:$0xff]  }
 0x669   :  { %v2582_v51 = vmax.f32 %v2575_v47, 0.0  ;;  %v8146_v47 = vld [vmem:[%s11392_s1 + $0x1f84] ss:$24 sps:$4 sm:$0xff]   ;;  %v8147_v50 = vld [vmem:[%s11392_s1 + $0x1f88] ss:$24 sps:$4 sm:$0xff]  }
 0x66a   :  { %v2585_v8 = vpack.c.bf16 %v2581_v49, %v2581_v49  ;;  %v8144_v49 = vld [vmem:[%s11392_s1 + $0x1f80] ss:$24 sps:$4 sm:$0xff]  }
 0x66b   :  { %v2586_v4 = vpack.c.bf16 %v2582_v51, %v2582_v51  ;;  %v8152_v51 = vld [vmem:[%s11392_s1 + $0x1fb4] ss:$24 sps:$4 sm:$0xff]  }
 0x66d   :  { %3451 = vmatprep.mubr.bf16.mxu0 %v2586_v4  ;;  %3533 = vmatprep.mubr.bf16.mxu1 %v2586_v4  ;;  %v8150_v4 = vld [vmem:[%s11392_s1 + $0x1fb0] ss:$24 sps:$4 sm:$0xff]  }
 0x66e   :  { %3452 = vmatmul.mubr.bf16.vlgmr.msra.gmra.mrb[8].mxu0 %v2585_v8  ;;  %3534 = vmatmul.mubr.bf16.vlgmr.msra.gmra.mrb[24].mxu1 %v2585_v8  ;;  %v8161_v8 = vld [vmem:[%s11392_s1 + $0x1fec] ss:$24 sps:$4 sm:$0xff]  }
 0x66f   :  { %5898 = vmatpush1.bf16.msra.mxu0 %v8072_v53  ;;  %6062 = vmatpush1.bf16.msra.mxu1 %v8075_v54  ;;  %v8153_v53 = vld [vmem:[%s11392_s1 + $0x1fb8] ss:$24 sps:$4 sm:$0xff]   ;;  %v8158_v54 = vld [vmem:[%s11392_s1 + $0x1fe4] ss:$24 sps:$4 sm:$0xff]  }
 0x670   :  { %5929 = vmatprep.mubr.bf16.mxu0 %v10177_v57  ;;  %6093 = vmatprep.mubr.bf16.mxu1 %v10177_v57 }
 0x671   :  { %5899 = vmatprep.subr.bf16.mxu0 %v8080_v56  ;;  %6063 = vmatprep.subr.bf16.mxu1 %v8083_v19  ;;  %v8156_v56 = vld [vmem:[%s11392_s1 + $0x1fe0] ss:$24 sps:$4 sm:$0xff]  }
 0x672   :  { %v8159_v19 = vld [vmem:[%s11392_s1 + $0x1fe8] ss:$24 sps:$4 sm:$0xff]  }
 0x673   :  { %5900 = vmatpush1.bf16.msra.mxu0 %v8078_v58  ;;  %6064 = vmatpush1.bf16.msra.mxu1 %v8081_v59  ;;  %v8164_v58 = vld [vmem:[%s11392_s1 + $0x2014] ss:$24 sps:$4 sm:$0xff]  }
 0x674   :  { %5901 = vmatprep.subr.bf16.mxu0 %v8086_v60  ;;  %6065 = vmatprep.subr.bf16.mxu1 %v8089_v61  ;;  %v8167_v59 = vld [vmem:[%s11392_s1 + $0x201c] ss:$24 sps:$4 sm:$0xff]   ;;  %v8162_v60 = vld [vmem:[%s11392_s1 + $0x2010] ss:$24 sps:$4 sm:$0xff]  }
 0x675   :  { %v8165_v61 = vld [vmem:[%s11392_s1 + $0x2018] ss:$24 sps:$4 sm:$0xff]  }
 0x677   :  { %5902 = vmatpush1.bf16.msra.mxu0 %v8084_v3  ;;  %6066 = vmatpush1.bf16.msra.mxu1 %v8087_v62  ;;  %v3542_v3 = vmax.f32 %v9427_v15, 0.0  ;;  %v8170_v62 = vld [vmem:[%s11392_s1 + $0x2044] ss:$24 sps:$4 sm:$0xff]   ;;  %v8171_v15 = vld [vmem:[%s11392_s1 + $0x2048] ss:$24 sps:$4 sm:$0xff]  }
 0x678   :  { %5903 = vmatprep.subr.bf16.mxu0 %v8092_v26  ;;  %6067 = vmatprep.subr.bf16.mxu1 %v8095_v63  ;;  %v8173_v26 = vld [vmem:[%s11392_s1 + $0x204c] ss:$24 sps:$4 sm:$0xff]   ;;  %v3545_v63 = vmax.f32 %v9576_v17, 0.0 }
 0x679   :  { %v8176_v17 = vld [vmem:[%s11392_s1 + $0x2074] ss:$24 sps:$4 sm:$0xff]  }
 0x67b   :  { %5904 = vmatpush1.bf16.msra.mxu0 %v8090_v0  ;;  %6068 = vmatpush1.bf16.msra.mxu1 %v8093_v1  ;;  %v8168_v0 = vld [vmem:[%s11392_s1 + $0x2040] ss:$24 sps:$4 sm:$0xff]   ;;  %v10366_v1 = vpack.c.bf16 %v3542_v3, %v3542_v3  ;;  %v8248_v3 = vld [vmem:[%s11392_s1 + $0x22b4] ss:$24 sps:$4 sm:$0xff]  }
 0x67c   :  { %5905 = vmatprep.subr.bf16.mxu0 %v8098_v2  ;;  %6069 = vmatprep.subr.bf16.mxu1 %v8101_v10  ;;  %v10371_v2 = vpack.c.bf16 %v3545_v63, %v3545_v63  ;;  %v8179_v10 = vld [vmem:[%s11392_s1 + $0x207c] ss:$24 sps:$4 sm:$0xff]   ;;  %v8249_v63 = vld [vmem:[%s11392_s1 + $0x22b8] ss:$24 sps:$4 sm:$0xff]  }
 0x67f   :  { %5906 = vmatpush1.bf16.msra.mxu0 %v8096_v11  ;;  %6070 = vmatpush1.bf16.msra.mxu1 %v8099_v34  ;;  %v8174_v11 = vld [vmem:[%s11392_s1 + $0x2070] ss:$24 sps:$4 sm:$0xff]  }
 0x680   :  { %5907 = vmatprep.subr.bf16.mxu0 %v8104_v14  ;;  %6071 = vmatprep.subr.bf16.mxu1 %v8107_v20  ;;  %v8177_v34 = vld [vmem:[%s11392_s1 + $0x2078] ss:$24 sps:$4 sm:$0xff]   ;;  %v8182_v14 = vld [vmem:[%s11392_s1 + $0x20a4] ss:$24 sps:$4 sm:$0xff]  }
 0x681   :  { %v8185_v20 = vld [vmem:[%s11392_s1 + $0x20ac] ss:$24 sps:$4 sm:$0xff]  }
 0x683   :  { %5908 = vmatpush1.bf16.msra.mxu0 %v8102_v21  ;;  %6072 = vmatpush1.bf16.msra.mxu1 %v8105_v22  ;;  %v8180_v21 = vld [vmem:[%s11392_s1 + $0x20a0] ss:$24 sps:$4 sm:$0xff]  }
 0x684   :  { %5909 = vmatprep.subr.bf16.mxu0 %v8110_v23  ;;  %6073 = vmatprep.subr.bf16.mxu1 %v8113_v24  ;;  %v8183_v22 = vld [vmem:[%s11392_s1 + $0x20a8] ss:$24 sps:$4 sm:$0xff]   ;;  %v8188_v23 = vld [vmem:[%s11392_s1 + $0x20d4] ss:$24 sps:$4 sm:$0xff]  }
 0x685   :  { %v8191_v24 = vld [vmem:[%s11392_s1 + $0x20dc] ss:$24 sps:$4 sm:$0xff]  }
 0x687   :  { %5910 = vmatpush1.bf16.msra.mxu0 %v8108_v27  ;;  %6074 = vmatpush1.bf16.msra.mxu1 %v8111_v28  ;;  %v8186_v27 = vld [vmem:[%s11392_s1 + $0x20d0] ss:$24 sps:$4 sm:$0xff]  }
 0x688   :  { %5911 = vmatprep.subr.bf16.mxu0 %v8116_v29  ;;  %6075 = vmatprep.subr.bf16.mxu1 %v8119_v43  ;;  %v8189_v28 = vld [vmem:[%s11392_s1 + $0x20d8] ss:$24 sps:$4 sm:$0xff]   ;;  %v8194_v29 = vld [vmem:[%s11392_s1 + $0x2104] ss:$24 sps:$4 sm:$0xff]  }
 0x689   :  { %v8197_v43 = vld [vmem:[%s11392_s1 + $0x210c] ss:$24 sps:$4 sm:$0xff]  }
 0x68b   :  { %5912 = vmatpush1.bf16.msra.mxu0 %v8114_v30  ;;  %6076 = vmatpush1.bf16.msra.mxu1 %v8117_v31  ;;  %v8192_v30 = vld [vmem:[%s11392_s1 + $0x2100] ss:$24 sps:$4 sm:$0xff]  }
 0x68c   :  { %5913 = vmatprep.subr.bf16.mxu0 %v8122_v32  ;;  %6077 = vmatprep.subr.bf16.mxu1 %v8125_v25  ;;  %v8195_v31 = vld [vmem:[%s11392_s1 + $0x2108] ss:$24 sps:$4 sm:$0xff]   ;;  %v8200_v32 = vld [vmem:[%s11392_s1 + $0x2134] ss:$24 sps:$4 sm:$0xff]  }
 0x68d   :  { %v8203_v25 = vld [vmem:[%s11392_s1 + $0x213c] ss:$24 sps:$4 sm:$0xff]  }
 0x68f   :  { %5914 = vmatpush1.bf16.msra.mxu0 %v8120_v33  ;;  %6078 = vmatpush1.bf16.msra.mxu1 %v8123_v35  ;;  %v8198_v33 = vld [vmem:[%s11392_s1 + $0x2130] ss:$24 sps:$4 sm:$0xff]  }
 0x690   :  { %5915 = vmatprep.subr.bf16.mxu0 %v8128_v36  ;;  %6079 = vmatprep.subr.bf16.mxu1 %v8131_v37  ;;  %v8201_v35 = vld [vmem:[%s11392_s1 + $0x2138] ss:$24 sps:$4 sm:$0xff]   ;;  %v8206_v36 = vld [vmem:[%s11392_s1 + $0x2164] ss:$24 sps:$4 sm:$0xff]  }
 0x691   :  { %v8209_v37 = vld [vmem:[%s11392_s1 + $0x216c] ss:$24 sps:$4 sm:$0xff]  }
 0x693   :  { %5916 = vmatpush1.bf16.msra.mxu0 %v8126_v38  ;;  %6080 = vmatpush1.bf16.msra.mxu1 %v8129_v39  ;;  %v8204_v38 = vld [vmem:[%s11392_s1 + $0x2160] ss:$24 sps:$4 sm:$0xff]  }
 0x694   :  { %5917 = vmatprep.subr.bf16.mxu0 %v8134_v40  ;;  %6081 = vmatprep.subr.bf16.mxu1 %v8137_v55  ;;  %v8207_v39 = vld [vmem:[%s11392_s1 + $0x2168] ss:$24 sps:$4 sm:$0xff]   ;;  %v8212_v40 = vld [vmem:[%s11392_s1 + $0x2194] ss:$24 sps:$4 sm:$0xff]  }
 0x695   :  { %v8215_v55 = vld [vmem:[%s11392_s1 + $0x219c] ss:$24 sps:$4 sm:$0xff]  }
 0x697   :  { %5918 = vmatpush1.bf16.msra.mxu0 %v8132_v41  ;;  %6082 = vmatpush1.bf16.msra.mxu1 %v8135_v18  ;;  %v8210_v41 = vld [vmem:[%s11392_s1 + $0x2190] ss:$24 sps:$4 sm:$0xff]  }
 0x698   :  { %5919 = vmatprep.subr.bf16.mxu0 %v8140_v42  ;;  %6083 = vmatprep.subr.bf16.mxu1 %v8143_v44  ;;  %v8213_v18 = vld [vmem:[%s11392_s1 + $0x2198] ss:$24 sps:$4 sm:$0xff]   ;;  %v8218_v42 = vld [vmem:[%s11392_s1 + $0x21c4] ss:$24 sps:$4 sm:$0xff]  }
 0x699   :  { %v8221_v44 = vld [vmem:[%s11392_s1 + $0x21cc] ss:$24 sps:$4 sm:$0xff]  }
 0x69b   :  { %5920 = vmatpush1.bf16.msra.mxu0 %v8138_v45  ;;  %6084 = vmatpush1.bf16.msra.mxu1 %v8141_v46  ;;  %v8216_v45 = vld [vmem:[%s11392_s1 + $0x21c0] ss:$24 sps:$4 sm:$0xff]  }
 0x69c   :  { %5921 = vmatprep.subr.bf16.mxu0 %v8146_v47  ;;  %6085 = vmatprep.subr.bf16.mxu1 %v8149_v48  ;;  %v8219_v46 = vld [vmem:[%s11392_s1 + $0x21c8] ss:$24 sps:$4 sm:$0xff]   ;;  %v8224_v47 = vld [vmem:[%s11392_s1 + $0x21f4] ss:$24 sps:$4 sm:$0xff]  }
 0x69d   :  { %v8227_v48 = vld [vmem:[%s11392_s1 + $0x21fc] ss:$24 sps:$4 sm:$0xff]  }
 0x69f   :  { %5922 = vmatpush1.bf16.msra.mxu0 %v8144_v49  ;;  %6086 = vmatpush1.bf16.msra.mxu1 %v8147_v50  ;;  %v8222_v49 = vld [vmem:[%s11392_s1 + $0x21f0] ss:$24 sps:$4 sm:$0xff]  }
 0x6a0   :  { %5923 = vmatprep.subr.bf16.mxu0 %v8152_v51  ;;  %6087 = vmatprep.subr.bf16.mxu1 %v8155_v52  ;;  %v8225_v50 = vld [vmem:[%s11392_s1 + $0x21f8] ss:$24 sps:$4 sm:$0xff]   ;;  %v8230_v51 = vld [vmem:[%s11392_s1 + $0x2224] ss:$24 sps:$4 sm:$0xff]  }
 0x6a1   :  { %v8233_v52 = vld [vmem:[%s11392_s1 + $0x222c] ss:$24 sps:$4 sm:$0xff]  }
 0x6a3   :  { %5924 = vmatpush1.bf16.msra.mxu0 %v8150_v4  ;;  %6088 = vmatpush1.bf16.msra.mxu1 %v8153_v53  ;;  %v8228_v4 = vld [vmem:[%s11392_s1 + $0x2220] ss:$24 sps:$4 sm:$0xff]  }
 0x6a4   :  { %5925 = vmatprep.subr.bf16.mxu0 %v8158_v54  ;;  %6089 = vmatprep.subr.bf16.mxu1 %v8161_v8  ;;  %v8231_v53 = vld [vmem:[%s11392_s1 + $0x2228] ss:$24 sps:$4 sm:$0xff]   ;;  %v8236_v54 = vld [vmem:[%s11392_s1 + $0x2254] ss:$24 sps:$4 sm:$0xff]  }
 0x6a5   :  { %v8239_v8 = vld [vmem:[%s11392_s1 + $0x225c] ss:$24 sps:$4 sm:$0xff]  }
 0x6a7   :  { %5926 = vmatpush1.bf16.msra.mxu0 %v8156_v56  ;;  %6090 = vmatpush1.bf16.msra.mxu1 %v8159_v19  ;;  %v8234_v56 = vld [vmem:[%s11392_s1 + $0x2250] ss:$24 sps:$4 sm:$0xff]  }
 0x6a8   :  { %5927 = vmatprep.subr.bf16.mxu0 %v8164_v58  ;;  %6091 = vmatprep.subr.bf16.mxu1 %v8167_v59  ;;  %v8237_v19 = vld [vmem:[%s11392_s1 + $0x2258] ss:$24 sps:$4 sm:$0xff]   ;;  %v8242_v58 = vld [vmem:[%s11392_s1 + $0x2284] ss:$24 sps:$4 sm:$0xff]  }
 0x6a9   :  { %v8245_v59 = vld [vmem:[%s11392_s1 + $0x228c] ss:$24 sps:$4 sm:$0xff]  }
 0x6ab   :  { %5928 = vmatpush1.bf16.msra.mxu0 %v8162_v60  ;;  %6092 = vmatpush1.bf16.msra.mxu1 %v8165_v61  ;;  %v8240_v60 = vld [vmem:[%s11392_s1 + $0x2280] ss:$24 sps:$4 sm:$0xff]  }
 0x6ac   :  { %5938 = vmatprep.subr.bf16.mxu0 %v8170_v62  ;;  %6102 = vmatprep.subr.bf16.mxu1 %v8173_v26  ;;  %v8243_v61 = vld [vmem:[%s11392_s1 + $0x2288] ss:$24 sps:$4 sm:$0xff]   ;;  %v8251_v62 = vld [vmem:[%s11392_s1 + $0x22bc] ss:$24 sps:$4 sm:$0xff]  }
 0x6ad   :  { %v8246_v26 = vld [vmem:[%s11392_s1 + $0x22b0] ss:$24 sps:$4 sm:$0xff]  }
 0x6ae   :  { %5930 = vmatmul.mubr.bf16.vlgmr.msra.gmra.mrb[12].mxu0 %v10366_v1  ;;  %6094 = vmatmul.mubr.bf16.vlgmr.msra.gmra.mrb[28].mxu1 %v10366_v1 }
 0x6af   :  { %5939 = vmatpush1.bf16.msra.mxu0 %v8168_v0  ;;  %5970 = vmatprep.mubr.bf16.mxu0 %v10371_v2  ;;  %v8254_v0 = vld [vmem:[%s11392_s1 + $0x22e4] ss:$24 sps:$4 sm:$0xff]  }
 0x6b0   :  { %6103 = vmatpush1.bf16.msra.mxu1 %v8171_v15  ;;  %6134 = vmatprep.mubr.bf16.mxu1 %v10371_v2  ;;  %v8257_v15 = vld [vmem:[%s11392_s1 + $0x22ec] ss:$24 sps:$4 sm:$0xff]  }
 0x6b1   :  { %5940 = vmatprep.subr.bf16.mxu0 %v8176_v17  ;;  %6104 = vmatprep.subr.bf16.mxu1 %v8179_v10  ;;  %v8252_v17 = vld [vmem:[%s11392_s1 + $0x22e0] ss:$24 sps:$4 sm:$0xff]  }
 0x6b2   :  { %v8255_v10 = vld [vmem:[%s11392_s1 + $0x22e8] ss:$24 sps:$4 sm:$0xff]  }
 0x6b3   :  { %5941 = vmatpush1.bf16.msra.mxu0 %v8174_v11  ;;  %v8260_v11 = vld [vmem:[%s11392_s1 + $0x2314] ss:$24 sps:$4 sm:$0xff]  }
 0x6b4   :  { %6105 = vmatpush1.bf16.msra.mxu1 %v8177_v34  ;;  %5942 = vmatprep.subr.bf16.mxu0 %v8182_v14  ;;  %v8263_v34 = vld [vmem:[%s11392_s1 + $0x231c] ss:$24 sps:$4 sm:$0xff]   ;;  %v8258_v14 = vld [vmem:[%s11392_s1 + $0x2310] ss:$24 sps:$4 sm:$0xff]  }
 0x6b5   :  { %6106 = vmatprep.subr.bf16.mxu1 %v8185_v20  ;;  %v3544_v20 = vmax.f32 %v9574_v12, 0.0  ;;  %v8264_v12 = vld [vmem:[%s11392_s1 + $0x2340] ss:$24 sps:$4 sm:$0xff]  }
 0x6b7   :  { %5943 = vmatpush1.bf16.msra.mxu0 %v8180_v21  ;;  %v8261_v21 = vld [vmem:[%s11392_s1 + $0x2318] ss:$24 sps:$4 sm:$0xff]  }
 0x6b8   :  { %6107 = vmatpush1.bf16.msra.mxu1 %v8183_v22  ;;  %5944 = vmatprep.subr.bf16.mxu0 %v8188_v23  ;;  %v8266_v22 = vld [vmem:[%s11392_s1 + $0x2344] ss:$24 sps:$4 sm:$0xff]  }
 0x6b9   :  { %6108 = vmatprep.subr.bf16.mxu1 %v8191_v24  ;;  %v8269_v23 = vld [vmem:[%s11392_s1 + $0x234c] ss:$24 sps:$4 sm:$0xff]   ;;  %v10567_v24 = vpack.c.bf16 %v3544_v20, %v3544_v20 }
 0x6ba   :  { %v8344_v20 = vld [vmem:[%s11392_s1 + $0x25b4] ss:$24 sps:$4 sm:$0xff]  }
 0x6bb   :  { %5945 = vmatpush1.bf16.msra.mxu0 %v8186_v27  ;;  %v8267_v27 = vld [vmem:[%s11392_s1 + $0x2348] ss:$24 sps:$4 sm:$0xff]  }
 0x6bc   :  { %6109 = vmatpush1.bf16.msra.mxu1 %v8189_v28  ;;  %5946 = vmatprep.subr.bf16.mxu0 %v8194_v29  ;;  %v8272_v28 = vld [vmem:[%s11392_s1 + $0x2374] ss:$24 sps:$4 sm:$0xff]  }
 0x6bd   :  { %6110 = vmatprep.subr.bf16.mxu1 %v8197_v43  ;;  %v8275_v29 = vld [vmem:[%s11392_s1 + $0x237c] ss:$24 sps:$4 sm:$0xff]   ;;  %v8270_v43 = vld [vmem:[%s11392_s1 + $0x2370] ss:$24 sps:$4 sm:$0xff]  }
 0x6bf   :  { %5947 = vmatpush1.bf16.msra.mxu0 %v8192_v30  ;;  %v8273_v30 = vld [vmem:[%s11392_s1 + $0x2378] ss:$24 sps:$4 sm:$0xff]  }
 0x6c0   :  { %6111 = vmatpush1.bf16.msra.mxu1 %v8195_v31  ;;  %5948 = vmatprep.subr.bf16.mxu0 %v8200_v32  ;;  %v8278_v31 = vld [vmem:[%s11392_s1 + $0x23a4] ss:$24 sps:$4 sm:$0xff]  }
 0x6c1   :  { %6112 = vmatprep.subr.bf16.mxu1 %v8203_v25  ;;  %v8281_v32 = vld [vmem:[%s11392_s1 + $0x23ac] ss:$24 sps:$4 sm:$0xff]   ;;  %v8276_v25 = vld [vmem:[%s11392_s1 + $0x23a0] ss:$24 sps:$4 sm:$0xff]  }
 0x6c3   :  { %5949 = vmatpush1.bf16.msra.mxu0 %v8198_v33  ;;  %v8279_v33 = vld [vmem:[%s11392_s1 + $0x23a8] ss:$24 sps:$4 sm:$0xff]  }
 0x6c4   :  { %6113 = vmatpush1.bf16.msra.mxu1 %v8201_v35  ;;  %5950 = vmatprep.subr.bf16.mxu0 %v8206_v36  ;;  %v8284_v35 = vld [vmem:[%s11392_s1 + $0x23d4] ss:$24 sps:$4 sm:$0xff]  }
 0x6c5   :  { %6114 = vmatprep.subr.bf16.mxu1 %v8209_v37  ;;  %v8287_v36 = vld [vmem:[%s11392_s1 + $0x23dc] ss:$24 sps:$4 sm:$0xff]   ;;  %v8282_v37 = vld [vmem:[%s11392_s1 + $0x23d0] ss:$24 sps:$4 sm:$0xff]  }
 0x6c7   :  { %5951 = vmatpush1.bf16.msra.mxu0 %v8204_v38  ;;  %v8285_v38 = vld [vmem:[%s11392_s1 + $0x23d8] ss:$24 sps:$4 sm:$0xff]  }
 0x6c8   :  { %6115 = vmatpush1.bf16.msra.mxu1 %v8207_v39  ;;  %5952 = vmatprep.subr.bf16.mxu0 %v8212_v40  ;;  %v8290_v39 = vld [vmem:[%s11392_s1 + $0x2404] ss:$24 sps:$4 sm:$0xff]  }
 0x6c9   :  { %6116 = vmatprep.subr.bf16.mxu1 %v8215_v55  ;;  %v8293_v40 = vld [vmem:[%s11392_s1 + $0x240c] ss:$24 sps:$4 sm:$0xff]   ;;  %v8288_v55 = vld [vmem:[%s11392_s1 + $0x2400] ss:$24 sps:$4 sm:$0xff]  }
 0x6cb   :  { %5953 = vmatpush1.bf16.msra.mxu0 %v8210_v41  ;;  %v8291_v41 = vld [vmem:[%s11392_s1 + $0x2408] ss:$24 sps:$4 sm:$0xff]  }
 0x6cc   :  { %6117 = vmatpush1.bf16.msra.mxu1 %v8213_v18  ;;  %5954 = vmatprep.subr.bf16.mxu0 %v8218_v42  ;;  %v8296_v18 = vld [vmem:[%s11392_s1 + $0x2434] ss:$24 sps:$4 sm:$0xff]  }
 0x6cd   :  { %6118 = vmatprep.subr.bf16.mxu1 %v8221_v44  ;;  %v8299_v42 = vld [vmem:[%s11392_s1 + $0x243c] ss:$24 sps:$4 sm:$0xff]   ;;  %v8294_v44 = vld [vmem:[%s11392_s1 + $0x2430] ss:$24 sps:$4 sm:$0xff]  }
 0x6cf   :  { %5955 = vmatpush1.bf16.msra.mxu0 %v8216_v45  ;;  %v8297_v45 = vld [vmem:[%s11392_s1 + $0x2438] ss:$24 sps:$4 sm:$0xff]  }
 0x6d0   :  { %6119 = vmatpush1.bf16.msra.mxu1 %v8219_v46  ;;  %5956 = vmatprep.subr.bf16.mxu0 %v8224_v47  ;;  %v8302_v46 = vld [vmem:[%s11392_s1 + $0x2464] ss:$24 sps:$4 sm:$0xff]  }
 0x6d1   :  { %6120 = vmatprep.subr.bf16.mxu1 %v8227_v48  ;;  %v8305_v47 = vld [vmem:[%s11392_s1 + $0x246c] ss:$24 sps:$4 sm:$0xff]   ;;  %v8300_v48 = vld [vmem:[%s11392_s1 + $0x2460] ss:$24 sps:$4 sm:$0xff]  }
 0x6d3   :  { %5957 = vmatpush1.bf16.msra.mxu0 %v8222_v49  ;;  %v8303_v49 = vld [vmem:[%s11392_s1 + $0x2468] ss:$24 sps:$4 sm:$0xff]  }
 0x6d4   :  { %6121 = vmatpush1.bf16.msra.mxu1 %v8225_v50  ;;  %5958 = vmatprep.subr.bf16.mxu0 %v8230_v51  ;;  %v8308_v50 = vld [vmem:[%s11392_s1 + $0x2494] ss:$24 sps:$4 sm:$0xff]  }
 0x6d5   :  { %6122 = vmatprep.subr.bf16.mxu1 %v8233_v52  ;;  %v8311_v51 = vld [vmem:[%s11392_s1 + $0x249c] ss:$24 sps:$4 sm:$0xff]   ;;  %v8306_v52 = vld [vmem:[%s11392_s1 + $0x2490] ss:$24 sps:$4 sm:$0xff]  }
 0x6d7   :  { %5959 = vmatpush1.bf16.msra.mxu0 %v8228_v4  ;;  %v8309_v4 = vld [vmem:[%s11392_s1 + $0x2498] ss:$24 sps:$4 sm:$0xff]  }
 0x6d8   :  { %6123 = vmatpush1.bf16.msra.mxu1 %v8231_v53  ;;  %5960 = vmatprep.subr.bf16.mxu0 %v8236_v54  ;;  %v8314_v53 = vld [vmem:[%s11392_s1 + $0x24c4] ss:$24 sps:$4 sm:$0xff]  }
 0x6d9   :  { %6124 = vmatprep.subr.bf16.mxu1 %v8239_v8  ;;  %v8317_v54 = vld [vmem:[%s11392_s1 + $0x24cc] ss:$24 sps:$4 sm:$0xff]   ;;  %v8312_v8 = vld [vmem:[%s11392_s1 + $0x24c0] ss:$24 sps:$4 sm:$0xff]  }
 0x6db   :  { %5961 = vmatpush1.bf16.msra.mxu0 %v8234_v56  ;;  %v8315_v56 = vld [vmem:[%s11392_s1 + $0x24c8] ss:$24 sps:$4 sm:$0xff]  }
 0x6dc   :  { %6125 = vmatpush1.bf16.msra.mxu1 %v8237_v19  ;;  %5962 = vmatprep.subr.bf16.mxu0 %v8242_v58  ;;  %v8320_v19 = vld [vmem:[%s11392_s1 + $0x24f4] ss:$24 sps:$4 sm:$0xff]  }
 0x6dd   :  { %6126 = vmatprep.subr.bf16.mxu1 %v8245_v59  ;;  %v8323_v58 = vld [vmem:[%s11392_s1 + $0x24fc] ss:$24 sps:$4 sm:$0xff]   ;;  %v8318_v59 = vld [vmem:[%s11392_s1 + $0x24f0] ss:$24 sps:$4 sm:$0xff]  }
 0x6df   :  { %5963 = vmatpush1.bf16.msra.mxu0 %v8240_v60  ;;  %v8321_v60 = vld [vmem:[%s11392_s1 + $0x24f8] ss:$24 sps:$4 sm:$0xff]  }
 0x6e0   :  { %6127 = vmatpush1.bf16.msra.mxu1 %v8243_v61  ;;  %5964 = vmatprep.subr.bf16.mxu0 %v8248_v3  ;;  %v8326_v61 = vld [vmem:[%s11392_s1 + $0x2524] ss:$24 sps:$4 sm:$0xff]  }
 0x6e1   :  { %6128 = vmatprep.subr.bf16.mxu1 %v8251_v62  ;;  %v8329_v3 = vld [vmem:[%s11392_s1 + $0x252c] ss:$24 sps:$4 sm:$0xff]   ;;  %v8324_v62 = vld [vmem:[%s11392_s1 + $0x2520] ss:$24 sps:$4 sm:$0xff]  }
 0x6e3   :  { %5965 = vmatpush1.bf16.msra.mxu0 %v8246_v26  ;;  %v8327_v26 = vld [vmem:[%s11392_s1 + $0x2528] ss:$24 sps:$4 sm:$0xff]  }
 0x6e4   :  { %6129 = vmatpush1.bf16.msra.mxu1 %v8249_v63  ;;  %5966 = vmatprep.subr.bf16.mxu0 %v8254_v0  ;;  %v8332_v63 = vld [vmem:[%s11392_s1 + $0x2554] ss:$24 sps:$4 sm:$0xff]  }
 0x6e5   :  { %6130 = vmatprep.subr.bf16.mxu1 %v8257_v15  ;;  %v8335_v0 = vld [vmem:[%s11392_s1 + $0x255c] ss:$24 sps:$4 sm:$0xff]   ;;  %v8330_v15 = vld [vmem:[%s11392_s1 + $0x2550] ss:$24 sps:$4 sm:$0xff]  }
 0x6e7   :  { %5967 = vmatpush1.bf16.msra.mxu0 %v8252_v17  ;;  %v8333_v17 = vld [vmem:[%s11392_s1 + $0x2558] ss:$24 sps:$4 sm:$0xff]  }
 0x6e8   :  { %6131 = vmatpush1.bf16.msra.mxu1 %v8255_v10  ;;  %5968 = vmatprep.subr.bf16.mxu0 %v8260_v11  ;;  %v8338_v10 = vld [vmem:[%s11392_s1 + $0x2584] ss:$24 sps:$4 sm:$0xff]  }
 0x6e9   :  { %6132 = vmatprep.subr.bf16.mxu1 %v8263_v34  ;;  %v8341_v11 = vld [vmem:[%s11392_s1 + $0x258c] ss:$24 sps:$4 sm:$0xff]   ;;  %v8336_v34 = vld [vmem:[%s11392_s1 + $0x2580] ss:$24 sps:$4 sm:$0xff]  }
 0x6eb   :  { %5969 = vmatpush1.bf16.msra.mxu0 %v8258_v14  ;;  %v8339_v14 = vld [vmem:[%s11392_s1 + $0x2588] ss:$24 sps:$4 sm:$0xff]  }
 0x6ec   :  { %6133 = vmatpush1.bf16.msra.mxu1 %v8261_v21  ;;  %5979 = vmatprep.subr.bf16.mxu0 %v8266_v22  ;;  %v8347_v21 = vld [vmem:[%s11392_s1 + $0x25bc] ss:$24 sps:$4 sm:$0xff]   ;;  %v8342_v22 = vld [vmem:[%s11392_s1 + $0x25b0] ss:$24 sps:$4 sm:$0xff]  }
 0x6ed   :  { %6143 = vmatprep.subr.bf16.mxu1 %v8269_v23  ;;  %v8345_v23 = vld [vmem:[%s11392_s1 + $0x25b8] ss:$24 sps:$4 sm:$0xff]  }
 0x6ee   :  { %5971 = vmatmul.mubr.bf16.vlgmr.msra.gmra.mrb[12].mxu0 %v10567_v24 }
 0x6ef   :  { %6135 = vmatmul.mubr.bf16.vlgmr.msra.gmra.mrb[28].mxu1 %v10567_v24  ;;  %5980 = vmatpush1.bf16.msra.mxu0 %v8264_v12  ;;  %v8350_v12 = vld [vmem:[%s11392_s1 + $0x25e4] ss:$24 sps:$4 sm:$0xff]  }
 0x6f0   :  { %6144 = vmatpush1.bf16.msra.mxu1 %v8267_v27  ;;  %5981 = vmatprep.subr.bf16.mxu0 %v8272_v28  ;;  %v8353_v27 = vld [vmem:[%s11392_s1 + $0x25ec] ss:$24 sps:$4 sm:$0xff]   ;;  %v8348_v28 = vld [vmem:[%s11392_s1 + $0x25e0] ss:$24 sps:$4 sm:$0xff]  }
 0x6f1   :  { %6145 = vmatprep.subr.bf16.mxu1 %v8275_v29  ;;  %v8351_v29 = vld [vmem:[%s11392_s1 + $0x25e8] ss:$24 sps:$4 sm:$0xff]  }
 0x6f3   :  { %5982 = vmatpush1.bf16.msra.mxu0 %v8270_v43  ;;  %v8356_v43 = vld [vmem:[%s11392_s1 + $0x2614] ss:$24 sps:$4 sm:$0xff]  }
 0x6f4   :  { %6146 = vmatpush1.bf16.msra.mxu1 %v8273_v30  ;;  %5983 = vmatprep.subr.bf16.mxu0 %v8278_v31  ;;  %v8359_v30 = vld [vmem:[%s11392_s1 + $0x261c] ss:$24 sps:$4 sm:$0xff]   ;;  %v8354_v31 = vld [vmem:[%s11392_s1 + $0x2610] ss:$24 sps:$4 sm:$0xff]  }
 0x6f5   :  { %6147 = vmatprep.subr.bf16.mxu1 %v8281_v32  ;;  %v8357_v32 = vld [vmem:[%s11392_s1 + $0x2618] ss:$24 sps:$4 sm:$0xff]  }
 0x6f7   :  { %5984 = vmatpush1.bf16.msra.mxu0 %v8276_v25  ;;  %v8362_v25 = vld [vmem:[%s11392_s1 + $0x2644] ss:$24 sps:$4 sm:$0xff]  }
 0x6f8   :  { %6148 = vmatpush1.bf16.msra.mxu1 %v8279_v33  ;;  %5985 = vmatprep.subr.bf16.mxu0 %v8284_v35  ;;  %v8365_v33 = vld [vmem:[%s11392_s1 + $0x264c] ss:$24 sps:$4 sm:$0xff]  }
 0x6f9   :  { %6149 = vmatprep.subr.bf16.mxu1 %v8287_v36  ;;  %v6754_v35 = vld [vmem:[%s11394_s2 + $0x6] ss:$8 sm:$0xf] }
 0x6fa   :  { %v2721_v36 = vrot.slane %v6754_v35, %v9418_v5 }
 0x6fb   :  { %5986 = vmatpush1.bf16.msra.mxu0 %v8282_v37  ;;  %v2729_v37 = vrot.slane %v6754_v35, %v9565_v7 }
 0x6fc   :  { %6150 = vmatpush1.bf16.msra.mxu1 %v8285_v38  ;;  %5987 = vmatprep.subr.bf16.mxu0 %v8290_v39  ;;  %v2725_v38 = vrot.slane %v6754_v35, %v9421_v6  ;;  %v2733_v39 = vrot.slane %v6754_v35, %v9568_v9  ;;  %v8413_v35 = vld [vmem:[%s11392_s1 + $0x27cc] ss:$24 sps:$4 sm:$0xff]  }
 0x6fd   :  { %6151 = vmatprep.subr.bf16.mxu1 %v8293_v40 }
 0x6ff   :  { %5988 = vmatpush1.bf16.msra.mxu0 %v8288_v55 }
 0x700   :  { %6152 = vmatpush1.bf16.msra.mxu1 %v8291_v41  ;;  %5989 = vmatprep.subr.bf16.mxu0 %v8296_v18 }
 0x701   :  { %6153 = vmatprep.subr.bf16.mxu1 %v8299_v42 }
 0x703   :  { %5990 = vmatpush1.bf16.msra.mxu0 %v8294_v44 }
 0x704   :  { %6154 = vmatpush1.bf16.msra.mxu1 %v8297_v45  ;;  %5991 = vmatprep.subr.bf16.mxu0 %v8302_v46 }
 0x705   :  { %6155 = vmatprep.subr.bf16.mxu1 %v8305_v47 }
 0x707   :  { %5992 = vmatpush1.bf16.msra.mxu0 %v8300_v48 }
 0x708   :  { %6156 = vmatpush1.bf16.msra.mxu1 %v8303_v49  ;;  %5993 = vmatprep.subr.bf16.mxu0 %v8308_v50 }
 0x709   :  { %6157 = vmatprep.subr.bf16.mxu1 %v8311_v51 }
 0x70b   :  { %5994 = vmatpush1.bf16.msra.mxu0 %v8306_v52 }
 0x70c   :  { %6158 = vmatpush1.bf16.msra.mxu1 %v8309_v4  ;;  %5995 = vmatprep.subr.bf16.mxu0 %v8314_v53 }
 0x70d   :  { %6159 = vmatprep.subr.bf16.mxu1 %v8317_v54  ;;  %v8360_v54 = vld [vmem:[%s11392_s1 + $0x2640] ss:$24 sps:$4 sm:$0xff]  }
 0x70f   :  { %5996 = vmatpush1.bf16.msra.mxu0 %v8312_v8  ;;  %v8363_v8 = vld [vmem:[%s11392_s1 + $0x2648] ss:$24 sps:$4 sm:$0xff]  }
 0x710   :  { %6160 = vmatpush1.bf16.msra.mxu1 %v8315_v56  ;;  %5997 = vmatprep.subr.bf16.mxu0 %v8320_v19  ;;  %v8368_v19 = vld [vmem:[%s11392_s1 + $0x2674] ss:$24 sps:$4 sm:$0xff]  }
 0x711   :  { %6161 = vmatprep.subr.bf16.mxu1 %v8323_v58  ;;  %v8371_v58 = vld [vmem:[%s11392_s1 + $0x267c] ss:$24 sps:$4 sm:$0xff]  }
 0x713   :  { %5998 = vmatpush1.bf16.msra.mxu0 %v8318_v59 }
 0x714   :  { %6162 = vmatpush1.bf16.msra.mxu1 %v8321_v60  ;;  %5999 = vmatprep.subr.bf16.mxu0 %v8326_v61  ;;  %v8366_v60 = vld [vmem:[%s11392_s1 + $0x2670] ss:$24 sps:$4 sm:$0xff]  }
 0x715   :  { %6163 = vmatprep.subr.bf16.mxu1 %v8329_v3  ;;  %v8369_v61 = vld [vmem:[%s11392_s1 + $0x2678] ss:$24 sps:$4 sm:$0xff]   ;;  %v8374_v3 = vld [vmem:[%s11392_s1 + $0x26a4] ss:$24 sps:$4 sm:$0xff]  }
 0x717   :  { %6000 = vmatpush1.bf16.msra.mxu0 %v8324_v62  ;;  %v8377_v62 = vld [vmem:[%s11392_s1 + $0x26ac] ss:$24 sps:$4 sm:$0xff]  }
 0x718   :  { %6164 = vmatpush1.bf16.msra.mxu1 %v8327_v26  ;;  %6001 = vmatprep.subr.bf16.mxu0 %v8332_v63  ;;  %v8372_v26 = vld [vmem:[%s11392_s1 + $0x26a0] ss:$24 sps:$4 sm:$0xff]  }
 0x719   :  { %6165 = vmatprep.subr.bf16.mxu1 %v8335_v0  ;;  %v8375_v63 = vld [vmem:[%s11392_s1 + $0x26a8] ss:$24 sps:$4 sm:$0xff]   ;;  %v8380_v0 = vld [vmem:[%s11392_s1 + $0x26d4] ss:$24 sps:$4 sm:$0xff]  }
 0x71b   :  { %6002 = vmatpush1.bf16.msra.mxu0 %v8330_v15  ;;  %v8383_v15 = vld [vmem:[%s11392_s1 + $0x26dc] ss:$24 sps:$4 sm:$0xff]  }
 0x71c   :  { %6166 = vmatpush1.bf16.msra.mxu1 %v8333_v17  ;;  %6003 = vmatprep.subr.bf16.mxu0 %v8338_v10  ;;  %v8378_v17 = vld [vmem:[%s11392_s1 + $0x26d0] ss:$24 sps:$4 sm:$0xff]  }
 0x71d   :  { %6167 = vmatprep.subr.bf16.mxu1 %v8341_v11  ;;  %v8381_v10 = vld [vmem:[%s11392_s1 + $0x26d8] ss:$24 sps:$4 sm:$0xff]   ;;  %v8386_v11 = vld [vmem:[%s11392_s1 + $0x2704] ss:$24 sps:$4 sm:$0xff]  }
 0x71f   :  { %6004 = vmatpush1.bf16.msra.mxu0 %v8336_v34  ;;  %v8389_v34 = vld [vmem:[%s11392_s1 + $0x270c] ss:$24 sps:$4 sm:$0xff]  }
 0x720   :  { %6168 = vmatpush1.bf16.msra.mxu1 %v8339_v14  ;;  %6005 = vmatprep.subr.bf16.mxu0 %v8344_v20  ;;  %v8384_v14 = vld [vmem:[%s11392_s1 + $0x2700] ss:$24 sps:$4 sm:$0xff]  }
 0x721   :  { %6169 = vmatprep.subr.bf16.mxu1 %v8347_v21  ;;  %v8387_v20 = vld [vmem:[%s11392_s1 + $0x2708] ss:$24 sps:$4 sm:$0xff]   ;;  %v8392_v21 = vld [vmem:[%s11392_s1 + $0x2734] ss:$24 sps:$4 sm:$0xff]  }
 0x723   :  { %6006 = vmatpush1.bf16.msra.mxu0 %v8342_v22  ;;  %v8395_v22 = vld [vmem:[%s11392_s1 + $0x273c] ss:$24 sps:$4 sm:$0xff]  }
 0x724   :  { %6170 = vmatpush1.bf16.msra.mxu1 %v8345_v23  ;;  %6007 = vmatprep.subr.bf16.mxu0 %v8350_v12  ;;  %v8390_v23 = vld [vmem:[%s11392_s1 + $0x2730] ss:$24 sps:$4 sm:$0xff]  }
 0x725   :  { %6171 = vmatprep.subr.bf16.mxu1 %v8353_v27  ;;  %v8393_v12 = vld [vmem:[%s11392_s1 + $0x2738] ss:$24 sps:$4 sm:$0xff]   ;;  %v8398_v27 = vld [vmem:[%s11392_s1 + $0x2764] ss:$24 sps:$4 sm:$0xff]  }
 0x727   :  { %6008 = vmatpush1.bf16.msra.mxu0 %v8348_v28  ;;  %v8401_v28 = vld [vmem:[%s11392_s1 + $0x276c] ss:$24 sps:$4 sm:$0xff]  }
 0x728   :  { %6172 = vmatpush1.bf16.msra.mxu1 %v8351_v29  ;;  %6009 = vmatprep.subr.bf16.mxu0 %v8356_v43  ;;  %v8396_v29 = vld [vmem:[%s11392_s1 + $0x2760] ss:$24 sps:$4 sm:$0xff]  }
 0x729   :  { %6173 = vmatprep.subr.bf16.mxu1 %v8359_v30  ;;  %v8399_v43 = vld [vmem:[%s11392_s1 + $0x2768] ss:$24 sps:$4 sm:$0xff]   ;;  %v8404_v30 = vld [vmem:[%s11392_s1 + $0x2794] ss:$24 sps:$4 sm:$0xff]  }
 0x72b   :  { %6010 = vmatpush1.bf16.msra.mxu0 %v8354_v31  ;;  %v8407_v31 = vld [vmem:[%s11392_s1 + $0x279c] ss:$24 sps:$4 sm:$0xff]  }
 0x72c   :  { %6174 = vmatpush1.bf16.msra.mxu1 %v8357_v32  ;;  %6020 = vmatprep.subr.bf16.mxu0 %v8362_v25  ;;  %v8402_v32 = vld [vmem:[%s11392_s1 + $0x2790] ss:$24 sps:$4 sm:$0xff]  }
 0x72d   :  { %6184 = vmatprep.subr.bf16.mxu1 %v8365_v33  ;;  %v8405_v25 = vld [vmem:[%s11392_s1 + $0x2798] ss:$24 sps:$4 sm:$0xff]   ;;  %v8410_v33 = vld [vmem:[%s11392_s1 + $0x27c4] ss:$24 sps:$4 sm:$0xff]  }
 0x741   :  { %v3453_v40 = vpop.f32.mrb[8].mxu0  ;;  %v3535_v55 = vpop.f32.mrb[24].mxu1 }
 0x742   :  { %v7346_v41 = vadd.f32 %v3453_v40, %v2721_v36  ;;  %v10767_v18 = vadd.f32 %v3535_v55, %v2729_v37  ;;  %v3455_v42 = vpop.f32.mrb[9].mxu0  ;;  %v3537_v44 = vpop.f32.mrb[25].mxu1  ;;  %v8408_v36 = vld [vmem:[%s11392_s1 + $0x27c0] ss:$24 sps:$4 sm:$0xff]   ;;  %v8414_v40 = vld [vmem:[%s11392_s1 + $0x27f0] ss:$24 sps:$4 sm:$0xff]  }
 0x743   :  { %v7347_v45 = vadd.f32 %v3455_v42, %v2725_v38  ;;  %v7349_v46 = vadd.f32 %v3537_v44, %v2733_v39  ;;  %v3457_v47 = vpop.f32.mrb[10].mxu0  ;;  %v3539_v48 = vpop.f32.mrb[26].mxu1  ;;  %v8411_v37 = vld [vmem:[%s11392_s1 + $0x27c8] ss:$24 sps:$4 sm:$0xff]   ;;  %v8416_v38 = vld [vmem:[%s11392_s1 + $0x27f4] ss:$24 sps:$4 sm:$0xff]  }
 0x744   :  { %v3546_v49 = vmax.f32 %v7346_v41, 0.0  ;;  %v3458_v50 = vpop.f32.mrb[11].mxu0  ;;  %v3540_v51 = vpop.f32.mrb[27].mxu1  ;;  %v8419_v39 = vld [vmem:[%s11392_s1 + $0x27fc] ss:$24 sps:$4 sm:$0xff]  }
 0x745   :  { %v3547_v52 = vmax.f32 %v7347_v45, 0.0  ;;  %v3549_v4 = vmax.f32 %v7349_v46, 0.0  ;;  %v8417_v55 = vld [vmem:[%s11392_s1 + $0x27f8] ss:$24 sps:$4 sm:$0xff]   ;;  %v8422_v41 = vld [vmem:[%s11392_s1 + $0x2824] ss:$24 sps:$4 sm:$0xff]  }
 0x746   :  { %v10777_v56 = vpack.c.bf16 %v3546_v49, %v3546_v49  ;;  %v8425_v42 = vld [vmem:[%s11392_s1 + $0x282c] ss:$24 sps:$4 sm:$0xff]   ;;  %v8420_v44 = vld [vmem:[%s11392_s1 + $0x2820] ss:$24 sps:$4 sm:$0xff]   ;;  %v8431_v47 = vld [vmem:[%s11392_s1 + $0x285c] ss:$24 sps:$4 sm:$0xff]  }
 0x747   :  { %v10769_v53 = vpack.c.bf16 %v3547_v52, %v3547_v52  ;;  %v10787_v59 = vpack.c.bf16 %v3549_v4, %v3549_v4  ;;  %v8423_v45 = vld [vmem:[%s11392_s1 + $0x2828] ss:$24 sps:$4 sm:$0xff]   ;;  %v8428_v46 = vld [vmem:[%s11392_s1 + $0x2854] ss:$24 sps:$4 sm:$0xff]   ;;  %v8429_v49 = vld [vmem:[%s11392_s1 + $0x2858] ss:$24 sps:$4 sm:$0xff]  }
 0x748   :  { %v8426_v48 = vld [vmem:[%s11392_s1 + $0x2850] ss:$24 sps:$4 sm:$0xff]   ;;  %v8434_v50 = vld [vmem:[%s11392_s1 + $0x2884] ss:$24 sps:$4 sm:$0xff]   ;;  %v8432_v52 = vld [vmem:[%s11392_s1 + $0x2880] ss:$24 sps:$4 sm:$0xff]  }
 0x749   :  { %6011 = vmatprep.mubr.bf16.mxu0 %v10769_v53  ;;  %6175 = vmatprep.mubr.bf16.mxu1 %v10769_v53  ;;  %v8437_v51 = vld [vmem:[%s11392_s1 + $0x288c] ss:$24 sps:$4 sm:$0xff]   ;;  %v8435_v4 = vld [vmem:[%s11392_s1 + $0x2888] ss:$24 sps:$4 sm:$0xff]  }
 0x74a   :  { %6012 = vmatmul.mubr.bf16.vlgmr.msra.gmra.mrb[12].mxu0 %v10777_v56  ;;  %6176 = vmatmul.mubr.bf16.vlgmr.msra.gmra.mrb[28].mxu1 %v10777_v56 }
 0x74b   :  { %6021 = vmatpush1.bf16.msra.mxu0 %v8360_v54  ;;  %6185 = vmatpush1.bf16.msra.mxu1 %v8363_v8  ;;  %v8440_v54 = vld [vmem:[%s11392_s1 + $0x28b4] ss:$24 sps:$4 sm:$0xff]  }
 0x74c   :  { %6052 = vmatprep.mubr.bf16.mxu0 %v10787_v59  ;;  %6216 = vmatprep.mubr.bf16.mxu1 %v10787_v59  ;;  %v8443_v8 = vld [vmem:[%s11392_s1 + $0x28bc] ss:$24 sps:$4 sm:$0xff]  }
 0x74d   :  { %6022 = vmatprep.subr.bf16.mxu0 %v8368_v19  ;;  %6186 = vmatprep.subr.bf16.mxu1 %v8371_v58  ;;  %v8438_v19 = vld [vmem:[%s11392_s1 + $0x28b0] ss:$24 sps:$4 sm:$0xff]  }
 0x74e   :  { %v8441_v58 = vld [vmem:[%s11392_s1 + $0x28b8] ss:$24 sps:$4 sm:$0xff]  }
 0x74f   :  { %6023 = vmatpush1.bf16.msra.mxu0 %v8366_v60  ;;  %6187 = vmatpush1.bf16.msra.mxu1 %v8369_v61  ;;  %v8446_v60 = vld [vmem:[%s11392_s1 + $0x28e4] ss:$24 sps:$4 sm:$0xff]  }
 0x750   :  { %6024 = vmatprep.subr.bf16.mxu0 %v8374_v3  ;;  %6188 = vmatprep.subr.bf16.mxu1 %v8377_v62  ;;  %v8449_v61 = vld [vmem:[%s11392_s1 + $0x28ec] ss:$24 sps:$4 sm:$0xff]   ;;  %v8444_v3 = vld [vmem:[%s11392_s1 + $0x28e0] ss:$24 sps:$4 sm:$0xff]  }
 0x751   :  { %v8447_v62 = vld [vmem:[%s11392_s1 + $0x28e8] ss:$24 sps:$4 sm:$0xff]  }
 0x753   :  { %6025 = vmatpush1.bf16.msra.mxu0 %v8372_v26  ;;  %6189 = vmatpush1.bf16.msra.mxu1 %v8375_v63  ;;  %v8452_v26 = vld [vmem:[%s11392_s1 + $0x2914] ss:$24 sps:$4 sm:$0xff]  }
 0x754   :  { %6026 = vmatprep.subr.bf16.mxu0 %v8380_v0  ;;  %6190 = vmatprep.subr.bf16.mxu1 %v8383_v15  ;;  %v8455_v63 = vld [vmem:[%s11392_s1 + $0x291c] ss:$24 sps:$4 sm:$0xff]   ;;  %v8450_v0 = vld [vmem:[%s11392_s1 + $0x2910] ss:$24 sps:$4 sm:$0xff]  }
 0x755   :  { %v8453_v15 = vld [vmem:[%s11392_s1 + $0x2918] ss:$24 sps:$4 sm:$0xff]  }
 0x757   :  { %6027 = vmatpush1.bf16.msra.mxu0 %v8378_v17  ;;  %6191 = vmatpush1.bf16.msra.mxu1 %v8381_v10  ;;  %v3548_v17 = vmax.f32 %v10767_v18, 0.0  ;;  %v8458_v10 = vld [vmem:[%s11392_s1 + $0x1d54] ss:$24 sps:$4 sm:$0xff]   ;;  %v8459_v18 = vld [vmem:[%s11392_s1 + $0x1d80] ss:$24 sps:$4 sm:$0xff]  }
 0x758   :  { %6028 = vmatprep.subr.bf16.mxu0 %v8386_v11  ;;  %6192 = vmatprep.subr.bf16.mxu1 %v8389_v34  ;;  %v8456_v11 = vld [vmem:[%s11392_s1 + $0x1d50] ss:$24 sps:$4 sm:$0xff]  }
 0x759   :  { %v10974_v34 = vpack.c.bf16 %v3548_v17, %v3548_v17  ;;  %v8536_v17 = vld [vmem:[%s11392_s1 + $0x2234] ss:$24 sps:$4 sm:$0xff]  }
 0x75b   :  { %6029 = vmatpush1.bf16.msra.mxu0 %v8384_v14  ;;  %6193 = vmatpush1.bf16.msra.mxu1 %v8387_v20  ;;  %v8461_v14 = vld [vmem:[%s11392_s1 + $0x1d84] ss:$24 sps:$4 sm:$0xff]   ;;  %v8464_v20 = vld [vmem:[%s11392_s1 + $0x1db4] ss:$24 sps:$4 sm:$0xff]  }
 0x75c   :  { %6030 = vmatprep.subr.bf16.mxu0 %v8392_v21  ;;  %6194 = vmatprep.subr.bf16.mxu1 %v8395_v22  ;;  %v8462_v21 = vld [vmem:[%s11392_s1 + $0x1db0] ss:$24 sps:$4 sm:$0xff]   ;;  %v8467_v22 = vld [vmem:[%s11392_s1 + $0x1de4] ss:$24 sps:$4 sm:$0xff]  }
 0x75f   :  { %6031 = vmatpush1.bf16.msra.mxu0 %v8390_v23  ;;  %6195 = vmatpush1.bf16.msra.mxu1 %v8393_v12  ;;  %v8470_v23 = vld [vmem:[%s11392_s1 + $0x1e14] ss:$24 sps:$4 sm:$0xff]   ;;  %v8468_v12 = vld [vmem:[%s11392_s1 + $0x1e10] ss:$24 sps:$4 sm:$0xff]  }
 0x760   :  { %6032 = vmatprep.subr.bf16.mxu0 %v8398_v27  ;;  %6196 = vmatprep.subr.bf16.mxu1 %v8401_v28  ;;  %v8473_v27 = vld [vmem:[%s11392_s1 + $0x1e44] ss:$24 sps:$4 sm:$0xff]   ;;  %v8471_v28 = vld [vmem:[%s11392_s1 + $0x1e40] ss:$24 sps:$4 sm:$0xff]  }
 0x763   :  { %6033 = vmatpush1.bf16.msra.mxu0 %v8396_v29  ;;  %6197 = vmatpush1.bf16.msra.mxu1 %v8399_v43  ;;  %v8476_v29 = vld [vmem:[%s11392_s1 + $0x1e74] ss:$24 sps:$4 sm:$0xff]   ;;  %v8474_v43 = vld [vmem:[%s11392_s1 + $0x1e70] ss:$24 sps:$4 sm:$0xff]  }
 0x764   :  { %6034 = vmatprep.subr.bf16.mxu0 %v8404_v30  ;;  %6198 = vmatprep.subr.bf16.mxu1 %v8407_v31  ;;  %v8479_v30 = vld [vmem:[%s11392_s1 + $0x1ea4] ss:$24 sps:$4 sm:$0xff]   ;;  %v8477_v31 = vld [vmem:[%s11392_s1 + $0x1ea0] ss:$24 sps:$4 sm:$0xff]  }
 0x767   :  { %6035 = vmatpush1.bf16.msra.mxu0 %v8402_v32  ;;  %6199 = vmatpush1.bf16.msra.mxu1 %v8405_v25  ;;  %v8482_v32 = vld [vmem:[%s11392_s1 + $0x1ed4] ss:$24 sps:$4 sm:$0xff]   ;;  %v8480_v25 = vld [vmem:[%s11392_s1 + $0x1ed0] ss:$24 sps:$4 sm:$0xff]  }
 0x768   :  { %6036 = vmatprep.subr.bf16.mxu0 %v8410_v33  ;;  %6200 = vmatprep.subr.bf16.mxu1 %v8413_v35  ;;  %v8485_v33 = vld [vmem:[%s11392_s1 + $0x1f04] ss:$24 sps:$4 sm:$0xff]   ;;  %v8483_v35 = vld [vmem:[%s11392_s1 + $0x1f00] ss:$24 sps:$4 sm:$0xff]  }
 0x76b   :  { %6037 = vmatpush1.bf16.msra.mxu0 %v8408_v36  ;;  %6201 = vmatpush1.bf16.msra.mxu1 %v8411_v37  ;;  %v8488_v36 = vld [vmem:[%s11392_s1 + $0x1f34] ss:$24 sps:$4 sm:$0xff]   ;;  %v8486_v37 = vld [vmem:[%s11392_s1 + $0x1f30] ss:$24 sps:$4 sm:$0xff]  }
 0x76c   :  { %6038 = vmatprep.subr.bf16.mxu0 %v8416_v38  ;;  %6202 = vmatprep.subr.bf16.mxu1 %v8419_v39  ;;  %v8491_v38 = vld [vmem:[%s11392_s1 + $0x1f64] ss:$24 sps:$4 sm:$0xff]   ;;  %v8489_v39 = vld [vmem:[%s11392_s1 + $0x1f60] ss:$24 sps:$4 sm:$0xff]  }
 0x76f   :  { %6039 = vmatpush1.bf16.msra.mxu0 %v8414_v40  ;;  %6203 = vmatpush1.bf16.msra.mxu1 %v8417_v55  ;;  %v8494_v40 = vld [vmem:[%s11392_s1 + $0x1f94] ss:$24 sps:$4 sm:$0xff]   ;;  %v8492_v55 = vld [vmem:[%s11392_s1 + $0x1f90] ss:$24 sps:$4 sm:$0xff]  }
 0x770   :  { %6040 = vmatprep.subr.bf16.mxu0 %v8422_v41  ;;  %6204 = vmatprep.subr.bf16.mxu1 %v8425_v42  ;;  %v8497_v41 = vld [vmem:[%s11392_s1 + $0x1fc4] ss:$24 sps:$4 sm:$0xff]   ;;  %v8495_v42 = vld [vmem:[%s11392_s1 + $0x1fc0] ss:$24 sps:$4 sm:$0xff]  }
 0x773   :  { %6041 = vmatpush1.bf16.msra.mxu0 %v8420_v44  ;;  %6205 = vmatpush1.bf16.msra.mxu1 %v8423_v45  ;;  %v8500_v44 = vld [vmem:[%s11392_s1 + $0x1ff4] ss:$24 sps:$4 sm:$0xff]   ;;  %v8498_v45 = vld [vmem:[%s11392_s1 + $0x1ff0] ss:$24 sps:$4 sm:$0xff]  }
 0x774   :  { %6042 = vmatprep.subr.bf16.mxu0 %v8428_v46  ;;  %6206 = vmatprep.subr.bf16.mxu1 %v8431_v47  ;;  %v8503_v46 = vld [vmem:[%s11392_s1 + $0x2024] ss:$24 sps:$4 sm:$0xff]   ;;  %v8501_v47 = vld [vmem:[%s11392_s1 + $0x2020] ss:$24 sps:$4 sm:$0xff]  }
 0x777   :  { %6043 = vmatpush1.bf16.msra.mxu0 %v8426_v48  ;;  %6207 = vmatpush1.bf16.msra.mxu1 %v8429_v49  ;;  %v8506_v48 = vld [vmem:[%s11392_s1 + $0x2054] ss:$24 sps:$4 sm:$0xff]   ;;  %v8504_v49 = vld [vmem:[%s11392_s1 + $0x2050] ss:$24 sps:$4 sm:$0xff]  }
 0x778   :  { %6044 = vmatprep.subr.bf16.mxu0 %v8434_v50  ;;  %6208 = vmatprep.subr.bf16.mxu1 %v8437_v51  ;;  %v8509_v50 = vld [vmem:[%s11392_s1 + $0x2084] ss:$24 sps:$4 sm:$0xff]   ;;  %v8507_v51 = vld [vmem:[%s11392_s1 + $0x2080] ss:$24 sps:$4 sm:$0xff]  }
 0x77b   :  { %6045 = vmatpush1.bf16.msra.mxu0 %v8432_v52  ;;  %6209 = vmatpush1.bf16.msra.mxu1 %v8435_v4  ;;  %v8512_v52 = vld [vmem:[%s11392_s1 + $0x20b4] ss:$24 sps:$4 sm:$0xff]   ;;  %v8510_v4 = vld [vmem:[%s11392_s1 + $0x20b0] ss:$24 sps:$4 sm:$0xff]  }
 0x77c   :  { %6046 = vmatprep.subr.bf16.mxu0 %v8440_v54  ;;  %6210 = vmatprep.subr.bf16.mxu1 %v8443_v8  ;;  %v8518_v54 = vld [vmem:[%s11392_s1 + $0x2114] ss:$24 sps:$4 sm:$0xff]   ;;  %v8516_v8 = vld [vmem:[%s11392_s1 + $0x2110] ss:$24 sps:$4 sm:$0xff]  }
 0x77f   :  { %6047 = vmatpush1.bf16.msra.mxu0 %v8438_v19  ;;  %6211 = vmatpush1.bf16.msra.mxu1 %v8441_v58  ;;  %v8521_v19 = vld [vmem:[%s11392_s1 + $0x2144] ss:$24 sps:$4 sm:$0xff]   ;;  %v8519_v58 = vld [vmem:[%s11392_s1 + $0x2140] ss:$24 sps:$4 sm:$0xff]  }
 0x780   :  { %6048 = vmatprep.subr.bf16.mxu0 %v8446_v60  ;;  %6212 = vmatprep.subr.bf16.mxu1 %v8449_v61  ;;  %v8524_v60 = vld [vmem:[%s11392_s1 + $0x2174] ss:$24 sps:$4 sm:$0xff]   ;;  %v8522_v61 = vld [vmem:[%s11392_s1 + $0x2170] ss:$24 sps:$4 sm:$0xff]  }
 0x783   :  { %6049 = vmatpush1.bf16.msra.mxu0 %v8444_v3  ;;  %6213 = vmatpush1.bf16.msra.mxu1 %v8447_v62  ;;  %v8527_v3 = vld [vmem:[%s11392_s1 + $0x21a4] ss:$24 sps:$4 sm:$0xff]   ;;  %v8525_v62 = vld [vmem:[%s11392_s1 + $0x21a0] ss:$24 sps:$4 sm:$0xff]  }
 0x784   :  { %6050 = vmatprep.subr.bf16.mxu0 %v8452_v26  ;;  %6214 = vmatprep.subr.bf16.mxu1 %v8455_v63  ;;  %v8530_v26 = vld [vmem:[%s11392_s1 + $0x21d4] ss:$24 sps:$4 sm:$0xff]   ;;  %v8528_v63 = vld [vmem:[%s11392_s1 + $0x21d0] ss:$24 sps:$4 sm:$0xff]  }
 0x787   :  { %6051 = vmatpush1.bf16.msra.mxu0 %v8450_v0  ;;  %6215 = vmatpush1.bf16.msra.mxu1 %v8453_v15  ;;  %v8533_v0 = vld [vmem:[%s11392_s1 + $0x2204] ss:$24 sps:$4 sm:$0xff]   ;;  %v8531_v15 = vld [vmem:[%s11392_s1 + $0x2200] ss:$24 sps:$4 sm:$0xff]  }
 0x788   :  { %6225 = vmatprep.subr.bf16.mxu0 %v8458_v10  ;;  %v8534_v10 = vld [vmem:[%s11392_s1 + $0x2230] ss:$24 sps:$4 sm:$0xff]  }
 0x78a   :  { %6053 = vmatmul.mubr.bf16.vlgmr.msra.gmra.mrb[12].mxu0 %v10974_v34  ;;  %6217 = vmatmul.mubr.bf16.vlgmr.msra.gmra.mrb[28].mxu1 %v10974_v34 }
 0x78b   :  { %6226 = vmatpush1.bf16.msra.mxu0 %v8456_v11  ;;  %6257 = vmatprep.mubr.bf16.mxu0 %v10177_v57  ;;  %v8465_v57 = vld [vmem:[%s11392_s1 + $0x1de0] ss:$24 sps:$4 sm:$0xff]   ;;  %v8539_v11 = vld [vmem:[%s11392_s1 + $0x2264] ss:$24 sps:$4 sm:$0xff]  }
 0x78c   :  { %6227 = vmatprep.subr.bf16.mxu0 %v8461_v14  ;;  %v8537_v14 = vld [vmem:[%s11392_s1 + $0x2260] ss:$24 sps:$4 sm:$0xff]  }
 0x78f   :  { %6228 = vmatpush1.bf16.msra.mxu0 %v8459_v18  ;;  %v8542_v18 = vld [vmem:[%s11392_s1 + $0x2294] ss:$24 sps:$4 sm:$0xff]  }
 0x790   :  { %6229 = vmatprep.subr.bf16.mxu0 %v8464_v20  ;;  %v8540_v20 = vld [vmem:[%s11392_s1 + $0x2290] ss:$24 sps:$4 sm:$0xff]  }
 0x793   :  { %6230 = vmatpush1.bf16.msra.mxu0 %v8462_v21  ;;  %v8545_v21 = vld [vmem:[%s11392_s1 + $0x22c4] ss:$24 sps:$4 sm:$0xff]  }
 0x794   :  { %6231 = vmatprep.subr.bf16.mxu0 %v8467_v22  ;;  %v8543_v22 = vld [vmem:[%s11392_s1 + $0x22c0] ss:$24 sps:$4 sm:$0xff]  }
 0x797   :  { %6232 = vmatpush1.bf16.msra.mxu0 %v8465_v57  ;;  %v8548_v57 = vld [vmem:[%s11392_s1 + $0x22f4] ss:$24 sps:$4 sm:$0xff]  }
 0x798   :  { %6233 = vmatprep.subr.bf16.mxu0 %v8470_v23  ;;  %v8546_v23 = vld [vmem:[%s11392_s1 + $0x22f0] ss:$24 sps:$4 sm:$0xff]  }
 0x79b   :  { %6234 = vmatpush1.bf16.msra.mxu0 %v8468_v12  ;;  %v8551_v12 = vld [vmem:[%s11392_s1 + $0x2324] ss:$24 sps:$4 sm:$0xff]  }
 0x79c   :  { %6235 = vmatprep.subr.bf16.mxu0 %v8473_v27  ;;  %v8549_v27 = vld [vmem:[%s11392_s1 + $0x2320] ss:$24 sps:$4 sm:$0xff]  }
 0x79f   :  { %6236 = vmatpush1.bf16.msra.mxu0 %v8471_v28  ;;  %v8554_v28 = vld [vmem:[%s11392_s1 + $0x2354] ss:$24 sps:$4 sm:$0xff]  }
 0x7a0   :  { %6237 = vmatprep.subr.bf16.mxu0 %v8476_v29  ;;  %v8552_v29 = vld [vmem:[%s11392_s1 + $0x2350] ss:$24 sps:$4 sm:$0xff]  }
 0x7a3   :  { %6238 = vmatpush1.bf16.msra.mxu0 %v8474_v43  ;;  %v8557_v43 = vld [vmem:[%s11392_s1 + $0x2384] ss:$24 sps:$4 sm:$0xff]  }
 0x7a4   :  { %6239 = vmatprep.subr.bf16.mxu0 %v8479_v30  ;;  %v8555_v30 = vld [vmem:[%s11392_s1 + $0x2380] ss:$24 sps:$4 sm:$0xff]  }
 0x7a7   :  { %6240 = vmatpush1.bf16.msra.mxu0 %v8477_v31  ;;  %v8560_v31 = vld [vmem:[%s11392_s1 + $0x23b4] ss:$24 sps:$4 sm:$0xff]  }
 0x7a8   :  { %6241 = vmatprep.subr.bf16.mxu0 %v8482_v32  ;;  %v8558_v32 = vld [vmem:[%s11392_s1 + $0x23b0] ss:$24 sps:$4 sm:$0xff]  }
 0x7ab   :  { %6242 = vmatpush1.bf16.msra.mxu0 %v8480_v25  ;;  %v8566_v25 = vld [vmem:[%s11392_s1 + $0x2414] ss:$24 sps:$4 sm:$0xff]  }
 0x7ac   :  { %6243 = vmatprep.subr.bf16.mxu0 %v8485_v33  ;;  %v8564_v33 = vld [vmem:[%s11392_s1 + $0x2410] ss:$24 sps:$4 sm:$0xff]  }
 0x7af   :  { %6244 = vmatpush1.bf16.msra.mxu0 %v8483_v35  ;;  %v8569_v35 = vld [vmem:[%s11392_s1 + $0x2444] ss:$24 sps:$4 sm:$0xff]  }
 0x7b0   :  { %6245 = vmatprep.subr.bf16.mxu0 %v8488_v36  ;;  %v8567_v36 = vld [vmem:[%s11392_s1 + $0x2440] ss:$24 sps:$4 sm:$0xff]  }
 0x7b3   :  { %6246 = vmatpush1.bf16.msra.mxu0 %v8486_v37  ;;  %v8572_v37 = vld [vmem:[%s11392_s1 + $0x2474] ss:$24 sps:$4 sm:$0xff]  }
 0x7b4   :  { %6247 = vmatprep.subr.bf16.mxu0 %v8491_v38  ;;  %v8570_v38 = vld [vmem:[%s11392_s1 + $0x2470] ss:$24 sps:$4 sm:$0xff]  }
 0x7b7   :  { %6248 = vmatpush1.bf16.msra.mxu0 %v8489_v39  ;;  %v8575_v39 = vld [vmem:[%s11392_s1 + $0x24a4] ss:$24 sps:$4 sm:$0xff]  }
 0x7b8   :  { %6249 = vmatprep.subr.bf16.mxu0 %v8494_v40  ;;  %v8573_v40 = vld [vmem:[%s11392_s1 + $0x24a0] ss:$24 sps:$4 sm:$0xff]  }
 0x7bb   :  { %6250 = vmatpush1.bf16.msra.mxu0 %v8492_v55  ;;  %v8578_v55 = vld [vmem:[%s11392_s1 + $0x24d4] ss:$24 sps:$4 sm:$0xff]  }
 0x7bc   :  { %6251 = vmatprep.subr.bf16.mxu0 %v8497_v41  ;;  %v8576_v41 = vld [vmem:[%s11392_s1 + $0x24d0] ss:$24 sps:$4 sm:$0xff]  }
 0x7bf   :  { %6252 = vmatpush1.bf16.msra.mxu0 %v8495_v42  ;;  %v8581_v42 = vld [vmem:[%s11392_s1 + $0x2504] ss:$24 sps:$4 sm:$0xff]  }
 0x7c0   :  { %6253 = vmatprep.subr.bf16.mxu0 %v8500_v44  ;;  %v8579_v44 = vld [vmem:[%s11392_s1 + $0x2500] ss:$24 sps:$4 sm:$0xff]  }
 0x7c3   :  { %6254 = vmatpush1.bf16.msra.mxu0 %v8498_v45  ;;  %v8584_v45 = vld [vmem:[%s11392_s1 + $0x2534] ss:$24 sps:$4 sm:$0xff]  }
 0x7c4   :  { %6255 = vmatprep.subr.bf16.mxu0 %v8503_v46  ;;  %v8582_v46 = vld [vmem:[%s11392_s1 + $0x2530] ss:$24 sps:$4 sm:$0xff]  }
 0x7c7   :  { %6256 = vmatpush1.bf16.msra.mxu0 %v8501_v47  ;;  %v8587_v47 = vld [vmem:[%s11392_s1 + $0x2564] ss:$24 sps:$4 sm:$0xff]  }
 0x7c8   :  { %6266 = vmatprep.subr.bf16.mxu0 %v8506_v48  ;;  %v8585_v48 = vld [vmem:[%s11392_s1 + $0x2560] ss:$24 sps:$4 sm:$0xff]  }
 0x7ca   :  { %6258 = vmatmul.mubr.bf16.vlgmr.msra.gmra.mrb[16].mxu0 %v10366_v1  ;;  %v8515_v1 = vld [vmem:[%s11392_s1 + $0x20e4] ss:$24 sps:$4 sm:$0xff]  }
 0x7cb   :  { %6267 = vmatpush1.bf16.msra.mxu0 %v8504_v49  ;;  %6298 = vmatprep.mubr.bf16.mxu0 %v10371_v2  ;;  %v8513_v2 = vld [vmem:[%s11392_s1 + $0x20e0] ss:$24 sps:$4 sm:$0xff]   ;;  %v8590_v49 = vld [vmem:[%s11392_s1 + $0x2594] ss:$24 sps:$4 sm:$0xff]  }
 0x7cc   :  { %6268 = vmatprep.subr.bf16.mxu0 %v8509_v50  ;;  %v8588_v50 = vld [vmem:[%s11392_s1 + $0x2590] ss:$24 sps:$4 sm:$0xff]  }
 0x7cf   :  { %6269 = vmatpush1.bf16.msra.mxu0 %v8507_v51  ;;  %v8593_v51 = vld [vmem:[%s11392_s1 + $0x25c4] ss:$24 sps:$4 sm:$0xff]  }
 0x7d0   :  { %6270 = vmatprep.subr.bf16.mxu0 %v8512_v52  ;;  %v8591_v52 = vld [vmem:[%s11392_s1 + $0x25c0] ss:$24 sps:$4 sm:$0xff]  }
 0x7d3   :  { %6271 = vmatpush1.bf16.msra.mxu0 %v8510_v4  ;;  %v8596_v4 = vld [vmem:[%s11392_s1 + $0x25f4] ss:$24 sps:$4 sm:$0xff]  }
 0x7d4   :  { %6272 = vmatprep.subr.bf16.mxu0 %v8515_v1  ;;  %v8594_v1 = vld [vmem:[%s11392_s1 + $0x25f0] ss:$24 sps:$4 sm:$0xff]  }
 0x7d7   :  { %6273 = vmatpush1.bf16.msra.mxu0 %v8513_v2  ;;  %v8599_v2 = vld [vmem:[%s11392_s1 + $0x2624] ss:$24 sps:$4 sm:$0xff]  }
 0x7d8   :  { %6274 = vmatprep.subr.bf16.mxu0 %v8518_v54  ;;  %v8597_v54 = vld [vmem:[%s11392_s1 + $0x2620] ss:$24 sps:$4 sm:$0xff]  }
 0x7db   :  { %6275 = vmatpush1.bf16.msra.mxu0 %v8516_v8  ;;  %v8602_v8 = vld [vmem:[%s11392_s1 + $0x2654] ss:$24 sps:$4 sm:$0xff]  }
 0x7dc   :  { %6276 = vmatprep.subr.bf16.mxu0 %v8521_v19  ;;  %v8600_v19 = vld [vmem:[%s11392_s1 + $0x2650] ss:$24 sps:$4 sm:$0xff]  }
 0x7df   :  { %6277 = vmatpush1.bf16.msra.mxu0 %v8519_v58  ;;  %v8605_v58 = vld [vmem:[%s11392_s1 + $0x2684] ss:$24 sps:$4 sm:$0xff]  }
 0x7e0   :  { %6278 = vmatprep.subr.bf16.mxu0 %v8524_v60  ;;  %v8603_v60 = vld [vmem:[%s11392_s1 + $0x2680] ss:$24 sps:$4 sm:$0xff]  }
 0x7e3   :  { %6279 = vmatpush1.bf16.msra.mxu0 %v8522_v61  ;;  %v8608_v61 = vld [vmem:[%s11392_s1 + $0x26b4] ss:$24 sps:$4 sm:$0xff]  }
 0x7e4   :  { %6280 = vmatprep.subr.bf16.mxu0 %v8527_v3  ;;  %v8606_v3 = vld [vmem:[%s11392_s1 + $0x26b0] ss:$24 sps:$4 sm:$0xff]  }
 0x7e7   :  { %6281 = vmatpush1.bf16.msra.mxu0 %v8525_v62  ;;  %v6883_v62 = vld [vmem:[%s11394_s2 + $0x7] ss:$8 sm:$0xf] }
 0x7e8   :  { %6282 = vmatprep.subr.bf16.mxu0 %v8530_v26  ;;  %v6884_v26 = vld [vmem:[%s11394_s2 + $0x7] ss:$8 sm:$0x30] }
 0x7eb   :  { %6283 = vmatpush1.bf16.msra.mxu0 %v8528_v63  ;;  %v8614_v63 = vld [vmem:[%s11392_s1 + $0x2714] ss:$24 sps:$4 sm:$0xff]  }
 0x7ec   :  { %6284 = vmatprep.subr.bf16.mxu0 %v8533_v0  ;;  %v11300_v0 = vor.u32 %v6884_v26, %v6883_v62 }
 0x7ef   :  { %6285 = vmatpush1.bf16.msra.mxu0 %v8531_v15  ;;  %v8612_v15 = vld [vmem:[%s11392_s1 + $0x2710] ss:$24 sps:$4 sm:$0xff]  }
 0x7f0   :  { %6286 = vmatprep.subr.bf16.mxu0 %v8536_v17  ;;  %v8617_v17 = vld [vmem:[%s11392_s1 + $0x2744] ss:$24 sps:$4 sm:$0xff]  }
 0x7f3   :  { %6287 = vmatpush1.bf16.msra.mxu0 %v8534_v10  ;;  %v3950_v10 = vrot.slane %v11300_v0, %v9418_v5 }
 0x7f4   :  { %6288 = vmatprep.subr.bf16.mxu0 %v8539_v11  ;;  %v3958_v11 = vrot.slane %v11300_v0, %v9565_v7 }
 0x7f7   :  { %6289 = vmatpush1.bf16.msra.mxu0 %v8537_v14  ;;  %v3954_v14 = vrot.slane %v11300_v0, %v9421_v6 }
 0x7f8   :  { %6290 = vmatprep.subr.bf16.mxu0 %v8542_v18  ;;  %v3962_v18 = vrot.slane %v11300_v0, %v9568_v9  ;;  %v8618_v9 = vld [vmem:[%s11392_s1 + $0x2770] ss:$24 sps:$4 sm:$0xff]  }
 0x7fb   :  { %6291 = vmatpush1.bf16.msra.mxu0 %v8540_v20  ;;  %v8615_v20 = vld [vmem:[%s11392_s1 + $0x2740] ss:$24 sps:$4 sm:$0xff]  }
 0x7fc   :  { %6292 = vmatprep.subr.bf16.mxu0 %v8545_v21  ;;  %v8620_v21 = vld [vmem:[%s11392_s1 + $0x2774] ss:$24 sps:$4 sm:$0xff]  }
 0x7ff   :  { %6293 = vmatpush1.bf16.msra.mxu0 %v8543_v22 }
 0x800   :  { %6294 = vmatprep.subr.bf16.mxu0 %v8548_v57 }
 0x803   :  { %6295 = vmatpush1.bf16.msra.mxu0 %v8546_v23 }
 0x804   :  { %6296 = vmatprep.subr.bf16.mxu0 %v8551_v12 }
 0x807   :  { %6297 = vmatpush1.bf16.msra.mxu0 %v8549_v27 }
 0x808   :  { %6307 = vmatprep.subr.bf16.mxu0 %v8554_v28 }
 0x80a   :  { %6299 = vmatmul.mubr.bf16.vlgmr.msra.gmra.mrb[16].mxu0 %v10567_v24  ;;  %v8563_v24 = vld [vmem:[%s11392_s1 + $0x23e4] ss:$24 sps:$4 sm:$0xff]  }
 0x80b   :  { %6308 = vmatpush1.bf16.msra.mxu0 %v8552_v29  ;;  %6339 = vmatprep.mubr.bf16.mxu0 %v10769_v53  ;;  %v8561_v53 = vld [vmem:[%s11392_s1 + $0x23e0] ss:$24 sps:$4 sm:$0xff]  }
 0x80c   :  { %6309 = vmatprep.subr.bf16.mxu0 %v8557_v43 }
 0x80f   :  { %6310 = vmatpush1.bf16.msra.mxu0 %v8555_v30 }
 0x810   :  { %6311 = vmatprep.subr.bf16.mxu0 %v8560_v31  ;;  %v8623_v31 = vld [vmem:[%s11392_s1 + $0x27a4] ss:$24 sps:$4 sm:$0xff]  }
 0x813   :  { %6312 = vmatpush1.bf16.msra.mxu0 %v8558_v32  ;;  %v8621_v32 = vld [vmem:[%s11392_s1 + $0x27a0] ss:$24 sps:$4 sm:$0xff]  }
 0x814   :  { %6313 = vmatprep.subr.bf16.mxu0 %v8563_v24  ;;  %v8626_v24 = vld [vmem:[%s11392_s1 + $0x27d4] ss:$24 sps:$4 sm:$0xff]  }
 0x817   :  { %6314 = vmatpush1.bf16.msra.mxu0 %v8561_v53  ;;  %v8624_v53 = vld [vmem:[%s11392_s1 + $0x27d0] ss:$24 sps:$4 sm:$0xff]  }
 0x818   :  { %6315 = vmatprep.subr.bf16.mxu0 %v8566_v25  ;;  %v8629_v25 = vld [vmem:[%s11392_s1 + $0x2804] ss:$24 sps:$4 sm:$0xff]  }
 0x81b   :  { %6316 = vmatpush1.bf16.msra.mxu0 %v8564_v33 }
 0x81c   :  { %6317 = vmatprep.subr.bf16.mxu0 %v8569_v35 }
 0x81f   :  { %6318 = vmatpush1.bf16.msra.mxu0 %v8567_v36  ;;  %v8627_v36 = vld [vmem:[%s11392_s1 + $0x2800] ss:$24 sps:$4 sm:$0xff]  }
 0x820   :  { %6319 = vmatprep.subr.bf16.mxu0 %v8572_v37 }
 0x823   :  { %6320 = vmatpush1.bf16.msra.mxu0 %v8570_v38  ;;  %v8632_v38 = vld [vmem:[%s11392_s1 + $0x2834] ss:$24 sps:$4 sm:$0xff]  }
 0x824   :  { %6321 = vmatprep.subr.bf16.mxu0 %v8575_v39 }
 0x827   :  { %6322 = vmatpush1.bf16.msra.mxu0 %v8573_v40 }
 0x828   :  { %6323 = vmatprep.subr.bf16.mxu0 %v8578_v55 }
 0x82b   :  { %6324 = vmatpush1.bf16.msra.mxu0 %v8576_v41 }
 0x82c   :  { %6325 = vmatprep.subr.bf16.mxu0 %v8581_v42  ;;  %v8630_v42 = vld [vmem:[%s11392_s1 + $0x2830] ss:$24 sps:$4 sm:$0xff]  }
 0x82f   :  { %6326 = vmatpush1.bf16.msra.mxu0 %v8579_v44 }
 0x830   :  { %6327 = vmatprep.subr.bf16.mxu0 %v8584_v45  ;;  %v8635_v45 = vld [vmem:[%s11392_s1 + $0x2864] ss:$24 sps:$4 sm:$0xff]  }
 0x833   :  { %6328 = vmatpush1.bf16.msra.mxu0 %v8582_v46 }
 0x834   :  { %6329 = vmatprep.subr.bf16.mxu0 %v8587_v47  ;;  %v8633_v47 = vld [vmem:[%s11392_s1 + $0x2860] ss:$24 sps:$4 sm:$0xff]  }
 0x837   :  { %6330 = vmatpush1.bf16.msra.mxu0 %v8585_v48  ;;  %v8638_v48 = vld [vmem:[%s11392_s1 + $0x2894] ss:$24 sps:$4 sm:$0xff]  }
 0x838   :  { %6331 = vmatprep.subr.bf16.mxu0 %v8590_v49  ;;  %v8641_v49 = vld [vmem:[%s11392_s1 + $0x28c4] ss:$24 sps:$4 sm:$0xff]  }
 0x83b   :  { %6332 = vmatpush1.bf16.msra.mxu0 %v8588_v50  ;;  %v8639_v50 = vld [vmem:[%s11392_s1 + $0x28c0] ss:$24 sps:$4 sm:$0xff]  }
 0x83c   :  { %6333 = vmatprep.subr.bf16.mxu0 %v8593_v51  ;;  %v8644_v51 = vld [vmem:[%s11392_s1 + $0x28f4] ss:$24 sps:$4 sm:$0xff]  }
 0x83f   :  { %6334 = vmatpush1.bf16.msra.mxu0 %v8591_v52  ;;  %v8642_v52 = vld [vmem:[%s11392_s1 + $0x28f0] ss:$24 sps:$4 sm:$0xff]  }
 0x840   :  { %6335 = vmatprep.subr.bf16.mxu0 %v8596_v4  ;;  %v8647_v4 = vld [vmem:[%s11392_s1 + $0x2924] ss:$24 sps:$4 sm:$0xff]  }
 0x843   :  { %6336 = vmatpush1.bf16.msra.mxu0 %v8594_v1  ;;  %v8645_v1 = vld [vmem:[%s11392_s1 + $0x2920] ss:$24 sps:$4 sm:$0xff]  }
 0x844   :  { %6337 = vmatprep.subr.bf16.mxu0 %v8599_v2  ;;  %v3965_v2 = vsub.s32 4, %v8710_v13 }
 0x847   :  { %6338 = vmatpush1.bf16.msra.mxu0 %v8597_v54  ;;  %v3969_v54 = vsub.s32 5, %v8710_v13 }
 0x848   :  { %6348 = vmatprep.subr.bf16.mxu0 %v8602_v8  ;;  %v3966_v8 = vrot.slane %v11300_v0, %v3965_v2 }
 0x84a   :  { %6340 = vmatmul.mubr.bf16.vlgmr.msra.gmra.mrb[16].mxu0 %v10777_v56  ;;  %v8611_v56 = vld [vmem:[%s11392_s1 + $0x26e4] ss:$24 sps:$4 sm:$0xff]  }
 0x84b   :  { %6349 = vmatpush1.bf16.msra.mxu0 %v8600_v19  ;;  %6380 = vmatprep.mubr.bf16.mxu0 %v10787_v59  ;;  %v8609_v59 = vld [vmem:[%s11392_s1 + $0x26e0] ss:$24 sps:$4 sm:$0xff]   ;;  %v3970_v19 = vrot.slane %v11300_v0, %v3969_v54 }
 0x84c   :  { %6350 = vmatprep.subr.bf16.mxu0 %v8605_v58 }
 0x84f   :  { %6351 = vmatpush1.bf16.msra.mxu0 %v8603_v60 }
 0x850   :  { %6352 = vmatprep.subr.bf16.mxu0 %v8608_v61 }
 0x853   :  { %6353 = vmatpush1.bf16.msra.mxu0 %v8606_v3 }
 0x854   :  { %6354 = vmatprep.subr.bf16.mxu0 %v8611_v56 }
 0x857   :  { %6355 = vmatpush1.bf16.msra.mxu0 %v8609_v59 }
 0x858   :  { %6356 = vmatprep.subr.bf16.mxu0 %v8614_v63 }
 0x85b   :  { %6357 = vmatpush1.bf16.msra.mxu0 %v8612_v15 }
 0x85c   :  { %6358 = vmatprep.subr.bf16.mxu0 %v8617_v17 }
 0x85d   :  { %v6054_v5 = vpop.f32.mrb[12].mxu0  ;;  %v6218_v22 = vpop.f32.mrb[28].mxu1 }
 0x85e   :  { %v7350_v57 = vadd.f32 %v6054_v5, %v3950_v10  ;;  %v7352_v7 = vadd.f32 %v6218_v22, %v3958_v11  ;;  %v6056_v23 = vpop.f32.mrb[13].mxu0  ;;  %v6220_v12 = vpop.f32.mrb[29].mxu1 }
 0x85f   :  { %v7351_v27 = vadd.f32 %v6056_v23, %v3954_v14  ;;  %v7353_v6 = vadd.f32 %v6220_v12, %v3962_v18  ;;  %v6058_v28 = vpop.f32.mrb[14].mxu0  ;;  %v6222_v29 = vpop.f32.mrb[30].mxu1  ;;  %6359 = vmatpush1.bf16.msra.mxu0 %v8615_v20 }
 0x860   :  { %8648 = vtanh.f32 %v7350_v57  ;;  %v6059_v43 = vpop.f32.mrb[15].mxu0  ;;  %v6223_v30 = vpop.f32.mrb[31].mxu1  ;;  %6360 = vmatprep.subr.bf16.mxu0 %v8620_v21 }
 0x861   :  { %8650 = vtanh.f32 %v7352_v7 }
 0x862   :  { %8652 = vtanh.f32 %v7351_v27 }
 0x863   :  { %8654 = vtanh.f32 %v7353_v6  ;;  %6361 = vmatpush1.bf16.msra.mxu0 %v8618_v9 }
 0x864   :  { %6362 = vmatprep.subr.bf16.mxu0 %v8623_v31 }
 0x867   :  { %6363 = vmatpush1.bf16.msra.mxu0 %v8621_v32 }
 0x868   :  { %6364 = vmatprep.subr.bf16.mxu0 %v8626_v24 }
 0x86a   :  { %v8649_v33 = vpop.eup %8648 }
 0x86b   :  { %v8651_v35 = vpop.eup %8650  ;;  %6365 = vmatpush1.bf16.msra.mxu0 %v8624_v53 }
 0x86c   :  { %v8653_v37 = vpop.eup %8652  ;;  %6366 = vmatprep.subr.bf16.mxu0 %v8629_v25 }
 0x86d   :  { %v8655_v39 = vpop.eup %8654  ;;  %v6401_v40 = vcombine.low %v8649_v33, %v8653_v37 }
 0x86e   :  { %v6402_v55 = vcombine.low %v8651_v35, %v8655_v39 }
 0x86f   :  { %v6409_v41 = vrot.slane %v6401_v40, %v8719_v16  ;;  %6367 = vmatpush1.bf16.msra.mxu0 %v8627_v36 }
 0x870   :  { %v6416_v44 = vrot.slane %v6402_v55, %v8719_v16  ;;  %6368 = vmatprep.subr.bf16.mxu0 %v8632_v38  ;;  %v8636_v16 = vld [vmem:[%s11392_s1 + $0x2890] ss:$24 sps:$4 sm:$0xff]  }
 0x872   :  { %v6417_v46 = vcombine.low %v6409_v41, %v6416_v44 }
 0x873   :  { %6369 = vmatpush1.bf16.msra.mxu0 %v8630_v42 }
 0x874   :  { %6370 = vmatprep.subr.bf16.mxu0 %v8635_v45  ;;  %6428 = vst [vmem:[%s11395_s3] sm:$0xff] %v6417_v46 }
 0x877   :  { %6371 = vmatpush1.bf16.msra.mxu0 %v8633_v47 }
 0x878   :  { %6372 = vmatprep.subr.bf16.mxu0 %v8638_v48 }
 0x87b   :  { %6373 = vmatpush1.bf16.msra.mxu0 %v8636_v16 }
 0x87c   :  { %6374 = vmatprep.subr.bf16.mxu0 %v8641_v49 }
 0x87f   :  { %6375 = vmatpush1.bf16.msra.mxu0 %v8639_v50 }
 0x880   :  { %6376 = vmatprep.subr.bf16.mxu0 %v8644_v51 }
 0x883   :  { %6377 = vmatpush1.bf16.msra.mxu0 %v8642_v52 }
 0x884   :  { %6378 = vmatprep.subr.bf16.mxu0 %v8647_v4 }
 0x887   :  { %6379 = vmatpush1.bf16.msra.mxu0 %v8645_v1 }
 0x88a   :  { %6381 = vmatmul.mubr.bf16.vlgmr.msra.gmra.mrb[16].mxu0 %v10974_v34 }
 0x95d   :  { %v6382_v58 = vpop.f32.mrb[16].mxu0 }
 0x95e   :  { %v7354_v60 = vadd.f32 %v6382_v58, %v3966_v8  ;;  %v6384_v61 = vpop.f32.mrb[17].mxu0 }
 0x95f   :  { %v7355_v3 = vadd.f32 %v6384_v61, %v3970_v19  ;;  %v6386_v56 = vpop.f32.mrb[18].mxu0 }
 0x960   :  { %8656 = vtanh.f32 %v7354_v60  ;;  %v6387_v59 = vpop.f32.mrb[19].mxu0 }
 0x961   :  { %8658 = vtanh.f32 %v7355_v3 }
 0x96a   :  { %v8657_v62 = vpop.eup %8656 }
 0x96b   :  { %v8659_v26 = vpop.eup %8658 }
 0x96c   :  { %v6418_v63 = vcombine.low %v8657_v62, %v8659_v26 }
 0x96e   :  { %7269 = vst.sshfl [vmem:[%s11395_s3 + $0x8] sm:$0x33 pattern:$0x76325410] %v6418_v63 }

</bundles_post_ra>
